<compile_context>
chip_gen: v7x
topology: tpu7x:2x2x1
jax: 0.10.0
libtpu: 0.0.40
codegen_flags: <defaults>
</compile_context>

<pallas_src>
import functools

import jax
import jax.numpy as jnp
from jax import lax
from jax.experimental import pallas as pl
from jax.experimental.pallas import tpu as pltpu

EPS = 1e-5  # PyTorch BatchNorm2d default eps


def _cparams():
    # Explicit scoped-VMEM budget (well below v7x physical 64 MiB); batch axis parallel.
    return pltpu.CompilerParams(
        dimension_semantics=("parallel",),
        vmem_limit_bytes=32 * 1024 * 1024,
    )


# ----------------------------- Pallas kernels ------------------------------

def expand_dw_pool_kernel(x_ref, we_ref, se_ref, be_ref, wdw_ref, sdw_ref, bdw_ref,
                          y_ref, xh_ref, xw_ref, *, stride, H, W, Ho, Wo):
    Cin = x_ref.shape[-1]
    Chid = we_ref.shape[-1]

    # 1) 1x1 expand conv + folded BN + ReLU6 (MXU + VPU), stays in VMEM.
    x2d = x_ref[0].reshape(H * W, Cin)
    z = jnp.dot(x2d, we_ref[...], preferred_element_type=jnp.float32)
    z = jnp.clip(z * se_ref[...] + be_ref[...], 0.0, 6.0)
    y = z.reshape(H, W, Chid)

    # 2) depthwise 3x3, pad=1.  Halo handled in VMEM via concatenation with zeros
    #    (no second HBM copy of the padded activation).
    zc = jnp.zeros((H, 1, Chid), jnp.float32)
    yp = jnp.concatenate([zc, y, zc], axis=1)                    # (H, W+2, C)
    zr = jnp.zeros((1, W + 2, Chid), jnp.float32)
    yp = jnp.concatenate([zr, yp, zr], axis=0)                   # (H+2, W+2, C)

    wdw = wdw_ref[...]                                           # read weights once
    acc = jnp.zeros((H, W, Chid), jnp.float32)
    for dy in range(3):
        for dx in range(3):
            patch = lax.slice(yp, (dy, dx, 0), (dy + H, dx + W, Chid))   # contiguous taps
            acc = acc + patch * wdw[dy:dy + 1, dx:dx + 1, :]
    if stride == 2:
        # single subsample of the stride-1 result (instead of 9 strided slices)
        acc = lax.slice(acc, (0, 0, 0),
                        ((Ho - 1) * 2 + 1, (Wo - 1) * 2 + 1, Chid), (2, 2, 1))

    out = jnp.clip(acc * sdw_ref[...] + bdw_ref[...], 0.0, 6.0)  # folded BN + ReLU6
    y_ref[0] = out

    # 3) CoordAtt pooling fused into the epilogue while the activation is in VMEM.
    xh_ref[0] = jnp.mean(out, axis=1)                            # mean over W -> (Ho, C)
    xw_ref[0] = jnp.mean(out, axis=0)                            # mean over H -> (Wo, C)


def ca_mlp_kernel(xcat_ref, w1_ref, s1_ref, b1_ref, w23_ref, b23_ref, o_ref):
    # CoordAtt MLP: conv1 + folded(bias+BN) + h_swish, then conv2/conv3 (merged as one
    # (mip, 2*hidden) matmul) + bias + sigmoid, all in one call.
    x = xcat_ref[0]                                              # (Ho+Wo, hidden)
    z = jnp.dot(x, w1_ref[...], preferred_element_type=jnp.float32)
    z = z * s1_ref[...] + b1_ref[...]
    z = z * jnp.clip(z + 3.0, 0.0, 6.0) * (1.0 / 6.0)            # h_swish
    a = jnp.dot(z, w23_ref[...], preferred_element_type=jnp.float32) + b23_ref[...]
    o_ref[0] = 1.0 / (1.0 + jnp.exp(-a))                         # sigmoid (EUP)


def att_proj_kernel(y_ref, att_ref, wp_ref, sp_ref, bp_ref, *rest,
                    Ho, Wo, residual):
    # attention apply + 1x1 projection conv + folded BN (+ residual), fused.
    if residual:
        id_ref, o_ref = rest
    else:
        (o_ref,) = rest
    Chid = y_ref.shape[-1]
    Cout = wp_ref.shape[-1]

    att = att_ref[0]                                             # (Ho+Wo, 2*hidden)
    ah = att[:Ho, :Chid]                                         # conv2-path (per row)
    aw = att[Ho:, Chid:]                                         # conv3-path (per col)
    ya = y_ref[0] * ah[:, None, :] * aw[None, :, :]              # identity * a_h * a_w

    z = jnp.dot(ya.reshape(Ho * Wo, Chid), wp_ref[...],
                preferred_element_type=jnp.float32)
    z = z * sp_ref[...] + bp_ref[...]
    out = z.reshape(Ho, Wo, Cout)
    if residual:
        out = out + id_ref[0]
    o_ref[0] = out


# ------------------------------ kernel wrappers -----------------------------

def expand_dw_pool(x, we, se, be, wdw, sdw, bdw, stride):
    N, H, W, Cin = x.shape
    Chid = we.shape[1]
    Ho = (H + 2 - 3) // stride + 1
    Wo = (W + 2 - 3) // stride + 1
    kernel = functools.partial(expand_dw_pool_kernel, stride=stride,
                               H=H, W=W, Ho=Ho, Wo=Wo)
    return pl.pallas_call(
        kernel,
        out_shape=(jax.ShapeDtypeStruct((N, Ho, Wo, Chid), jnp.float32),
                   jax.ShapeDtypeStruct((N, Ho, Chid), jnp.float32),
                   jax.ShapeDtypeStruct((N, Wo, Chid), jnp.float32)),
        grid=(N,),
        in_specs=[
            pl.BlockSpec((1, H, W, Cin), lambda n: (n, 0, 0, 0)),
            pl.BlockSpec((Cin, Chid), lambda n: (0, 0)),
            pl.BlockSpec((1, Chid), lambda n: (0, 0)),
            pl.BlockSpec((1, Chid), lambda n: (0, 0)),
            pl.BlockSpec((3, 3, Chid), lambda n: (0, 0, 0)),
            pl.BlockSpec((1, 1, Chid), lambda n: (0, 0, 0)),
            pl.BlockSpec((1, 1, Chid), lambda n: (0, 0, 0)),
        ],
        out_specs=(pl.BlockSpec((1, Ho, Wo, Chid), lambda n: (n, 0, 0, 0)),
                   pl.BlockSpec((1, Ho, Chid), lambda n: (n, 0, 0)),
                   pl.BlockSpec((1, Wo, Chid), lambda n: (n, 0, 0))),
        compiler_params=_cparams(),
    )(x, we, se.reshape(1, Chid), be.reshape(1, Chid), wdw,
      sdw.reshape(1, 1, Chid), bdw.reshape(1, 1, Chid))


def ca_mlp(xcat, w1, s1, b1, w23, b23):
    N, L, Chid = xcat.shape
    mip = w1.shape[1]
    C2 = w23.shape[1]
    return pl.pallas_call(
        ca_mlp_kernel,
        out_shape=jax.ShapeDtypeStruct((N, L, C2), jnp.float32),
        grid=(N,),
        in_specs=[
            pl.BlockSpec((1, L, Chid), lambda n: (n, 0, 0)),
            pl.BlockSpec((Chid, mip), lambda n: (0, 0)),
            pl.BlockSpec((1, mip), lambda n: (0, 0)),
            pl.BlockSpec((1, mip), lambda n: (0, 0)),
            pl.BlockSpec((mip, C2), lambda n: (0, 0)),
            pl.BlockSpec((1, C2), lambda n: (0, 0)),
        ],
        out_specs=pl.BlockSpec((1, L, C2), lambda n: (n, 0, 0)),
        compiler_params=_cparams(),
    )(xcat, w1, s1.reshape(1, mip), b1.reshape(1, mip), w23, b23.reshape(1, C2))


def att_proj(y, att, wp, sp, bp, identity=None):
    N, Ho, Wo, Chid = y.shape
    Cout = wp.shape[1]
    L, C2 = att.shape[1], att.shape[2]
    in_specs = [
        pl.BlockSpec((1, Ho, Wo, Chid), lambda n: (n, 0, 0, 0)),
        pl.BlockSpec((1, L, C2), lambda n: (n, 0, 0)),
        pl.BlockSpec((Chid, Cout), lambda n: (0, 0)),
        pl.BlockSpec((1, Cout), lambda n: (0, 0)),
        pl.BlockSpec((1, Cout), lambda n: (0, 0)),
    ]
    args = [y, att, wp, sp.reshape(1, Cout), bp.reshape(1, Cout)]
    residual = identity is not None
    if residual:
        in_specs.append(pl.BlockSpec((1, Ho, Wo, Cout), lambda n: (n, 0, 0, 0)))
        args.append(identity)
    kernel = functools.partial(att_proj_kernel, Ho=Ho, Wo=Wo, residual=residual)
    return pl.pallas_call(
        kernel,
        out_shape=jax.ShapeDtypeStruct((N, Ho, Wo, Cout), jnp.float32),
        grid=(N,),
        in_specs=in_specs,
        out_specs=pl.BlockSpec((1, Ho, Wo, Cout), lambda n: (n, 0, 0, 0)),
        compiler_params=_cparams(),
    )(*args)


# ------------------------------ forward pass --------------------------------

def bn_fold(gamma, beta, mean, var, conv_bias=None):
    scale = gamma / jnp.sqrt(var + EPS)
    bias = beta - mean * scale
    if conv_bias is not None:
        bias = bias + conv_bias * scale
    return scale, bias


def inverted_residual_forward(x_nchw, p, stride):
    x = jnp.transpose(x_nchw, (0, 2, 3, 1)).astype(jnp.float32)   # NCHW -> NHWC
    N, H, W, Cin = x.shape
    hidden = p["w_expand"].shape[1]
    oup = p["w_proj"].shape[1]

    # K1: expand 1x1 (+BN+ReLU6) -> depthwise 3x3 (+BN+ReLU6) -> CoordAtt pooling
    s_e, b_e = bn_fold(*p["bn_expand"])
    s_d, b_d = bn_fold(*p["bn_dw"])
    y, xh, xw = expand_dw_pool(x, p["w_expand"], s_e, b_e, p["w_dw"], s_d, b_d, stride)
    _, Ho, Wo, _ = y.shape

    # K2: CoordAtt MLP — conv1+bn+hswish, then conv2/conv3 merged + sigmoid
    ycat = jnp.concatenate([xh, xw], axis=1)                      # (N, Ho+Wo, hidden)
    s1, b1 = bn_fold(*p["bn_ca1"], conv_bias=p["b_ca1"])
    w23 = jnp.concatenate([p["w_ca2"], p["w_ca3"]], axis=1)       # (mip, 2*hidden)
    b23 = jnp.concatenate([p["b_ca2"], p["b_ca3"]], axis=0)       # (2*hidden,)
    att = ca_mlp(ycat, p["w_ca1"], s1, b1, w23, b23)              # (N, Ho+Wo, 2*hidden)

    # K3: attention apply + 1x1 projection (+BN) (+ residual when applicable)
    s_p, b_p = bn_fold(*p["bn_proj"])
    identity = x if (stride == 1 and Cin == oup) else None
    out = att_proj(y, att, p["w_proj"], s_p, b_p, identity=identity)
    return jnp.transpose(out, (0, 3, 1, 2))                       # back to NCHW


# --------------------------- deterministic params ---------------------------

def make_params(key, inp, oup, expand_ratio):
    hidden = round(inp * expand_ratio)
    mip = max(8, hidden // 32)
    ks = jax.random.split(key, 13)

    def nrm(k, shape, s=0.1):
        return s * jax.random.normal(k, shape, jnp.float32)

    def bn(k, c):
        k1, k2, k3, k4 = jax.random.split(k, 4)
        gamma = 1.0 + 0.1 * jax.random.normal(k1, (c,), dtype=jnp.float32)
        beta = 0.1 * jax.random.normal(k2, (c,), dtype=jnp.float32)
        mean = 0.1 * jax.random.normal(k3, (c,), dtype=jnp.float32)
        var = 1.0 + 0.1 * jax.random.uniform(k4, (c,), dtype=jnp.float32)
        return gamma, beta, mean, var

    return dict(
        w_expand=nrm(ks[0], (inp, hidden)),      # 1x1 conv, bias=False
        bn_expand=bn(ks[1], hidden),
        w_dw=nrm(ks[2], (3, 3, hidden)),         # depthwise 3x3, bias=False
        bn_dw=bn(ks[3], hidden),
        w_ca1=nrm(ks[4], (hidden, mip)),         # CoordAtt conv1 (bias=True)
        b_ca1=nrm(ks[5], (mip,)),
        bn_ca1=bn(ks[6], mip),
        w_ca2=nrm(ks[7], (mip, hidden)),         # CoordAtt conv2 (bias=True)
        b_ca2=nrm(ks[8], (hidden,)),
        w_ca3=nrm(ks[9], (mip, hidden)),         # CoordAtt conv3 (bias=True)
        b_ca3=nrm(ks[10], (hidden,)),
        w_proj=nrm(ks[11], (hidden, oup)),       # 1x1 conv, bias=False
        bn_proj=bn(ks[12], oup),
    )


# ------------------------------ pure-JAX reference ---------------------------

def reference_forward(x_nchw, p, stride):
    x = jnp.transpose(x_nchw, (0, 2, 3, 1)).astype(jnp.float32)
    N, H, W, Cin = x.shape
    hidden = p["w_expand"].shape[1]
    oup = p["w_proj"].shape[1]

    def bnf(bnp, cb=None):
        g, bt, m, v = bnp
        s = g / jnp.sqrt(v + EPS)
        b = bt - m * s
        if cb is not None:
            b = b + cb * s
        return s, b

    s, b = bnf(p["bn_expand"])
    y = jnp.clip(jnp.einsum("nhwc,cd->nhwd", x, p["w_expand"]) * s + b, 0.0, 6.0)

    s, b = bnf(p["bn_dw"])
    kern = p["w_dw"].reshape(3, 3, 1, hidden)
    # explicit ((1,1),(1,1)) padding to match PyTorch Conv2d(padding=1) for stride 1 and 2
    y = lax.conv_general_dilated(y, kern, (stride, stride), ((1, 1), (1, 1)),
                                 dimension_numbers=("NHWC", "HWIO", "NHWC"),
                                 feature_group_count=hidden)
    y = jnp.clip(y * s + b, 0.0, 6.0)

    Ho, Wo = y.shape[1], y.shape[2]
    xh = jnp.mean(y, axis=2)
    xw = jnp.mean(y, axis=1)
    ycat = jnp.concatenate([xh, xw], axis=1)
    s, b = bnf(p["bn_ca1"], p["b_ca1"])
    z = jnp.einsum("nlc,cd->nld", ycat, p["w_ca1"]) * s + b
    z = z * jnp.clip(z + 3.0, 0.0, 6.0) / 6.0
    yh, yw = z[:, :Ho], z[:, Ho:]
    ah = jax.nn.sigmoid(jnp.einsum("nlc,cd->nld", yh, p["w_ca2"]) + p["b_ca2"])
    aw = jax.nn.sigmoid(jnp.einsum("nlc,cd->nld", yw, p["w_ca3"]) + p["b_ca3"])
    y = y * ah[:, :, None, :] * aw[:, None, :, :]

    s, b = bnf(p["bn_proj"])
    out = jnp.einsum("nhwc,cd->nhwd", y, p["w_proj"]) * s + b
    if stride == 1 and Cin == oup:
        out = out + x
    return jnp.transpose(out, (0, 3, 1, 2))


# ----------------------------------- main ------------------------------------

if __name__ == "__main__":
    N, H, W = 2, 16, 16
    key = jax.random.PRNGKey(0)
    kx, kp1, kp2 = jax.random.split(key, 3)

    # Config A: InvertedResidual(16, 16, stride=1, expand_ratio=2) -> identity path
    inp, oup, stride, er = 16, 16, 1, 2
    x = jax.random.normal(kx, (N, inp, H, W), dtype=jnp.float32)   # NCHW like PyTorch
    params = make_params(kp1, inp, oup, er)
    out = jax.block_until_ready(inverted_residual_forward(x, params, stride))
    ref = reference_forward(x, params, stride)
    assert out.shape == (N, oup, H, W), out.shape
    assert bool(jnp.all(jnp.isfinite(out)))
    assert bool(jnp.allclose(out, ref, atol=1e-4, rtol=1e-4)), \
        float(jnp.max(jnp.abs(out - ref)))

    # Config B: InvertedResidual(16, 24, stride=2, expand_ratio=2) -> no identity
    inp2, oup2, stride2 = 16, 24, 2
    params2 = make_params(kp2, inp2, oup2, er)
    out2 = jax.block_until_ready(inverted_residual_forward(x, params2, stride2))
    ref2 = reference_forward(x, params2, stride2)
    assert out2.shape == (N, oup2, H // 2, W // 2), out2.shape
    assert bool(jnp.all(jnp.isfinite(out2)))
    assert bool(jnp.allclose(out2, ref2, atol=1e-4, rtol=1e-4)), \
        float(jnp.max(jnp.abs(out2 - ref2)))

    print("KERNEL_OK")
</pallas_src>

<mosaic_0001>
module attributes {stable_mosaic.version = 11 : i64} {
  func.func @expand_dw_pool_kernel(%arg0: i32, %arg1: memref<1x16x16x16xf32, #tpu.memory_space<vmem>>, %arg2: memref<16x32xf32, #tpu.memory_space<vmem>>, %arg3: memref<1x32xf32, #tpu.memory_space<vmem>>, %arg4: memref<1x32xf32, #tpu.memory_space<vmem>>, %arg5: memref<3x3x32xf32, #tpu.memory_space<vmem>>, %arg6: memref<1x1x32xf32, #tpu.memory_space<vmem>>, %arg7: memref<1x1x32xf32, #tpu.memory_space<vmem>>, %arg8: memref<1x16x16x32xf32, #tpu.memory_space<vmem>>, %arg9: memref<1x16x32xf32, #tpu.memory_space<vmem>>, %arg10: memref<1x16x32xf32, #tpu.memory_space<vmem>>) attributes {dimension_semantics = [#tpu.dimension_semantics<parallel>], iteration_bounds = array<i64: 2>, scalar_prefetch = 0 : i64, scratch_operands = 0 : i64, tpu.core_type = #tpu.core_type<tc>, window_params = [{transform_indices = @transform_0, window_bounds = array<i64: 1, 16, 16, 16>}, {pipeline_mode = #tpu.pipeline_mode<synchronous>, transform_indices = @transform_1, window_bounds = array<i64: 16, 32>}, {pipeline_mode = #tpu.pipeline_mode<synchronous>, transform_indices = @transform_2, window_bounds = array<i64: 1, 32>}, {pipeline_mode = #tpu.pipeline_mode<synchronous>, transform_indices = @transform_3, window_bounds = array<i64: 1, 32>}, {pipeline_mode = #tpu.pipeline_mode<synchronous>, transform_indices = @transform_4, window_bounds = array<i64: 3, 3, 32>}, {pipeline_mode = #tpu.pipeline_mode<synchronous>, transform_indices = @transform_5, window_bounds = array<i64: 1, 1, 32>}, {pipeline_mode = #tpu.pipeline_mode<synchronous>, transform_indices = @transform_6, window_bounds = array<i64: 1, 1, 32>}, {transform_indices = @transform_7, window_bounds = array<i64: 1, 16, 16, 32>}, {transform_indices = @transform_8, window_bounds = array<i64: 1, 16, 32>}, {transform_indices = @transform_9, window_bounds = array<i64: 1, 16, 32>}]} {
    %c0 = arith.constant 0 : index
    %c0_0 = arith.constant 0 : index
    %c0_1 = arith.constant 0 : index
    %c0_2 = arith.constant 0 : index
    %0 = vector.load %arg1[%c0, %c0_0, %c0_1, %c0_2] : memref<1x16x16x16xf32, #tpu.memory_space<vmem>>, vector<1x16x16x16xf32>
    %1 = vector.shape_cast %0 : vector<1x16x16x16xf32> to vector<16x16x16xf32>
    %2 = vector.shape_cast %1 : vector<16x16x16xf32> to vector<256x16xf32>
    %c0_3 = arith.constant 0 : index
    %c0_4 = arith.constant 0 : index
    %3 = vector.load %arg2[%c0_3, %c0_4] : memref<16x32xf32, #tpu.memory_space<vmem>>, vector<16x32xf32>
    %cst = arith.constant dense<0.000000e+00> : vector<256x32xf32>
    %4 = tpu.matmul %2, %3, %cst {dimension_numbers = #tpu.dot_dimension_numbers<[1], [0], [0], [1], [0, 0, 1, 1], [], []>} : vector<256x16xf32>, vector<16x32xf32>, vector<256x32xf32> -> vector<256x32xf32>
    %c0_5 = arith.constant 0 : index
    %c0_6 = arith.constant 0 : index
    %5 = vector.load %arg3[%c0_5, %c0_6] : memref<1x32xf32, #tpu.memory_space<vmem>>, vector<1x32xf32>
    %6 = vector.broadcast %5 : vector<1x32xf32> to vector<256x32xf32>
    %7 = arith.mulf %4, %6 : vector<256x32xf32>
    %c0_7 = arith.constant 0 : index
    %c0_8 = arith.constant 0 : index
    %8 = vector.load %arg4[%c0_7, %c0_8] : memref<1x32xf32, #tpu.memory_space<vmem>>, vector<1x32xf32>
    %9 = vector.broadcast %8 : vector<1x32xf32> to vector<256x32xf32>
    %10 = arith.addf %7, %9 : vector<256x32xf32>
    %cst_9 = arith.constant 0.000000e+00 : f32
    %cst_10 = arith.constant 6.000000e+00 : f32
    %11 = vector.broadcast %cst_9 : f32 to vector<256x32xf32>
    %12 = arith.maximumf %11, %10 : vector<256x32xf32>
    %13 = vector.broadcast %cst_10 : f32 to vector<256x32xf32>
    %14 = arith.minimumf %13, %12 : vector<256x32xf32>
    %15 = vector.shape_cast %14 : vector<256x32xf32> to vector<16x16x32xf32>
    %cst_11 = arith.constant 0.000000e+00 : f32
    %16 = vector.broadcast %cst_11 : f32 to vector<16x1x32xf32>
    %17 = tpu.concatenate %16, %15, %16 in 1 : vector<16x1x32xf32>, vector<16x16x32xf32>, vector<16x1x32xf32> -> vector<16x18x32xf32>
    %cst_12 = arith.constant 0.000000e+00 : f32
    %18 = vector.broadcast %cst_12 : f32 to vector<1x18x32xf32>
    %19 = tpu.concatenate %18, %17, %18 in 0 : vector<1x18x32xf32>, vector<16x18x32xf32>, vector<1x18x32xf32> -> vector<18x18x32xf32>
    %c0_13 = arith.constant 0 : index
    %c0_14 = arith.constant 0 : index
    %c0_15 = arith.constant 0 : index
    %20 = vector.load %arg5[%c0_13, %c0_14, %c0_15] : memref<3x3x32xf32, #tpu.memory_space<vmem>>, vector<3x3x32xf32>
    %cst_16 = arith.constant 0.000000e+00 : f32
    %21 = vector.broadcast %cst_16 : f32 to vector<16x16x32xf32>
    %22 = vector.extract_strided_slice %19 {offsets = [0, 0, 0], sizes = [16, 16, 32], strides = [1, 1, 1]} : vector<18x18x32xf32> to vector<16x16x32xf32>
    %23 = vector.extract_strided_slice %20 {offsets = [0, 0, 0], sizes = [1, 1, 32], strides = [1, 1, 1]} : vector<3x3x32xf32> to vector<1x1x32xf32>
    %24 = vector.broadcast %23 : vector<1x1x32xf32> to vector<16x16x32xf32>
    %25 = arith.mulf %22, %24 : vector<16x16x32xf32>
    %26 = arith.addf %21, %25 : vector<16x16x32xf32>
    %27 = vector.extract_strided_slice %19 {offsets = [0, 1, 0], sizes = [16, 16, 32], strides = [1, 1, 1]} : vector<18x18x32xf32> to vector<16x16x32xf32>
    %28 = vector.extract_strided_slice %20 {offsets = [0, 1, 0], sizes = [1, 1, 32], strides = [1, 1, 1]} : vector<3x3x32xf32> to vector<1x1x32xf32>
    %29 = vector.broadcast %28 : vector<1x1x32xf32> to vector<16x16x32xf32>
    %30 = arith.mulf %27, %29 : vector<16x16x32xf32>
    %31 = arith.addf %26, %30 : vector<16x16x32xf32>
    %32 = vector.extract_strided_slice %19 {offsets = [0, 2, 0], sizes = [16, 16, 32], strides = [1, 1, 1]} : vector<18x18x32xf32> to vector<16x16x32xf32>
    %33 = vector.extract_strided_slice %20 {offsets = [0, 2, 0], sizes = [1, 1, 32], strides = [1, 1, 1]} : vector<3x3x32xf32> to vector<1x1x32xf32>
    %34 = vector.broadcast %33 : vector<1x1x32xf32> to vector<16x16x32xf32>
    %35 = arith.mulf %32, %34 : vector<16x16x32xf32>
    %36 = arith.addf %31, %35 : vector<16x16x32xf32>
    %37 = vector.extract_strided_slice %19 {offsets = [1, 0, 0], sizes = [16, 16, 32], strides = [1, 1, 1]} : vector<18x18x32xf32> to vector<16x16x32xf32>
    %38 = vector.extract_strided_slice %20 {offsets = [1, 0, 0], sizes = [1, 1, 32], strides = [1, 1, 1]} : vector<3x3x32xf32> to vector<1x1x32xf32>
    %39 = vector.broadcast %38 : vector<1x1x32xf32> to vector<16x16x32xf32>
    %40 = arith.mulf %37, %39 : vector<16x16x32xf32>
    %41 = arith.addf %36, %40 : vector<16x16x32xf32>
    %42 = vector.extract_strided_slice %19 {offsets = [1, 1, 0], sizes = [16, 16, 32], strides = [1, 1, 1]} : vector<18x18x32xf32> to vector<16x16x32xf32>
    %43 = vector.extract_strided_slice %20 {offsets = [1, 1, 0], sizes = [1, 1, 32], strides = [1, 1, 1]} : vector<3x3x32xf32> to vector<1x1x32xf32>
    %44 = vector.broadcast %43 : vector<1x1x32xf32> to vector<16x16x32xf32>
    %45 = arith.mulf %42, %44 : vector<16x16x32xf32>
    %46 = arith.addf %41, %45 : vector<16x16x32xf32>
    %47 = vector.extract_strided_slice %19 {offsets = [1, 2, 0], sizes = [16, 16, 32], strides = [1, 1, 1]} : vector<18x18x32xf32> to vector<16x16x32xf32>
    %48 = vector.extract_strided_slice %20 {offsets = [1, 2, 0], sizes = [1, 1, 32], strides = [1, 1, 1]} : vector<3x3x32xf32> to vector<1x1x32xf32>
    %49 = vector.broadcast %48 : vector<1x1x32xf32> to vector<16x16x32xf32>
    %50 = arith.mulf %47, %49 : vector<16x16x32xf32>
    %51 = arith.addf %46, %50 : vector<16x16x32xf32>
    %52 = vector.extract_strided_slice %19 {offsets = [2, 0, 0], sizes = [16, 16, 32], strides = [1, 1, 1]} : vector<18x18x32xf32> to vector<16x16x32xf32>
    %53 = vector.extract_strided_slice %20 {offsets = [2, 0, 0], sizes = [1, 1, 32], strides = [1, 1, 1]} : vector<3x3x32xf32> to vector<1x1x32xf32>
    %54 = vector.broadcast %53 : vector<1x1x32xf32> to vector<16x16x32xf32>
    %55 = arith.mulf %52, %54 : vector<16x16x32xf32>
    %56 = arith.addf %51, %55 : vector<16x16x32xf32>
    %57 = vector.extract_strided_slice %19 {offsets = [2, 1, 0], sizes = [16, 16, 32], strides = [1, 1, 1]} : vector<18x18x32xf32> to vector<16x16x32xf32>
    %58 = vector.extract_strided_slice %20 {offsets = [2, 1, 0], sizes = [1, 1, 32], strides = [1, 1, 1]} : vector<3x3x32xf32> to vector<1x1x32xf32>
    %59 = vector.broadcast %58 : vector<1x1x32xf32> to vector<16x16x32xf32>
    %60 = arith.mulf %57, %59 : vector<16x16x32xf32>
    %61 = arith.addf %56, %60 : vector<16x16x32xf32>
    %62 = vector.extract_strided_slice %19 {offsets = [2, 2, 0], sizes = [16, 16, 32], strides = [1, 1, 1]} : vector<18x18x32xf32> to vector<16x16x32xf32>
    %63 = vector.extract_strided_slice %20 {offsets = [2, 2, 0], sizes = [1, 1, 32], strides = [1, 1, 1]} : vector<3x3x32xf32> to vector<1x1x32xf32>
    %64 = vector.broadcast %63 : vector<1x1x32xf32> to vector<16x16x32xf32>
    %65 = arith.mulf %62, %64 : vector<16x16x32xf32>
    %66 = arith.addf %61, %65 : vector<16x16x32xf32>
    %c0_17 = arith.constant 0 : index
    %c0_18 = arith.constant 0 : index
    %c0_19 = arith.constant 0 : index
    %67 = vector.load %arg6[%c0_17, %c0_18, %c0_19] : memref<1x1x32xf32, #tpu.memory_space<vmem>>, vector<1x1x32xf32>
    %68 = vector.broadcast %67 : vector<1x1x32xf32> to vector<16x16x32xf32>
    %69 = arith.mulf %66, %68 : vector<16x16x32xf32>
    %c0_20 = arith.constant 0 : index
    %c0_21 = arith.constant 0 : index
    %c0_22 = arith.constant 0 : index
    %70 = vector.load %arg7[%c0_20, %c0_21, %c0_22] : memref<1x1x32xf32, #tpu.memory_space<vmem>>, vector<1x1x32xf32>
    %71 = vector.broadcast %70 : vector<1x1x32xf32> to vector<16x16x32xf32>
    %72 = arith.addf %69, %71 : vector<16x16x32xf32>
    %cst_23 = arith.constant 0.000000e+00 : f32
    %cst_24 = arith.constant 6.000000e+00 : f32
    %73 = vector.broadcast %cst_23 : f32 to vector<16x16x32xf32>
    %74 = arith.maximumf %73, %72 : vector<16x16x32xf32>
    %75 = vector.broadcast %cst_24 : f32 to vector<16x16x32xf32>
    %76 = arith.minimumf %75, %74 : vector<16x16x32xf32>
    %c0_25 = arith.constant 0 : index
    %c0_26 = arith.constant 0 : index
    %c0_27 = arith.constant 0 : index
    %c0_28 = arith.constant 0 : index
    %77 = vector.load %arg8[%c0_25, %c0_26, %c0_27, %c0_28] : memref<1x16x16x32xf32, #tpu.memory_space<vmem>>, vector<1x16x16x32xf32>
    %78 = vector.shape_cast %77 : vector<1x16x16x32xf32> to vector<16x16x32xf32>
    %79 = vector.shape_cast %76 : vector<16x16x32xf32> to vector<1x16x16x32xf32>
    tpu.vector_store %arg8[%c0_25, %c0_26, %c0_27, %c0_28], %79 {strides = array<i32>} : memref<1x16x16x32xf32, #tpu.memory_space<vmem>>, vector<1x16x16x32xf32>,
    %cst_29 = arith.constant dense<0.000000e+00> : vector<16x32xf32>
    %80 = vector.multi_reduction <add>, %76, %cst_29 [1] : vector<16x16x32xf32> to vector<16x32xf32>
    %cst_30 = arith.constant 1.600000e+01 : f32
    %81 = vector.broadcast %cst_30 : f32 to vector<16x32xf32>
    %82 = arith.divf %80, %81 : vector<16x32xf32>
    %c0_31 = arith.constant 0 : index
    %c0_32 = arith.constant 0 : index
    %c0_33 = arith.constant 0 : index
    %83 = vector.load %arg9[%c0_31, %c0_32, %c0_33] : memref<1x16x32xf32, #tpu.memory_space<vmem>>, vector<1x16x32xf32>
    %84 = vector.shape_cast %83 : vector<1x16x32xf32> to vector<16x32xf32>
    %85 = vector.shape_cast %82 : vector<16x32xf32> to vector<1x16x32xf32>
    tpu.vector_store %arg9[%c0_31, %c0_32, %c0_33], %85 {strides = array<i32>} : memref<1x16x32xf32, #tpu.memory_space<vmem>>, vector<1x16x32xf32>,
    %cst_34 = arith.constant dense<0.000000e+00> : vector<16x32xf32>
    %86 = vector.multi_reduction <add>, %76, %cst_34 [0] : vector<16x16x32xf32> to vector<16x32xf32>
    %cst_35 = arith.constant 1.600000e+01 : f32
    %87 = vector.broadcast %cst_35 : f32 to vector<16x32xf32>
    %88 = arith.divf %86, %87 : vector<16x32xf32>
    %c0_36 = arith.constant 0 : index
    %c0_37 = arith.constant 0 : index
    %c0_38 = arith.constant 0 : index
    %89 = vector.load %arg10[%c0_36, %c0_37, %c0_38] : memref<1x16x32xf32, #tpu.memory_space<vmem>>, vector<1x16x32xf32>
    %90 = vector.shape_cast %89 : vector<1x16x32xf32> to vector<16x32xf32>
    %91 = vector.shape_cast %88 : vector<16x32xf32> to vector<1x16x32xf32>
    tpu.vector_store %arg10[%c0_36, %c0_37, %c0_38], %91 {strides = array<i32>} : memref<1x16x32xf32, #tpu.memory_space<vmem>>, vector<1x16x32xf32>,
    return
  }
  func.func @transform_0(%arg0: i32) -> (i32, i32, i32, i32) {
    %c0_i32 = arith.constant 0 : i32
    %c0_i32_0 = arith.constant 0 : i32
    %c0_i32_1 = arith.constant 0 : i32
    %c0_i32_2 = arith.constant 0 : i32
    return %arg0, %c0_i32, %c0_i32_0, %c0_i32_1 : i32, i32, i32, i32
  }
  func.func @transform_1(%arg0: i32) -> (i32, i32) {
    %c0_i32 = arith.constant 0 : i32
    %c0_i32_0 = arith.constant 0 : i32
    %c0_i32_1 = arith.constant 0 : i32
    return %c0_i32, %c0_i32_0 : i32, i32
  }
  func.func @transform_2(%arg0: i32) -> (i32, i32) {
    %c0_i32 = arith.constant 0 : i32
    %c0_i32_0 = arith.constant 0 : i32
    %c0_i32_1 = arith.constant 0 : i32
    return %c0_i32, %c0_i32_0 : i32, i32
  }
  func.func @transform_3(%arg0: i32) -> (i32, i32) {
    %c0_i32 = arith.constant 0 : i32
    %c0_i32_0 = arith.constant 0 : i32
    %c0_i32_1 = arith.constant 0 : i32
    return %c0_i32, %c0_i32_0 : i32, i32
  }
  func.func @transform_4(%arg0: i32) -> (i32, i32, i32) {
    %c0_i32 = arith.constant 0 : i32
    %c0_i32_0 = arith.constant 0 : i32
    %c0_i32_1 = arith.constant 0 : i32
    %c0_i32_2 = arith.constant 0 : i32
    return %c0_i32, %c0_i32_0, %c0_i32_1 : i32, i32, i32
  }
  func.func @transform_5(%arg0: i32) -> (i32, i32, i32) {
    %c0_i32 = arith.constant 0 : i32
    %c0_i32_0 = arith.constant 0 : i32
    %c0_i32_1 = arith.constant 0 : i32
    %c0_i32_2 = arith.constant 0 : i32
    return %c0_i32, %c0_i32_0, %c0_i32_1 : i32, i32, i32
  }
  func.func @transform_6(%arg0: i32) -> (i32, i32, i32) {
    %c0_i32 = arith.constant 0 : i32
    %c0_i32_0 = arith.constant 0 : i32
    %c0_i32_1 = arith.constant 0 : i32
    %c0_i32_2 = arith.constant 0 : i32
    return %c0_i32, %c0_i32_0, %c0_i32_1 : i32, i32, i32
  }
  func.func @transform_7(%arg0: i32) -> (i32, i32, i32, i32) {
    %c0_i32 = arith.constant 0 : i32
    %c0_i32_0 = arith.constant 0 : i32
    %c0_i32_1 = arith.constant 0 : i32
    %c0_i32_2 = arith.constant 0 : i32
    return %arg0, %c0_i32, %c0_i32_0, %c0_i32_1 : i32, i32, i32, i32
  }
  func.func @transform_8(%arg0: i32) -> (i32, i32, i32) {
    %c0_i32 = arith.constant 0 : i32
    %c0_i32_0 = arith.constant 0 : i32
    %c0_i32_1 = arith.constant 0 : i32
    return %arg0, %c0_i32, %c0_i32_0 : i32, i32, i32
  }
  func.func @transform_9(%arg0: i32) -> (i32, i32, i32) {
    %c0_i32 = arith.constant 0 : i32
    %c0_i32_0 = arith.constant 0 : i32
    %c0_i32_1 = arith.constant 0 : i32
    return %arg0, %c0_i32, %c0_i32_0 : i32, i32, i32
  }
}

</mosaic_0001>

<bundles_post_ra>
// kernel: tpu_custom_call.1
= control target key start
LH: loop header
LB: loop body
LE: loop exit
PB: predicated region body
PF: predicated region fallthrough
CT: control target
= control target key end

     0   :  { %15 = vsyncpa [#allocation3], 0  ;;  %s6415_s0 = inlined_call_operand.hbm [shape: f32[2,16,16,16], index: 0, kind: input, shape index: {}]   ;;  %s6416_s1 = inlined_call_operand.hbm [shape: f32[16,32], index: 1, kind: input, shape index: {}]   ;;  %s6417_s2 = inlined_call_operand.vmem [shape: f32[1,32], index: 2, kind: input, shape index: {}]   ;;  %s6418_s3 = inlined_call_operand.vmem [shape: f32[1,32], index: 3, kind: input, shape index: {}]   ;;  %s6419_s4 = inlined_call_operand.vmem [shape: f32[3,3,32], index: 4, kind: input, shape index: {}]   ;;  %s6420_s5 = inlined_call_operand.vmem [shape: f32[1,1,32], index: 5, kind: input, shape index: {}]   ;;  %s6421_s6 = inlined_call_operand.vmem [shape: f32[1,1,32], index: 6, kind: input, shape index: {}]   ;;  %s6422_s7 = inlined_call_operand.hbm [shape: f32[2,16,16,32], index: 7, kind: output, shape index: {0}]   ;;  %s6423_s8 = inlined_call_operand.hbm [shape: f32[2,16,32], index: 8, kind: output, shape index: {1}]   ;;  %s6424_s9 = inlined_call_operand.hbm [shape: f32[2,16,32], index: 9, kind: output, shape index: {2}]  }
   0x1   :  { %17 = vsyncpa [#allocation3 + $0x1], 0 }
   0x2   :  { %18 = vsyncpa [#allocation6], 0 }
   0x3   :  { %19 = vsyncpa [#allocation4], 0 }
   0x4   :  { %21 = vsyncpa [#allocation4 + $0x1], 0 }
   0x5   :  { %22 = vsyncpa [#allocation9], 0 }
   0x6   :  { %24 = vsyncpa [#allocation9 + $0x1], 0  ;;  %s3774_s30 = smov 0   ;;  %s3776_s10 = smov 0  }
   0x7   :  { %s3778_s11 = smov 0   ;;  %s3780_s12 = smov 0  }
   0x8 LB: > { %s3795_s13 = sadd.s32 4294967295, %s3713_s12   ;;  %s6425_s14 = sadd.s32 4294967294, %s3713_s12   ;;  %s3713_s12 = sphi %s3780_s12, %s6710_s12   ;;  %s3709_s11 = sphi %s3778_s11, %s6713_s11   ;;  %s3705_s10 = sphi %s3776_s10, %s6712_s10   ;;  %s3701_s30 = sphi %s3774_s30, %s6711_s30  }
   0x9   : > { %p50_p0 = scmp.ne.s32.totalorder %s3705_s10, %s3701_s30  ;;  %p6426_p1 = scmp.eq.s32.totalorder %s3795_s13, 0 }
   0xa   : > { %p206_p3 = scmp.eq.s32.totalorder %s6425_s14, 1  ;;  %p3291_p5 = scmp.ge.s32.totalorder %s3713_s12, 1 }
   0xb   : > { %p3806_p4 = por %p6426_p1, %p50_p0  ;;  %p265_p7 = scmp.lt.s32.totalorder %s3713_s12, 3 }
   0xc   : > { %p3811_p6 = por %p206_p3, %p50_p0  ;;  %s3715_s18 = smov [#allocation5]  }
   0xd   : > { %s6464_s15 = scalar_select %p3806_p4, 1, 0 }
   0xe   : > { %s6465_s16 = scalar_select %p3811_p6, 1, 0 }
   0xf   : > { %p3816_p8 = pnand %p3291_p5, %p265_p7  ;;  %s277_s19 = sshll.u32 %s3715_s18, 4  ;;  %s3820_s19 = int_to_ptr.vmem [resolvable:$true] %s277_s19 }
  0x10   : > { %6466 = sst [smem:[#allocation15_spill]] %s6465_s16  ;;  %s3832_s21 = sadd.s32 1, %s3713_s12  }
  0x11   : > { %s6467_s17 = scalar_select %p3816_p8, 1, 0 }
  0x12   : > { %p3458_p9 = pneg %p3816_p8  ;;  %6469 = sst [smem:[#allocation16_spill]] %s3832_s21 }
  0x13   : > { %s37_s22 = sadd.s32 1, %s3709_s11  ;;  %s34_s23 = ssub.s32 %s3713_s12, %s3832_s21 }
  0x14   : > { %p3827_p11 = pnand %p3458_p9, %p6426_p1  ;;  %s3525_s26 = scalar_lea.hbm %s6416_s1, 256 }
  0x15   : > { %p3526_p12 = scmp.ne.s32.totalorder %s6416_s1, %s3525_s26  ;;  %p3532_p5 = scmp.lt.u32.totalorder %s3525_s26, %s6416_s1 }
  0x16   : > { %p3527_p13 = pneg %p3827_p11 }
  0x18   : > { %p3528_p0 = pnand %p3527_p13, %p3526_p12 }
  0x1a   : > { %p3529_p3 = pneg %p3528_p0 }
  0x1c   : > { %p3534_p7 = pnand %p3532_p5, %p3529_p3 }
  0x1e   : > { %3537 = shalt.err (!%p3534_p7)
}
  0x1f   : > { %s3538_s14 = scalar_lea.vmem %s3820_s19, 256  ;;  %p3546_p2 = scmp.lt.s32.totalorder %s3820_s19, %s3820_s19 }
  0x20   : > { %p3539_p9 = scmp.ne.s32.totalorder %s3820_s19, %s3538_s14  ;;  %p3547_p6 = scmp.lt.s32.totalorder %s3538_s14, %s3538_s14 }
  0x22   : > { %p3541_p10 = pnand %p3539_p9, %p3527_p13  ;;  %p3548_p4 = por %p3547_p6, %p3546_p2 }
  0x24   : > { %p3542_p1 = pneg %p3541_p10 }
  0x26   : > { %p3549_p8 = pnand %p3548_p4, %p3542_p1 }
  0x28   : > { %3552 = shalt.err (!%p3549_p8)
}
  0x29   : > { %s6432_s24 = smov 128   ;;  %s3717_s25 = smov 8  }
  0x2a   : > { %3461 = dma.hbm_to_vmem [thread:$0]  (!%p3827_p11), %s6416_s1, 256, %s3820_s19, [#allocation6], %s6432_s24, %s6432_s24, %s3717_s25  }
  0x2b   : > { %p35_p1 = scmp.eq.s32.totalorder %s34_s23, 0  ;;  %p44_p2 = scmp.ne.s32.totalorder %s3709_s11, %s3705_s10 }
  0x2c   : > { %p45_p4 = scmp.eq.s32.totalorder %s3713_s12, 0  ;;  %p3477_p6 = scmp.lt.s32.totalorder %s3713_s12, 2 }
  0x2d   : > { %s3866_s27 = scalar_select %p35_p1, %s3709_s11, %s37_s22  }
  0x2e   : > { %p46_p8 = por %p45_p4, %p44_p2  ;;  %p6470_p10 = scmp.eq.s32.totalorder %s3795_s13, 1 }
  0x2f   : > { %s306_s20 = sand.u32 1, %s3709_s11   ;;  %s3350_s29 = sshll.u32 %s3713_s12, 12 }
  0x30   : > { %p3870_p12 = por %p6470_p10, %p44_p2  ;;  %s3294_s18 = sshll.u32 %s306_s20, 8 }
  0x31   : > { %s3879_s14 = scalar_lea.hbm %s6415_s0, %s3350_s29  ;;  %s310_s19 = scalar_lea.vmem [#allocation2], %s3294_s18 }
  0x32   : > { %s317_s22 = sshll.u32 %s310_s19, 4  ;;  %p3881_p11 = pnand %p3477_p6, %p46_p8  ;;  %s3885_s22 = int_to_ptr.vmem [resolvable:$true] %s317_s22 }
  0x33   : > { %s3887_s26 = scalar_lea.sflag [#allocation3], %s306_s20  ;;  %s3553_s24 = scalar_lea.hbm %s3879_s14, 4096 }
  0x34   : > { %p3554_p13 = scmp.ne.s32.totalorder %s3879_s14, %s3553_s24  ;;  %p3555_p0 = pneg %p3881_p11 }
  0x35   : > { %s3558_s29 = scalar_lea.hbm %s6415_s0, 8192  ;;  %p3559_p7 = scmp.lt.u32.totalorder %s3879_s14, %s6415_s0 }
  0x36   : > { %p3556_p3 = pnand %p3555_p0, %p3554_p13  ;;  %p3560_p9 = scmp.lt.u32.totalorder %s3558_s29, %s3553_s24 }
  0x37   : > { %p3562_p2 = scmp.lt.u32.totalorder %s3553_s24, %s3879_s14 }
  0x38   : > { %p3557_p5 = pneg %p3556_p3  ;;  %p3561_p1 = por %p3560_p9, %p3559_p7 }
  0x3a   : > { %p3563_p4 = por %p3562_p2, %p3561_p1 }
  0x3c   : > { %p3564_p6 = pnand %p3563_p4, %p3557_p5 }
  0x3e   : > { %3567 = shalt.err (!%p3564_p6)
}
  0x3f   : > { %s3568_s20 = scalar_lea.vmem %s3885_s22, 4096  ;;  %s3718_s16 = smov [#allocation2]  }
  0x40   : > { %p3569_p8 = scmp.ne.s32.totalorder %s3885_s22, %s3568_s20  ;;  %s3573_s21 = sshll.u32 %s3718_s16, 4  ;;  %s3574_s21 = int_to_ptr.vmem [resolvable:$false] %s3573_s21 }
  0x41   : > { %s3575_s18 = scalar_lea.vmem %s3574_s21, 8192  ;;  %p3576_p3 = scmp.lt.s32.totalorder %s3885_s22, %s3574_s21 }
  0x42   : > { %p3571_p10 = pnand %p3569_p8, %p3555_p0  ;;  %p3577_p7 = scmp.lt.s32.totalorder %s3575_s18, %s3568_s20 }
  0x44   : > { %p3572_p13 = pneg %p3571_p10  ;;  %p3578_p9 = por %p3577_p7, %p3576_p3 }
  0x46   : > { %p3579_p1 = pnand %p3578_p9, %p3572_p13 }
  0x48   : > { %3582 = shalt.err (!%p3579_p1)
}
  0x49   : > { %s6473_s24 = smov 128   ;;  %p6474_p0 = scmp.ne.s32.totalorder %s6467_s17, 0 }
  0x4a   : > { %3465 = dma.hbm_to_vmem [thread:$0]  (!%p3881_p11), %s3879_s14, 4096, %s3885_s22, %s3887_s26, %s6473_s24, %s6473_s24, %s3717_s25  }
  0x4b   : > { %329 = sbr.rel (%p6474_p0) target bundleno = 791 (0x317), region = 48 }
  0x52   : > { %s3921_s29 = sand.u32 1, %s3705_s10   ;;  %p6475_p5 = scmp.ne.s32.totalorder %s6464_s15, 0 }
  0x53   : > { %s3298_s19 = sshll.u32 %s3921_s29, 8  ;;  %s332_s20 = scalar_lea.sflag [#allocation3], %s3921_s29 }
  0x54   : > { %s3927_s23 = scalar_lea.vmem [#allocation2], %s3298_s19 }
  0x55   : > { %3684 = dma.done.wait (%p6475_p5), %s332_s20, 4096  }
  0x56   : > { %3686 = vsyncadd (%p6475_p5), %s332_s20, 4294963200  ;;  %p6476_p11 = scmp.eq.s32.totalorder %s3795_s13, 0 }
  0x58   : > { %3688 = dma.done.wait (%p6476_p11), [#allocation6], 256   ;;  %p6477_p2 = pmov %p6476_p11 }
  0x59   : > { %vm418_vm0 = vcmask 130048   ;;  %v416_v0 = vld [vmem:[#allocation5] sm:$0xff]  ;;  %v417_v1 = vld [vmem:[#allocation5 + $0x8] sm:$0xff]  ;;  %v386_v7 = vld [vmem:[%s3927_s23 + $0x10] sm:$0xff]  ;;  %v1046_v35 = vlaneseq  ;;  %vm914_vm1 = vcmask 1040384   ;;  %vm1208_vm2 = vcmask 1046528  }
  0x5a   : > { %3690 = vsyncadd (%p6477_p2), [#allocation6], 4294967040  ;;  %v384_v2 = vld [vmem:[%s3927_s23] sm:$0xff]  ;;  %v3440_v3 = vpack.c.bf16 %v417_v1, %v416_v0  ;;  %v385_v5 = vld [vmem:[%s3927_s23 + $0x8] sm:$0xff]  ;;  %vm1444_vm3 = vcmask 1045504   ;;  %vm2821_vm4 = vcmask 261120  }
  0x5b   : > { %3392 = vmatprep.mubr.msk.f32.mxu0 %vm418_vm0, %v384_v2  ;;  %v400_v4 = vld [vmem:[%s3927_s23 + $0x80] sm:$0xff]  ;;  %v401_v6 = vld [vmem:[%s3927_s23 + $0x88] sm:$0xff]  ;;  %v402_v8 = vld [vmem:[%s3927_s23 + $0x90] sm:$0xff]  ;;  %v1047_v36 = vshrl.u32 %v1046_v35, 7  ;;  %s4454_s25 = scalar_lea.vmem [#allocation7], %s3298_s19  ;;  %s3351_s16 = sshll.u32 %s3795_s13, 12 }
  0x5c   : > { %3416 = vmatprep.mubr.msk.f32.mxu1 %vm418_vm0, %v400_v4  ;;  %3441 = vmatprep.subr.bf16.mxu0 %v3440_v3  ;;  %v387_v9 = vld [vmem:[%s3927_s23 + $0x18] sm:$0xff]  ;;  %v388_v11 = vld [vmem:[%s3927_s23 + $0x20] sm:$0xff]  ;;  %v389_v13 = vld [vmem:[%s3927_s23 + $0x28] sm:$0xff]  ;;  %s3114_s21 = sshll.u32 %s4454_s25, 4  ;;  %s6183_s20 = scalar_lea.hbm %s6422_s7, %s3351_s16  ;;  %s6185_s21 = int_to_ptr.vmem [resolvable:$true] %s3114_s21 }
  0x5d   : > { %3444 = vmatprep.subr.bf16.mxu1 %v3440_v3  ;;  %3443 = vmatpush3.bf16.msra.mxu0 %v3440_v3  ;;  %v403_v10 = vld [vmem:[%s3927_s23 + $0x98] sm:$0xff]  ;;  %v404_v12 = vld [vmem:[%s3927_s23 + $0xa0] sm:$0xff]  ;;  %v405_v14 = vld [vmem:[%s3927_s23 + $0xa8] sm:$0xff]  ;;  %v1114_v37 = vsub.s32 1, %v1047_v36  ;;  %v1048_v40 = vsub.s32 0, %v1047_v36  ;;  %v1350_v41 = vsub.s32 2, %v1047_v36 }
  0x5e   : > { %3445 = vmatpush3.bf16.msra.mxu1 %v3440_v3  ;;  %v390_v15 = vld [vmem:[%s3927_s23 + $0x30] sm:$0xff]  ;;  %v391_v17 = vld [vmem:[%s3927_s23 + $0x38] sm:$0xff]  ;;  %v392_v19 = vld [vmem:[%s3927_s23 + $0x40] sm:$0xff]  ;;  %s3583_s15 = scalar_lea.vmem %s6185_s21, 4096 }
  0x5f   : > { %v406_v16 = vld [vmem:[%s3927_s23 + $0xb0] sm:$0xff]  ;;  %v407_v18 = vld [vmem:[%s3927_s23 + $0xb8] sm:$0xff]  ;;  %v408_v20 = vld [vmem:[%s3927_s23 + $0xc0] sm:$0xff]  ;;  %p3584_p4 = scmp.ne.s32.totalorder %s6185_s21, %s3583_s15 }
  0x60   : > { %3393 = vmatmul.mubr.msk.f32.vlgmr.msra.gmra.mrb[0].mxu0 %vm418_vm0, %v385_v5  ;;  %v393_v21 = vld [vmem:[%s3927_s23 + $0x48] sm:$0xff]  ;;  %v394_v23 = vld [vmem:[%s3927_s23 + $0x50] sm:$0xff]  ;;  %v395_v25 = vld [vmem:[%s3927_s23 + $0x58] sm:$0xff] }
  0x61   : > { %3417 = vmatmul.mubr.msk.f32.vlgmr.msra.gmra.mrb[0].mxu1 %vm418_vm0, %v401_v6  ;;  %3395 = vmatprep.mubr.msk.f32.mxu0 %vm418_vm0, %v386_v7  ;;  %v409_v22 = vld [vmem:[%s3927_s23 + $0xc8] sm:$0xff]  ;;  %v410_v24 = vld [vmem:[%s3927_s23 + $0xd0] sm:$0xff]  ;;  %v411_v26 = vld [vmem:[%s3927_s23 + $0xd8] sm:$0xff]  ;;  %p3585_p6 = pnand %p3584_p4, %p3870_p12 }
  0x62   : > { %3419 = vmatprep.mubr.msk.f32.mxu1 %vm418_vm0, %v402_v8  ;;  %v396_v27 = vld [vmem:[%s3927_s23 + $0x60] sm:$0xff]  ;;  %v397_v29 = vld [vmem:[%s3927_s23 + $0x68] sm:$0xff]  ;;  %v398_v31 = vld [vmem:[%s3927_s23 + $0x70] sm:$0xff] }
  0x63   : > { %v412_v28 = vld [vmem:[%s3927_s23 + $0xe0] sm:$0xff]  ;;  %v413_v30 = vld [vmem:[%s3927_s23 + $0xe8] sm:$0xff]  ;;  %v414_v32 = vld [vmem:[%s3927_s23 + $0xf0] sm:$0xff]  ;;  %p3586_p8 = pneg %p3585_p6 }
  0x64   : > { %3396 = vmatmul.mubr.msk.f32.gmra.mrb[2].mxu0 %vm418_vm0, %v387_v9  ;;  %v399_v33 = vld [vmem:[%s3927_s23 + $0x78] sm:$0xff]  ;;  %v1043_v38 = vld [vmem:[%s6419_s4] sm:$0x7]  ;;  %v1044_v46 = vld [vmem:[%s6419_s4 + $0x4] sm:$0x7] }
  0x65   : > { %3420 = vmatmul.mubr.msk.f32.gmra.mrb[2].mxu1 %vm418_vm0, %v403_v10  ;;  %3398 = vmatprep.mubr.msk.f32.mxu0 %vm418_vm0, %v388_v11  ;;  %v415_v34 = vld [vmem:[%s3927_s23 + $0xf8] sm:$0xff]  ;;  %v4004_v39 = vrot.slane %v1043_v38, %v1114_v37  ;;  %v4006_v42 = vrot.slane %v1043_v38, %v1048_v40  ;;  %v4009_v44 = vrot.slane %v1043_v38, %v1350_v41  ;;  %v4014_v45 = vld [vmem:[%s6417_s2] ss:$0 sm:$0xff]  ;;  %v1045_v47 = vld [vmem:[%s6419_s4 + $0x8] sm:$0x7]  ;;  %s3091_s23 = scalar_lea.sflag [#allocation4], %s3921_s29 }
  0x66   : > { %3422 = vmatprep.mubr.msk.f32.mxu1 %vm418_vm0, %v404_v12  ;;  %v4026_v51 = vld [vmem:[%s6418_s3] ss:$0 sm:$0xff]  ;;  %v4030_v55 = vrot.slane %v1044_v46, %v1114_v37  ;;  %v4033_v59 = vrot.slane %v1044_v46, %v1350_v41  ;;  %v4035_v60 = vrot.slane %v1045_v47, %v1114_v37  ;;  %v4041_v1 = vrot.slane %v1045_v47, %v1350_v41 }
  0x67   : > { %v1116_v43 = vmul.f32 0.0, %v4004_v39  ;;  %v1050_v48 = vmul.f32 0.0, %v4006_v42  ;;  %v1352_v53 = vmul.f32 0.0, %v4009_v44  ;;  %v4044_v5 = vrot.slane %v1044_v46, %v1048_v40 }
  0x68   : > { %3399 = vmatmul.mubr.msk.f32.gmra.mrb[4].mxu0 %vm418_vm0, %v389_v13 }
  0x69   : > { %3423 = vmatmul.mubr.msk.f32.gmra.mrb[4].mxu1 %vm418_vm0, %v405_v14  ;;  %3401 = vmatprep.mubr.msk.f32.mxu0 %vm418_vm0, %v390_v15  ;;  %v1209_v49 = vrot.slane %v1116_v43, 1  ;;  %v1445_v4 = vrot.slane %v1352_v53, 2 }
  0x6a   : > { %3425 = vmatprep.mubr.msk.f32.mxu1 %vm418_vm0, %v406_v16 }
  0x6b   : > { %v1317_v2 = vadd.f32 %v1209_v49, %v1050_v48 }
  0x6c   : > { %3402 = vmatmul.mubr.msk.f32.gmra.mrb[6].mxu0 %vm418_vm0, %v391_v17 }
  0x6d   : > { %3426 = vmatmul.mubr.msk.f32.gmra.mrb[6].mxu1 %vm418_vm0, %v407_v18  ;;  %3404 = vmatprep.mubr.msk.f32.mxu0 %vm418_vm0, %v392_v19 }
  0x6e   : > { %3428 = vmatprep.mubr.msk.f32.mxu1 %vm418_vm0, %v408_v20 }
  0x70   : > { %3405 = vmatmul.mubr.msk.f32.gmra.mrb[8].mxu0 %vm418_vm0, %v393_v21 }
  0x71   : > { %3429 = vmatmul.mubr.msk.f32.gmra.mrb[8].mxu1 %vm418_vm0, %v409_v22  ;;  %3407 = vmatprep.mubr.msk.f32.mxu0 %vm418_vm0, %v394_v23 }
  0x72   : > { %3431 = vmatprep.mubr.msk.f32.mxu1 %vm418_vm0, %v410_v24 }
  0x74   : > { %3408 = vmatmul.mubr.msk.f32.gmra.mrb[10].mxu0 %vm418_vm0, %v395_v25 }
  0x75   : > { %3432 = vmatmul.mubr.msk.f32.gmra.mrb[10].mxu1 %vm418_vm0, %v411_v26  ;;  %3410 = vmatprep.mubr.msk.f32.mxu0 %vm418_vm0, %v396_v27 }
  0x76   : > { %3434 = vmatprep.mubr.msk.f32.mxu1 %vm418_vm0, %v412_v28 }
  0x78   : > { %3411 = vmatmul.mubr.msk.f32.gmra.mrb[12].mxu0 %vm418_vm0, %v397_v29 }
  0x79   : > { %3435 = vmatmul.mubr.msk.f32.gmra.mrb[12].mxu1 %vm418_vm0, %v413_v30  ;;  %3413 = vmatprep.mubr.msk.f32.mxu0 %vm418_vm0, %v398_v31  ;;  %v1553_v31 = vadd.f32 %v1445_v4, %v1317_v2 }
  0x7a   : > { %3437 = vmatprep.mubr.msk.f32.mxu1 %vm418_vm0, %v414_v32  ;;  %v4068_v32 = vrot.slane %v1045_v47, %v1048_v40 }
  0x7c   : > { %3414 = vmatmul.mubr.msk.f32.gmra.mrb[14].mxu0 %vm418_vm0, %v399_v33 }
  0x7d   : > { %3438 = vmatmul.mubr.msk.f32.gmra.mrb[14].mxu1 %vm418_vm0, %v415_v34 }
 0x133   : > { %v3394_v50 = vpop.f32.mrb[0].mxu0 }
 0x134   : > { %v3418_v52 = vpop.f32.mrb[0].mxu1  ;;  %v748_v54 = vmul.f32 %v3394_v50, %v4014_v45  ;;  %v581_v57 = vpop.f32.mrb[1].mxu0 }
 0x135   : > { %v764_v56 = vmul.f32 %v3418_v52, %v4014_v45  ;;  %v661_v58 = vpop.f32.mrb[1].mxu1  ;;  %v747_v61 = vmul.f32 %v4014_v45, %v581_v57 }
 0x136   : > { %v763_v62 = vmul.f32 %v4014_v45, %v661_v58  ;;  %v787_v63 = vadd.f32 %v4026_v51, %v748_v54 }
 0x137   : > { %v803_v0 = vadd.f32 %v4026_v51, %v764_v56  ;;  %v786_v3 = vadd.f32 %v4026_v51, %v747_v61  ;;  %v3397_v7 = vpop.f32.mrb[2].mxu0 }
 0x138   : > { %v802_v6 = vadd.f32 %v4026_v51, %v763_v62  ;;  %v3421_v8 = vpop.f32.mrb[2].mxu1  ;;  %v819_v9 = vmax.f32 %v787_v63, 0.0  ;;  %v750_v11 = vmul.f32 %v3397_v7, %v4014_v45  ;;  %v591_v13 = vpop.f32.mrb[3].mxu0 }
 0x139   : > { %v835_v10 = vmax.f32 %v803_v0, 0.0  ;;  %v766_v12 = vmul.f32 %v3421_v8, %v4014_v45  ;;  %v671_v14 = vpop.f32.mrb[3].mxu1  ;;  %v818_v15 = vmax.f32 %v786_v3, 0.0  ;;  %v749_v17 = vmul.f32 %v4014_v45, %v591_v13 }
 0x13a   : > { %v834_v16 = vmax.f32 %v802_v6, 0.0  ;;  %v765_v18 = vmul.f32 %v4014_v45, %v671_v14  ;;  %v851_v19 = vmin.f32 %v819_v9, 6.0  ;;  %v789_v21 = vadd.f32 %v4026_v51, %v750_v11 }
 0x13b   : > { %v4051_v20 = vmin.f32 %v835_v10, 6.0  ;;  %v805_v22 = vadd.f32 %v4026_v51, %v766_v12  ;;  %v850_v23 = vmin.f32 %v818_v15, 6.0  ;;  %v4058_v25 = vadd.f32 %v4026_v51, %v749_v17  ;;  %v4063_v27 = vpop.f32.mrb[4].mxu0 }
 0x13c   : > { %v4055_v24 = vmin.f32 %v834_v16, 6.0  ;;  %v4061_v26 = vadd.f32 %v4026_v51, %v765_v18  ;;  %v4065_v28 = vpop.f32.mrb[4].mxu1  ;;  %v916_v29 = vrot.slane %v851_v19, 7  ;;  %v4070_v33 = vpop.f32.mrb[5].mxu0  ;;  %v821_v37 = vmax.f32 %v789_v21, 0.0 }
 0x13d   : > { %v940_v30 = vrot.slane %v4051_v20, 7  ;;  %v4072_v34 = vpop.f32.mrb[5].mxu1  ;;  %v915_v35 = vrot.slane %v850_v23, 7  ;;  %v837_v38 = vmax.f32 %v805_v22, 0.0 }
 0x13e   : > { %v939_v36 = vrot.slane %v4055_v24, 7  ;;  %v1027_v41 = vsel %vm914_vm1, %v916_v29, 0.0  ;;  %v4107_v2 = vmin.f32 %v821_v37, 6.0 }
 0x13f   : > { %v1035_v43 = vsel %vm914_vm1, %v940_v30, 0.0  ;;  %v1119_v47 = vmul.f32 %v4004_v39, %v1027_v41  ;;  %v1355_v48 = vmul.f32 %v4009_v44, %v1027_v41  ;;  %v1658_v49 = vmul.f32 %v4030_v55, %v1027_v41  ;;  %v4087_v52 = vpop.f32.mrb[6].mxu0 }
 0x140   : > { %v4085_v50 = vmul.f32 %v4033_v59, %v1027_v41  ;;  %v4089_v53 = vpop.f32.mrb[6].mxu1  ;;  %v4092_v54 = vmul.f32 %v4004_v39, %v1035_v43  ;;  %v4095_v56 = vmul.f32 %v4009_v44, %v1035_v43  ;;  %v4098_v57 = vmul.f32 %v4030_v55, %v1035_v43  ;;  %v4103_v61 = vpop.f32.mrb[7].mxu0 }
 0x141   : > { %v4101_v58 = vmul.f32 %v4033_v59, %v1035_v43  ;;  %v4105_v62 = vpop.f32.mrb[7].mxu1  ;;  %v1214_v63 = vrot.slane %v1119_v47, 1  ;;  %v1450_v0 = vrot.slane %v1355_v48, 2  ;;  %v4109_v3 = vmin.f32 %v837_v38, 6.0 }
 0x142   : > { %v1755_v4 = vrot.slane %v1658_v49, 1  ;;  %v1999_v6 = vrot.slane %v4085_v50, 2  ;;  %v917_v11 = vsel %vm914_vm1, %v915_v35, %v916_v29  ;;  %v1011_v12 = vsel %vm914_vm1, 0.0, %v915_v35 }
 0x143   : > { %v4119_v13 = vmul.f32 %v4035_v60, %v1035_v43  ;;  %v4122_v14 = vmul.f32 %v4041_v1, %v1035_v43  ;;  %v1117_v15 = vmul.f32 %v4004_v39, %v1011_v12  ;;  %v1118_v16 = vmul.f32 %v4004_v39, %v917_v11 }
 0x144   : > { %v1051_v17 = vmul.f32 %v4006_v42, %v1011_v12  ;;  %v1052_v18 = vmul.f32 %v4006_v42, %v917_v11  ;;  %v1353_v19 = vmul.f32 %v4009_v44, %v1011_v12  ;;  %v1354_v21 = vmul.f32 %v4009_v44, %v917_v11 }
 0x145   : > { %v1211_v22 = vrot.slane %v1117_v15, 1  ;;  %v1212_v23 = vrot.slane %v1118_v16, 1  ;;  %v1588_v29 = vmul.f32 %v4044_v5, %v1011_v12  ;;  %v1589_v35 = vmul.f32 %v4044_v5, %v917_v11 }
 0x146   : > { %v1447_v37 = vrot.slane %v1353_v19, 2  ;;  %v1448_v38 = vrot.slane %v1354_v21, 2  ;;  %v1656_v41 = vmul.f32 %v4030_v55, %v1011_v12  ;;  %v1657_v43 = vmul.f32 %v4030_v55, %v917_v11 }
 0x147   : > { %v1213_v47 = vsel %vm1208_vm2, %v1211_v22, %v1212_v23  ;;  %v1215_v48 = vsel %vm1208_vm2, %v1212_v23, %v1214_v63  ;;  %v1620_v49 = vadd.f32 %v1588_v29, %v1553_v31  ;;  %v1621_v50 = vadd.f32 %v1589_v35, %v1553_v31 }
 0x148   : > { %v1318_v8 = vadd.f32 %v1213_v47, %v1051_v17  ;;  %v1319_v46 = vadd.f32 %v1215_v48, %v1052_v18  ;;  %v1449_v15 = vsel %vm1444_vm3, %v1447_v37, %v1448_v38  ;;  %v1451_v16 = vsel %vm1444_vm3, %v1448_v38, %v1450_v0  ;;  %v4154_v0 = vpop.f32.mrb[8].mxu0 }
 0x149   : > { %v1752_v40 = vrot.slane %v1656_v41, 1  ;;  %v1753_v10 = vrot.slane %v1657_v43, 1  ;;  %v1900_v19 = vmul.f32 %v4033_v59, %v1011_v12  ;;  %v1901_v21 = vmul.f32 %v4033_v59, %v917_v11  ;;  %6478 = vst [vmem:[#allocation17_spill] sm:$0xff] %v4154_v0 }
 0x14a   : > { %v4140_v9 = vadd.f32 %v1449_v15, %v1318_v8  ;;  %v4142_v7 = vadd.f32 %v1451_v16, %v1319_v46  ;;  %v4149_v31 = vsel %vm914_vm1, %v939_v36, %v940_v30  ;;  %v1019_v63 = vsel %vm914_vm1, 0.0, %v939_v36  ;;  %v4196_v16 = vpop.f32.mrb[8].mxu1 }
 0x14b   : > { %v1754_v12 = vsel %vm1208_vm2, %v1752_v40, %v1753_v10  ;;  %v1756_v8 = vsel %vm1208_vm2, %v1753_v10, %v1755_v4  ;;  %v1996_v11 = vrot.slane %v1900_v19, 2  ;;  %v1997_v46 = vrot.slane %v1901_v21, 2  ;;  %6482 = vst [vmem:[#allocation20_spill] sm:$0xff] %v4196_v16 }
 0x14c   : > { %v2341_v17 = vrot.slane %v4119_v13, 1  ;;  %v2577_v20 = vrot.slane %v4122_v14, 2  ;;  %v1864_v18 = vadd.f32 %v1754_v12, %v1620_v49  ;;  %v1865_v22 = vadd.f32 %v1756_v8, %v1621_v50 }
 0x14d   : > { %v1998_v30 = vsel %vm1444_vm3, %v1996_v11, %v1997_v46  ;;  %v2000_v24 = vsel %vm1444_vm3, %v1997_v46, %v1999_v6  ;;  %v1141_v36 = vmul.f32 %v4004_v39, %v1019_v63  ;;  %v1142_v23 = vmul.f32 %v4004_v39, %v4149_v31 }
 0x14e   : > { %v4165_v40 = vadd.f32 %v1998_v30, %v1864_v18  ;;  %v4167_v4 = vadd.f32 %v2000_v24, %v1865_v22  ;;  %v1067_v10 = vmul.f32 %v4006_v42, %v1019_v63  ;;  %v1068_v13 = vmul.f32 %v4006_v42, %v4149_v31 }
 0x14f   : > { %v1251_v14 = vrot.slane %v1141_v36, 1  ;;  %v1252_v29 = vrot.slane %v1142_v23, 1  ;;  %v4173_v35 = vmul.f32 %v4009_v44, %v1019_v63  ;;  %v4177_v6 = vmul.f32 %v4009_v44, %v4149_v31 }
 0x150   : > { %v4180_v37 = vmul.f32 %v4044_v5, %v1019_v63  ;;  %v4184_v38 = vmul.f32 %v4044_v5, %v4149_v31  ;;  %v1680_v41 = vmul.f32 %v4030_v55, %v1019_v63  ;;  %v1681_v43 = vmul.f32 %v4030_v55, %v4149_v31 }
 0x151   : > { %v1253_v47 = vsel %vm1208_vm2, %v1251_v14, %v1252_v29  ;;  %v6481_v48 = vrot.slane %v4092_v54, 1  ;;  %v1924_v50 = vmul.f32 %v4033_v59, %v1019_v63  ;;  %v1925_v15 = vmul.f32 %v4033_v59, %v4149_v31 }
 0x152   : > { %6479 = vst [vmem:[#allocation18_spill] sm:$0xff] %v4180_v37  ;;  %6480 = vst [vmem:[#allocation19_spill] sm:$0xff] %v4184_v38  ;;  %v4198_v19 = vadd.f32 %v1253_v47, %v1067_v10  ;;  %v1792_v12 = vrot.slane %v1680_v41, 1  ;;  %v1793_v8 = vrot.slane %v1681_v43, 1  ;;  %v1487_v11 = vrot.slane %v4173_v35, 2 }
 0x153   : > { %v1255_v49 = vsel %vm1208_vm2, %v1252_v29, %v6481_v48  ;;  %v1488_v46 = vrot.slane %v4177_v6, 2  ;;  %v2036_v54 = vrot.slane %v1924_v50, 2  ;;  %v2037_v18 = vrot.slane %v1925_v15, 2  ;;  %v4233_v15 = vpop.f32.mrb[9].mxu0 }
 0x154   : > { %v4200_v21 = vadd.f32 %v1255_v49, %v1068_v13  ;;  %v4205_v22 = vsel %vm1208_vm2, %v1792_v12, %v1793_v8  ;;  %v6484_v30 = vrot.slane %v4098_v57, 1  ;;  %v2232_v36 = vmul.f32 %v4035_v60, %v1019_v63  ;;  %6491 = vst [vmem:[#allocation26_spill] sm:$0xff] %v4233_v15 }
 0x155   : > { %6483 = vst [vmem:[#allocation21_spill] sm:$0xff] %v4205_v22  ;;  %v2233_v23 = vmul.f32 %v4035_v60, %v4149_v31  ;;  %v4216_v10 = vsel %vm1444_vm3, %v2036_v54, %v2037_v18  ;;  %v6487_v13 = vrot.slane %v4101_v58, 2  ;;  %v2468_v29 = vmul.f32 %v4041_v1, %v1019_v63 }
 0x156   : > { %v4210_v24 = vsel %vm1208_vm2, %v1793_v8, %v6484_v30  ;;  %6486 = vst [vmem:[#allocation23_spill] sm:$0xff] %v4216_v10  ;;  %v2469_v57 = vmul.f32 %v4041_v1, %v4149_v31  ;;  %v2338_v35 = vrot.slane %v2232_v36, 1  ;;  %v919_v41 = vrot.slane %v4107_v2, 7 }
 0x157   : > { %6485 = vst [vmem:[#allocation22_spill] sm:$0xff] %v4210_v24  ;;  %v4221_v14 = vsel %vm1444_vm3, %v2037_v18, %v6487_v13  ;;  %v2339_v6 = vrot.slane %v2233_v23, 1  ;;  %v6433_v43 = vrot.slane %v4109_v3, 7  ;;  %v4229_v47 = vmul.f32 %v4068_v32, %v1019_v63  ;;  %v4325_v24 = vpop.f32.mrb[9].mxu1 }
 0x158   : > { %6488 = vst [vmem:[#allocation24_spill] sm:$0xff] %v4221_v14  ;;  %v2574_v48 = vrot.slane %v2468_v29, 2  ;;  %v2575_v49 = vrot.slane %v2469_v57, 2  ;;  %v6490_v58 = vmax.f32 %v4058_v25, 0.0  ;;  %v1028_v2 = vsel %vm914_vm1, %v919_v41, 0.0  ;;  %6499 = vst [vmem:[#allocation32_spill] sm:$0xff] %v4325_v24 }
 0x159   : > { %6489 = vst [vmem:[#allocation25_spill] sm:$0xff] %v4229_v47  ;;  %v4236_v12 = vsel %vm1208_vm2, %v2338_v35, %v2339_v6  ;;  %v4239_v8 = vsel %vm1208_vm2, %v2339_v6, %v2341_v17  ;;  %v1036_v63 = vsel %vm914_vm1, %v6433_v43, 0.0  ;;  %v1122_v18 = vmul.f32 %v4004_v39, %v1028_v2 }
 0x15a   : > { %v852_v50 = vmin.f32 %v6490_v58, 6.0  ;;  %6492 = vst [vmem:[#allocation27_spill] sm:$0xff] %v4236_v12  ;;  %6493 = vst [vmem:[#allocation28_spill] sm:$0xff] %v4239_v8  ;;  %v4246_v54 = vsel %vm1444_vm3, %v2574_v48, %v2575_v49  ;;  %v4249_v25 = vsel %vm1444_vm3, %v2575_v49, %v2577_v20  ;;  %v4253_v30 = vmul.f32 %v4009_v44, %v1028_v2 }
 0x15b   : > { %6494 = vst [vmem:[#allocation29_spill] sm:$0xff] %v4246_v54  ;;  %6495 = vst [vmem:[#allocation30_spill] sm:$0xff] %v4249_v25  ;;  %v1661_v17 = vmul.f32 %v4030_v55, %v1028_v2  ;;  %v4257_v36 = vmul.f32 %v4033_v59, %v1028_v2  ;;  %v4260_v23 = vmul.f32 %v4035_v60, %v1028_v2  ;;  %v6497_v35 = vmax.f32 %v4061_v26, 0.0 }
 0x15c   : > { %v4263_v13 = vmul.f32 %v4041_v1, %v1028_v2  ;;  %v4267_v20 = vmul.f32 %v4068_v32, %v4149_v31  ;;  %v4270_v29 = vmul.f32 %v4004_v39, %v1036_v63  ;;  %v4273_v57 = vmul.f32 %v4009_v44, %v1036_v63 }
 0x15d   : > { %v868_v6 = vmin.f32 %v6497_v35, 6.0  ;;  %v1219_v48 = vrot.slane %v1122_v18, 1  ;;  %v1760_v58 = vrot.slane %v1661_v17, 1  ;;  %v4282_v25 = vmul.f32 %v4030_v55, %v1036_v63 }
 0x15e   : > { %6496 = vst [vmem:[#allocation31_spill] sm:$0xff] %v4267_v20  ;;  %v4285_v54 = vmul.f32 %v4033_v59, %v1036_v63  ;;  %v4289_v26 = vmul.f32 %v4035_v60, %v1036_v63  ;;  %v4292_v18 = vmul.f32 %v4041_v1, %v1036_v63  ;;  %v918_v17 = vrot.slane %v852_v50, 7 }
 0x15f   : > { %v942_v2 = vrot.slane %v868_v6, 7  ;;  %v4296_v49 = vsel %vm1444_vm3, %v1487_v11, %v1488_v46  ;;  %v6498_v31 = vrot.slane %v4095_v56, 2 }
 0x160   : > { %v920_v20 = vsel %vm914_vm1, %v918_v17, %v919_v41  ;;  %v1012_v63 = vsel %vm914_vm1, 0.0, %v918_v17 }
 0x161   : > { %v4301_v43 = vsel %vm1444_vm3, %v1488_v46, %v6498_v31  ;;  %v1120_v11 = vmul.f32 %v4004_v39, %v1012_v63  ;;  %v1121_v35 = vmul.f32 %v4004_v39, %v920_v20  ;;  %v1053_v56 = vmul.f32 %v4006_v42, %v1012_v63 }
 0x162   : > { %v1054_v46 = vmul.f32 %v4006_v42, %v920_v20  ;;  %v1590_v31 = vmul.f32 %v4044_v5, %v1012_v63  ;;  %v1591_v12 = vmul.f32 %v4044_v5, %v920_v20  ;;  %v1659_v17 = vmul.f32 %v4030_v55, %v1012_v63 }
 0x163   : > { %v1216_v8 = vrot.slane %v1120_v11, 1  ;;  %v1217_v41 = vrot.slane %v1121_v35, 1  ;;  %v1660_v50 = vmul.f32 %v4030_v55, %v920_v20  ;;  %v4318_v6 = vmul.f32 %v4009_v44, %v1012_v63 }
 0x164   : > { %v4321_v47 = vmul.f32 %v4009_v44, %v920_v20  ;;  %v1622_v14 = vadd.f32 %v1590_v31, %v4140_v9  ;;  %v1623_v10 = vadd.f32 %v1591_v12, %v4142_v7  ;;  %v1757_v11 = vrot.slane %v1659_v17, 1 }
 0x165   : > { %v1218_v22 = vsel %vm1208_vm2, %v1216_v8, %v1217_v41  ;;  %v1220_v35 = vsel %vm1208_vm2, %v1217_v41, %v1219_v48  ;;  %v1758_v38 = vrot.slane %v1660_v50, 1  ;;  %v4334_v16 = vmul.f32 %v4033_v59, %v1012_v63 }
 0x166   : > { %v4329_v37 = vadd.f32 %v1218_v22, %v1053_v56  ;;  %v4331_v15 = vadd.f32 %v1220_v35, %v1054_v46  ;;  %v4337_v0 = vmul.f32 %v4033_v59, %v920_v20  ;;  %v2144_v12 = vmul.f32 %v4068_v32, %v1012_v63 }
 0x167   : > { %v1759_v7 = vsel %vm1208_vm2, %v1757_v11, %v1758_v38  ;;  %v1761_v9 = vsel %vm1208_vm2, %v1758_v38, %v1760_v58  ;;  %v2145_v8 = vmul.f32 %v4068_v32, %v920_v20  ;;  %v2211_v41 = vmul.f32 %v4035_v60, %v1012_v63 }
 0x168   : > { %v4345_v50 = vadd.f32 %v1759_v7, %v1622_v14  ;;  %v4347_v56 = vadd.f32 %v1761_v9, %v1623_v10  ;;  %v2175_v46 = vadd.f32 %v2144_v12, %v4165_v40  ;;  %v2212_v38 = vmul.f32 %v4035_v60, %v920_v20 }
 0x169   : > { %v2176_v31 = vadd.f32 %v2145_v8, %v4167_v4  ;;  %v2447_v58 = vmul.f32 %v4041_v1, %v1012_v63  ;;  %v2448_v17 = vmul.f32 %v4041_v1, %v920_v20  ;;  %v6500_v35 = vrot.slane %v4109_v3, 7 }
 0x16a   : > { %v4361_v10 = vsel %vm914_vm1, 0.0, %v942_v2  ;;  %v2303_v14 = vrot.slane %v2211_v41, 1  ;;  %v2304_v7 = vrot.slane %v2212_v38, 1  ;;  %v6501_v8 = vrot.slane %v4260_v23, 1  ;;  %v4384_v23 = vld [vmem:[%s6420_s5] ss:$0 sm:$0xff] }
 0x16b   : > { %v4358_v11 = vsel %vm914_vm1, %v942_v2, %v6500_v35  ;;  %v2539_v9 = vrot.slane %v2447_v58, 2  ;;  %v2540_v12 = vrot.slane %v2448_v17, 2  ;;  %v1144_v63 = vmul.f32 %v4004_v39, %v4361_v10 }
 0x16c   : > { %v1145_v3 = vmul.f32 %v4004_v39, %v4358_v11  ;;  %v2305_v20 = vsel %vm1208_vm2, %v2303_v14, %v2304_v7  ;;  %v2307_v2 = vsel %vm1208_vm2, %v2304_v7, %v6501_v8  ;;  %v1069_v35 = vmul.f32 %v4006_v42, %v4361_v10 }
 0x16d   : > { %v1070_v41 = vmul.f32 %v4006_v42, %v4358_v11  ;;  %v2411_v38 = vadd.f32 %v2305_v20, %v2175_v46  ;;  %v2412_v58 = vadd.f32 %v2307_v2, %v2176_v31  ;;  %v2541_v17 = vsel %vm1444_vm3, %v2539_v9, %v2540_v12 }
 0x16e   : > { %v6502_v40 = vrot.slane %v4263_v13, 2  ;;  %v1256_v14 = vrot.slane %v1144_v63, 1  ;;  %v1257_v7 = vrot.slane %v1145_v3, 1  ;;  %v4388_v8 = vmul.f32 %v4009_v44, %v4361_v10 }
 0x16f   : > { %v4392_v46 = vmul.f32 %v4009_v44, %v4358_v11  ;;  %v2647_v31 = vadd.f32 %v2541_v17, %v2411_v38  ;;  %v1571_v9 = vadd.f32 %v4301_v43, %v4200_v21  ;;  %v6503_v3 = vrot.slane %v4270_v29, 1 }
 0x170   : > { %v2543_v4 = vsel %vm1444_vm3, %v2540_v12, %v6502_v40  ;;  %v1570_v40 = vadd.f32 %v4296_v49, %v4198_v19  ;;  %v4401_v12 = vld [vmem:[%s6421_s6] ss:$0 sm:$0xff]  ;;  %v1258_v63 = vsel %vm1208_vm2, %v1256_v14, %v1257_v7  ;;  %v1607_v19 = vmul.f32 %v4044_v5, %v4358_v11 }
 0x171   : > { %v2648_v13 = vadd.f32 %v2543_v4, %v2412_v58  ;;  %v1260_v20 = vsel %vm1208_vm2, %v1257_v7, %v6503_v3  ;;  %v1606_v4 = vmul.f32 %v4044_v5, %v4361_v10  ;;  %v2686_v49 = vmul.f32 %v4384_v23, %v2647_v31 }
 0x172   : > { %v4413_v43 = vadd.f32 %v1258_v63, %v1069_v35  ;;  %v4415_v2 = vadd.f32 %v1260_v20, %v1070_v41  ;;  %v1639_v58 = vadd.f32 %v1607_v19, %v1571_v9  ;;  %v1683_v29 = vmul.f32 %v4030_v55, %v4361_v10 }
 0x173   : > { %v2687_v21 = vmul.f32 %v4384_v23, %v2648_v13  ;;  %v1638_v38 = vadd.f32 %v1606_v4, %v1570_v40  ;;  %v1684_v17 = vmul.f32 %v4030_v55, %v4358_v11  ;;  %v2725_v14 = vadd.f32 %v4401_v12, %v2686_v49  ;;  %v4438_v4 = vpop.f32.mrb[10].mxu0 }
 0x174   : > { %v1492_v31 = vrot.slane %v4388_v8, 2  ;;  %v4426_v35 = vmul.f32 %v4033_v59, %v4361_v10  ;;  %v1493_v41 = vrot.slane %v4392_v46, 2  ;;  %v1797_v13 = vrot.slane %v1683_v29, 1  ;;  %6505 = vst [vmem:[#allocation34_spill] sm:$0xff] %v4438_v4 }
 0x175   : > { %v2726_v7 = vadd.f32 %v4401_v12, %v2687_v21  ;;  %v1798_v40 = vrot.slane %v1684_v17, 1  ;;  %v4431_v9 = vmul.f32 %v4033_v59, %v4358_v11  ;;  %v2757_v63 = vmax.f32 %v2725_v14, 0.0 }
 0x176   : > { %v2041_v20 = vrot.slane %v4426_v35, 2  ;;  %v4436_v8 = vmul.f32 %v4068_v32, %v4361_v10  ;;  %v6506_v46 = vrot.slane %v4282_v25, 1  ;;  %v2235_v21 = vmul.f32 %v4035_v60, %v4361_v10 }
 0x177   : > { %v2758_v3 = vmax.f32 %v2726_v7, 0.0  ;;  %v1799_v19 = vsel %vm1208_vm2, %v1797_v13, %v1798_v40  ;;  %v2236_v29 = vmul.f32 %v4035_v60, %v4358_v11  ;;  %v2789_v17 = vmin.f32 %v2757_v63, 6.0 }
 0x178   : > { %6504 = vst [vmem:[#allocation33_spill] sm:$0xff] %v4436_v8  ;;  %v1801_v49 = vsel %vm1208_vm2, %v1798_v40, %v6506_v46  ;;  %v1882_v7 = vadd.f32 %v1799_v19, %v1638_v38  ;;  %v2343_v48 = vrot.slane %v2235_v21, 1  ;;  %v2471_v8 = vmul.f32 %v4041_v1, %v4361_v10 }
 0x179   : > { %v2790_v14 = vmin.f32 %v2758_v3, 6.0  ;;  %v1883_v35 = vadd.f32 %v1801_v49, %v1639_v58  ;;  %v2344_v22 = vrot.slane %v2236_v29, 1  ;;  %v2472_v25 = vmul.f32 %v4041_v1, %v4358_v11  ;;  %2822 = vst.msk [vmem:[%s4454_s25] sm:$0xff] %vm2821_vm4, %v2789_v17 }
 0x17a   : > { %v4461_v38 = vsel %vm2821_vm4, %v2789_v17, 0.0  ;;  %v752_v10 = vmul.f32 %v4063_v27, %v4014_v45  ;;  %v768_v13 = vmul.f32 %v4065_v28, %v4014_v45  ;;  %v6509_v3 = vrot.slane %v4289_v26, 1 }
 0x17b   : > { %2823 = vst.msk [vmem:[%s4454_s25 + $0x8] sm:$0xff] %vm2821_vm4, %v2790_v14  ;;  %v4464_v58 = vsel %vm2821_vm4, %v2790_v14, 0.0  ;;  %v4475_v63 = vsel %vm1208_vm2, %v2343_v48, %v2344_v22  ;;  %v2579_v46 = vrot.slane %v2471_v8, 2  ;;  %v2580_v49 = vrot.slane %v2472_v25, 2 }
 0x17c   : > { %v4472_v40 = vadd.f32 %v4464_v58, %v4461_v38  ;;  %6508 = vst [vmem:[#allocation36_spill] sm:$0xff] %v4475_v63  ;;  %v4480_v19 = vsel %vm1208_vm2, %v2344_v22, %v6509_v3  ;;  %v791_v21 = vadd.f32 %v4026_v51, %v752_v10  ;;  %v807_v27 = vadd.f32 %v4026_v51, %v768_v13 }
 0x17d   : > { %6510 = vst [vmem:[#allocation37_spill] sm:$0xff] %v4480_v19  ;;  %v751_v28 = vmul.f32 %v4014_v45, %v4070_v33  ;;  %v2042_v29 = vrot.slane %v4431_v9, 2  ;;  %v6511_v17 = vrot.slane %v4321_v47, 2  ;;  %v6512_v48 = vrot.slane %v4318_v6, 2 }
 0x17e   : > { %6507 = vst [vmem:[#allocation35_spill] sm:$0xff] %v4472_v40  ;;  %v6513_v22 = vrot.slane %v4253_v30, 2  ;;  %v6515_v25 = vrot.slane %v4337_v0, 2  ;;  %v6516_v10 = vrot.slane %v4334_v16, 2  ;;  %v4503_v9 = vsel %vm1444_vm3, %v2579_v46, %v2580_v49 }
 0x17f   : > { %v1454_v26 = vsel %vm1444_vm3, %v6512_v48, %v6511_v17  ;;  %v6514_v8 = vmov %v6511_v17  ;;  %6517 = vst [vmem:[#allocation38_spill] sm:$0xff] %v4503_v9  ;;  %v6518_v13 = vrot.slane %v4292_v18, 2  ;;  %v823_v3 = vmax.f32 %v791_v21, 0.0 }
 0x180   : > { %v1456_v14 = vsel %vm1444_vm3, %v6514_v8, %v6513_v22  ;;  %v2003_v33 = vsel %vm1444_vm3, %v6516_v10, %v6515_v25  ;;  %v839_v30 = vmax.f32 %v807_v27, 0.0  ;;  %v790_v47 = vadd.f32 %v4026_v51, %v751_v28 }
 0x181   : > { %v4508_v6 = vsel %vm1444_vm3, %v2580_v49, %v6518_v13  ;;  %v4512_v17 = vadd.f32 %v1454_v26, %v4329_v37  ;;  %v4515_v48 = vadd.f32 %v1456_v14, %v4331_v15  ;;  %v6520_v16 = vrot.slane %v4257_v36, 2  ;;  %v4530_v37 = vpop.f32.mrb[10].mxu1  ;;  %v4561_v13 = vpop.f32.mrb[11].mxu0 }
 0x182   : > { %6519 = vst [vmem:[#allocation39_spill] sm:$0xff] %v4508_v6  ;;  %v6521_v46 = vmov %v6515_v25  ;;  %v855_v18 = vmin.f32 %v823_v3, 6.0  ;;  %v4522_v8 = vmin.f32 %v839_v30, 6.0  ;;  %v4525_v49 = vadd.f32 %v2003_v33, %v4345_v50  ;;  %6522 = vst [vmem:[#allocation40_spill] sm:$0xff] %v4530_v37  ;;  %v4644_v24 = vpop.f32.mrb[11].mxu1 }
 0x183   : > { %v2005_v22 = vsel %vm1444_vm3, %v6521_v46, %v6520_v16  ;;  %v822_v27 = vmax.f32 %v790_v47, 0.0  ;;  %v767_v15 = vmul.f32 %v4014_v45, %v4072_v34  ;;  %v1494_v36 = vsel %vm1444_vm3, %v1492_v31, %v1493_v41  ;;  %6526 = vst [vmem:[#allocation42_spill] sm:$0xff] %v4561_v13  ;;  %6527 = vst [vmem:[#allocation43_spill] sm:$0xff] %v4644_v24 }
 0x184   : > { %v4528_v21 = vadd.f32 %v2005_v22, %v4347_v56  ;;  %v6523_v0 = vrot.slane %v4273_v57, 2  ;;  %v922_v26 = vrot.slane %v855_v18, 7  ;;  %v6434_v14 = vrot.slane %v4522_v8, 7 }
 0x185   : > { %v4540_v50 = vadd.f32 %v1494_v36, %v4413_v43  ;;  %v4547_v25 = vmul.f32 %v4068_v32, %v4358_v11  ;;  %v854_v34 = vmin.f32 %v822_v27, 6.0  ;;  %v2043_v31 = vsel %vm1444_vm3, %v2041_v20, %v2042_v29 }
 0x186   : > { %v1496_v28 = vsel %vm1444_vm3, %v1493_v41, %v6523_v0  ;;  %v6525_v57 = vrot.slane %v4285_v54, 2  ;;  %v1029_v10 = vsel %vm914_vm1, %v922_v26, 0.0  ;;  %v1037_v43 = vsel %vm914_vm1, %v6434_v14, 0.0 }
 0x187   : > { %v4543_v56 = vadd.f32 %v1496_v28, %v4415_v2  ;;  %6524 = vst [vmem:[#allocation41_spill] sm:$0xff] %v4547_v25  ;;  %v4557_v33 = vadd.f32 %v2043_v31, %v1882_v7  ;;  %v1125_v11 = vmul.f32 %v4004_v39, %v1029_v10  ;;  %v4565_v20 = vmul.f32 %v4009_v44, %v1029_v10 }
 0x188   : > { %v2045_v41 = vsel %vm1444_vm3, %v2042_v29, %v6525_v57  ;;  %v1664_v54 = vmul.f32 %v4030_v55, %v1029_v10  ;;  %v4569_v29 = vmul.f32 %v4033_v59, %v1029_v10  ;;  %v4572_v3 = vmul.f32 %v4035_v60, %v1029_v10 }
 0x189   : > { %v4559_v2 = vadd.f32 %v2045_v41, %v1883_v35  ;;  %v4575_v7 = vmul.f32 %v4041_v1, %v1029_v10  ;;  %v4578_v35 = vmul.f32 %v4004_v39, %v1037_v43  ;;  %v806_v30 = vadd.f32 %v4026_v51, %v767_v15 }
 0x18a   : > { %v1224_v16 = vrot.slane %v1125_v11, 1  ;;  %v4584_v22 = vmul.f32 %v4009_v44, %v1037_v43  ;;  %v1765_v18 = vrot.slane %v1664_v54, 1  ;;  %v4590_v28 = vmul.f32 %v4030_v55, %v1037_v43 }
 0x18b   : > { %v4593_v15 = vmul.f32 %v4033_v59, %v1037_v43  ;;  %v4596_v31 = vmul.f32 %v4035_v60, %v1037_v43  ;;  %v4599_v57 = vmul.f32 %v4041_v1, %v1037_v43  ;;  %v921_v10 = vrot.slane %v854_v34, 7 }
 0x18c   : > { %v838_v11 = vmax.f32 %v806_v30, 0.0  ;;  %v754_v54 = vmul.f32 %v4087_v52, %v4014_v45  ;;  %v770_v0 = vmul.f32 %v4089_v53, %v4014_v45 }
 0x18d   : > { %v923_v41 = vsel %vm914_vm1, %v921_v10, %v922_v26  ;;  %v1013_v34 = vsel %vm914_vm1, 0.0, %v921_v10 }
 0x18e   : > { %v1123_v30 = vmul.f32 %v4004_v39, %v1013_v34  ;;  %v1124_v52 = vmul.f32 %v4004_v39, %v923_v41  ;;  %v870_v47 = vmin.f32 %v838_v11, 6.0  ;;  %v4616_v27 = vadd.f32 %v4026_v51, %v754_v54 }
 0x18f   : > { %v1055_v46 = vmul.f32 %v4006_v42, %v1013_v34  ;;  %v1056_v53 = vmul.f32 %v4006_v42, %v923_v41  ;;  %v1592_v36 = vmul.f32 %v4044_v5, %v1013_v34  ;;  %v1593_v43 = vmul.f32 %v4044_v5, %v923_v41 }
 0x190   : > { %v1221_v14 = vrot.slane %v1123_v30, 1  ;;  %v1222_v26 = vrot.slane %v1124_v52, 1  ;;  %v1662_v10 = vmul.f32 %v4030_v55, %v1013_v34  ;;  %v1663_v40 = vmul.f32 %v4030_v55, %v923_v41 }
 0x191   : > { %v4625_v6 = vmul.f32 %v4009_v44, %v1013_v34  ;;  %v4628_v11 = vmul.f32 %v4009_v44, %v923_v41  ;;  %v1624_v54 = vadd.f32 %v1592_v36, %v4512_v17  ;;  %v1625_v9 = vadd.f32 %v1593_v43, %v4515_v48 }
 0x192   : > { %v1223_v19 = vsel %vm1208_vm2, %v1221_v14, %v1222_v26  ;;  %v1225_v63 = vsel %vm1208_vm2, %v1222_v26, %v1224_v16  ;;  %v1762_v30 = vrot.slane %v1662_v10, 1  ;;  %v1763_v52 = vrot.slane %v1663_v40, 1 }
 0x193   : > { %v4634_v25 = vadd.f32 %v1223_v19, %v1055_v46  ;;  %v4636_v13 = vadd.f32 %v1225_v63, %v1056_v53  ;;  %v4639_v37 = vmul.f32 %v4033_v59, %v1013_v34  ;;  %v4642_v4 = vmul.f32 %v4033_v59, %v923_v41 }
 0x194   : > { %v1764_v17 = vsel %vm1208_vm2, %v1762_v30, %v1763_v52  ;;  %v1766_v48 = vsel %vm1208_vm2, %v1763_v52, %v1765_v18  ;;  %v2146_v14 = vmul.f32 %v4068_v32, %v1013_v34  ;;  %v2147_v40 = vmul.f32 %v4068_v32, %v923_v41 }
 0x195   : > { %v1458_v63 = vrot.slane %v4628_v11, 2  ;;  %v4652_v16 = vadd.f32 %v1764_v17, %v1624_v54  ;;  %v4654_v46 = vadd.f32 %v1766_v48, %v1625_v9  ;;  %v2214_v53 = vmul.f32 %v4035_v60, %v1013_v34 }
 0x196   : > { %v2177_v36 = vadd.f32 %v2146_v14, %v4525_v49  ;;  %v2178_v43 = vadd.f32 %v2147_v40, %v4528_v21  ;;  %v2215_v18 = vmul.f32 %v4035_v60, %v923_v41  ;;  %v2450_v10 = vmul.f32 %v4041_v1, %v1013_v34 }
 0x197   : > { %v2451_v30 = vmul.f32 %v4041_v1, %v923_v41  ;;  %v945_v52 = vrot.slane %v870_v47, 7  ;;  %v2308_v17 = vrot.slane %v2214_v53, 1  ;;  %v825_v48 = vmax.f32 %v4616_v27, 0.0 }
 0x198   : > { %v2309_v9 = vrot.slane %v2215_v18, 1  ;;  %v2544_v49 = vrot.slane %v2450_v10, 2  ;;  %v6528_v21 = vrot.slane %v4522_v8, 7  ;;  %v6529_v34 = vrot.slane %v4572_v3, 1 }
 0x199   : > { %v2545_v14 = vrot.slane %v2451_v30, 2  ;;  %v1021_v19 = vsel %vm914_vm1, 0.0, %v945_v52  ;;  %v4674_v41 = vadd.f32 %v4026_v51, %v770_v0  ;;  %v4678_v53 = vmul.f32 %v4014_v45, %v4103_v61 }
 0x19a   : > { %v947_v40 = vsel %vm914_vm1, %v945_v52, %v6528_v21  ;;  %v2310_v26 = vsel %vm1208_vm2, %v2308_v17, %v2309_v9  ;;  %v2312_v47 = vsel %vm1208_vm2, %v2309_v9, %v6529_v34  ;;  %v6530_v30 = vrot.slane %v4575_v7, 2 }
 0x19b   : > { %v2413_v18 = vadd.f32 %v2310_v26, %v2177_v36  ;;  %v2414_v10 = vadd.f32 %v2312_v47, %v2178_v43  ;;  %v2546_v8 = vsel %vm1444_vm3, %v2544_v49, %v2545_v14  ;;  %v1071_v17 = vmul.f32 %v4006_v42, %v1021_v19 }
 0x19c   : > { %v2548_v52 = vsel %vm1444_vm3, %v2545_v14, %v6530_v30  ;;  %v1072_v3 = vmul.f32 %v4006_v42, %v947_v40  ;;  %v1147_v9 = vmul.f32 %v4004_v39, %v1021_v19  ;;  %v1148_v0 = vmul.f32 %v4004_v39, %v947_v40 }
 0x19d   : > { %v2649_v21 = vadd.f32 %v2546_v8, %v2413_v18  ;;  %v2650_v34 = vadd.f32 %v2548_v52, %v2414_v10  ;;  %v1608_v45 = vmul.f32 %v4044_v5, %v1021_v19  ;;  %v1609_v61 = vmul.f32 %v4044_v5, %v947_v40 }
 0x19e   : > { %v1261_v36 = vrot.slane %v1147_v9, 1  ;;  %v1262_v43 = vrot.slane %v1148_v0, 1  ;;  %v4691_v7 = vmul.f32 %v4009_v44, %v1021_v19  ;;  %v4694_v26 = vmul.f32 %v4009_v44, %v947_v40 }
 0x19f   : > { %v2688_v49 = vmul.f32 %v4384_v23, %v2649_v21  ;;  %v2689_v14 = vmul.f32 %v4384_v23, %v2650_v34  ;;  %v1640_v47 = vadd.f32 %v1608_v45, %v4540_v50  ;;  %v1641_v18 = vadd.f32 %v1609_v61, %v4543_v56 }
 0x1a0   : > { %v1263_v10 = vsel %vm1208_vm2, %v1261_v36, %v1262_v43  ;;  %v6531_v8 = vrot.slane %v4578_v35, 1  ;;  %v1686_v52 = vmul.f32 %v4030_v55, %v1021_v19  ;;  %v1687_v9 = vmul.f32 %v4030_v55, %v947_v40 }
 0x1a1   : > { %v2727_v0 = vadd.f32 %v4401_v12, %v2688_v49  ;;  %v2728_v21 = vadd.f32 %v4401_v12, %v2689_v14  ;;  %v4708_v54 = vadd.f32 %v1263_v10, %v1071_v17  ;;  %v2163_v49 = vmul.f32 %v4068_v32, %v947_v40 }
 0x1a2   : > { %v1265_v30 = vsel %vm1208_vm2, %v1262_v43, %v6531_v8  ;;  %v1802_v45 = vrot.slane %v1686_v52, 1  ;;  %v1803_v35 = vrot.slane %v1687_v9, 1  ;;  %v2162_v43 = vmul.f32 %v4068_v32, %v1021_v19 }
 0x1a3   : > { %v4710_v34 = vadd.f32 %v1265_v30, %v1072_v3  ;;  %v2759_v61 = vmax.f32 %v2727_v0, 0.0  ;;  %v2760_v36 = vmax.f32 %v2728_v21, 0.0  ;;  %v6532_v17 = vrot.slane %v4590_v28, 1  ;;  %v4730_v21 = vpop.f32.mrb[12].mxu0 }
 0x1a4   : > { %v1804_v14 = vsel %vm1208_vm2, %v1802_v45, %v1803_v35  ;;  %v4721_v10 = vmul.f32 %v4033_v59, %v1021_v19  ;;  %v4724_v8 = vmul.f32 %v4033_v59, %v947_v40  ;;  %6533 = vst [vmem:[#allocation44_spill] sm:$0xff] %v4730_v21  ;;  %v2193_v45 = vadd.f32 %v2162_v43, %v4557_v33 }
 0x1a5   : > { %v1806_v3 = vsel %vm1208_vm2, %v1803_v35, %v6532_v17  ;;  %v2791_v30 = vmin.f32 %v2759_v61, 6.0  ;;  %v2792_v52 = vmin.f32 %v2760_v36, 6.0  ;;  %v4726_v9 = vadd.f32 %v1804_v14, %v1640_v47 }
 0x1a6   : > { %v4728_v0 = vadd.f32 %v1806_v3, %v1641_v18  ;;  %v2194_v28 = vadd.f32 %v2163_v49, %v4559_v2  ;;  %v2238_v35 = vmul.f32 %v4035_v60, %v1021_v19  ;;  %v2239_v17 = vmul.f32 %v4035_v60, %v947_v40 }
 0x1a7   : > { %2824 = vst.msk [vmem:[%s4454_s25 + $0x10] sm:$0xff] %vm2821_vm4, %v2791_v30  ;;  %2825 = vst.msk [vmem:[%s4454_s25 + $0x18] sm:$0xff] %vm2821_vm4, %v2792_v52  ;;  %v2863_v61 = vsel %vm2821_vm4, %v2791_v30, 0.0  ;;  %v2864_v47 = vsel %vm2821_vm4, %v2792_v52, 0.0  ;;  %v2474_v18 = vmul.f32 %v4041_v1, %v1021_v19  ;;  %v2475_v36 = vmul.f32 %v4041_v1, %v947_v40 }
 0x1a8   : > { %v4744_v14 = vadd.f32 %v2864_v47, %v2863_v61  ;;  %v4747_v33 = vadd.f32 %v2863_v61, %v4461_v38  ;;  %v4750_v2 = vadd.f32 %v2864_v47, %v4464_v58  ;;  %v2348_v43 = vrot.slane %v2238_v35, 1 }
 0x1a9   : > { %v2349_v49 = vrot.slane %v2239_v17, 1  ;;  %v2584_v3 = vrot.slane %v2474_v18, 2  ;;  %v2585_v50 = vrot.slane %v2475_v36, 2  ;;  %v4754_v30 = vmin.f32 %v825_v48, 6.0 }
 0x1aa   : > { %6534 = vst [vmem:[#allocation45_spill] sm:$0xff] %v4744_v14  ;;  %v841_v40 = vmax.f32 %v4674_v41, 0.0  ;;  %v792_v52 = vadd.f32 %v4026_v51, %v4678_v53  ;;  %v6535_v38 = vrot.slane %v4625_v6, 2  ;;  %v6536_v17 = vrot.slane %v4596_v31, 1 }
 0x1ab   : > { %v2350_v35 = vsel %vm1208_vm2, %v2348_v43, %v2349_v49  ;;  %v2586_v48 = vsel %vm1444_vm3, %v2584_v3, %v2585_v50  ;;  %v6537_v61 = vrot.slane %v4599_v57, 2  ;;  %v925_v53 = vrot.slane %v4754_v30, 7 }
 0x1ac   : > { %v1459_v58 = vsel %vm1444_vm3, %v6535_v38, %v1458_v63  ;;  %v2352_v27 = vsel %vm1208_vm2, %v2349_v49, %v6536_v17  ;;  %v2429_v47 = vadd.f32 %v2350_v35, %v2193_v45  ;;  %v4774_v18 = vmin.f32 %v841_v40, 6.0 }
 0x1ad   : > { %v2588_v41 = vsel %vm1444_vm3, %v2585_v50, %v6537_v61  ;;  %v2430_v51 = vadd.f32 %v2352_v27, %v2194_v28  ;;  %v824_v6 = vmax.f32 %v792_v52, 0.0  ;;  %v6538_v36 = vrot.slane %v4565_v20, 2  ;;  %v4791_v20 = vpop.f32.mrb[12].mxu1 }
 0x1ae   : > { %v4782_v43 = vadd.f32 %v1459_v58, %v4634_v25  ;;  %v6539_v57 = vrot.slane %v4642_v4, 2  ;;  %v6540_v50 = vrot.slane %v4639_v37, 2  ;;  %v2665_v28 = vadd.f32 %v2586_v48, %v2429_v47  ;;  %6541 = vst [vmem:[#allocation46_spill] sm:$0xff] %v4791_v20 }
 0x1af   : > { %v1461_v31 = vsel %vm1444_vm3, %v1458_v63, %v6538_v36  ;;  %v2666_v49 = vadd.f32 %v2588_v41, %v2430_v51  ;;  %v1030_v3 = vsel %vm914_vm1, %v925_v53, 0.0  ;;  %v6437_v30 = vrot.slane %v4774_v18, 7 }
 0x1b0   : > { %v2008_v45 = vsel %vm1444_vm3, %v6540_v50, %v6539_v57  ;;  %v1128_v11 = vmul.f32 %v4004_v39, %v1030_v3  ;;  %v4795_v63 = vmul.f32 %v4009_v44, %v1030_v3  ;;  %v4798_v25 = vmul.f32 %v4030_v55, %v1030_v3 }
 0x1b1   : > { %v4801_v37 = vmul.f32 %v4033_v59, %v1030_v3  ;;  %v2704_v52 = vmul.f32 %v4384_v23, %v2665_v28  ;;  %v2705_v38 = vmul.f32 %v4384_v23, %v2666_v49  ;;  %v4807_v58 = vmul.f32 %v4035_v60, %v1030_v3 }
 0x1b2   : > { %v1229_v17 = vrot.slane %v1128_v11, 1  ;;  %v4812_v48 = vmul.f32 %v4041_v1, %v1030_v3  ;;  %v1770_v47 = vrot.slane %v4798_v25, 1  ;;  %v1038_v36 = vsel %vm914_vm1, %v6437_v30, 0.0  ;;  %v4829_v11 = vpop.f32.mrb[13].mxu0 }
 0x1b3   : > { %6542 = vst [vmem:[#allocation47_spill] sm:$0xff] %v4801_v37  ;;  %v2743_v61 = vadd.f32 %v4401_v12, %v2704_v52  ;;  %v4816_v41 = vadd.f32 %v4401_v12, %v2705_v38  ;;  %v856_v57 = vmin.f32 %v824_v6, 6.0  ;;  %v1559_v50 = vadd.f32 %v1461_v31, %v4636_v13  ;;  %6546 = vst [vmem:[#allocation49_spill] sm:$0xff] %v4829_v11 }
 0x1b4   : > { %v6544_v28 = vrot.slane %v4569_v29, 2  ;;  %v6545_v49 = vrot.slane %v4642_v4, 2  ;;  %v4833_v38 = vmul.f32 %v4004_v39, %v1038_v36  ;;  %v4836_v35 = vmul.f32 %v4009_v44, %v1038_v36 }
 0x1b5   : > { %6543 = vst [vmem:[#allocation48_spill] sm:$0xff] %v4816_v41  ;;  %v2775_v52 = vmax.f32 %v2743_v61, 0.0  ;;  %v4839_v13 = vmul.f32 %v4030_v55, %v1038_v36  ;;  %v4842_v29 = vmul.f32 %v4033_v59, %v1038_v36  ;;  %v4845_v4 = vmul.f32 %v4035_v60, %v1038_v36 }
 0x1b6   : > { %v2010_v3 = vsel %vm1444_vm3, %v6545_v49, %v6544_v28  ;;  %6547 = vst [vmem:[#allocation50_spill] sm:$0xff] %v4836_v35  ;;  %v4848_v6 = vmul.f32 %v4041_v1, %v1038_v36  ;;  %v924_v49 = vrot.slane %v856_v57, 7 }
 0x1b7   : > { %6548 = vst [vmem:[#allocation51_spill] sm:$0xff] %v4842_v29  ;;  %v2807_v61 = vmin.f32 %v2775_v52, 6.0  ;;  %v2112_v52 = vadd.f32 %v2008_v45, %v4652_v16  ;;  %v2113_v37 = vadd.f32 %v2010_v3, %v4654_v46  ;;  %v6550_v3 = vrot.slane %v4694_v26, 2 }
 0x1b8   : > { %v926_v36 = vsel %vm914_vm1, %v924_v49, %v925_v53  ;;  %v1014_v31 = vsel %vm914_vm1, 0.0, %v924_v49 }
 0x1b9   : > { %2840 = vst.msk [vmem:[%s4454_s25 + $0x90] sm:$0xff] %vm2821_vm4, %v2807_v61  ;;  %v4863_v57 = vsel %vm2821_vm4, %v2807_v61, 0.0  ;;  %v1126_v30 = vmul.f32 %v4004_v39, %v1014_v31  ;;  %v1127_v27 = vmul.f32 %v4004_v39, %v926_v36  ;;  %v4869_v19 = vmul.f32 %v4009_v44, %v1014_v31 }
 0x1ba   : > { %6549 = vst [vmem:[#allocation52_spill] sm:$0xff] %v4863_v57  ;;  %v4872_v40 = vmul.f32 %v4009_v44, %v926_v36  ;;  %v1594_v53 = vmul.f32 %v4044_v5, %v1014_v31  ;;  %v1595_v49 = vmul.f32 %v4044_v5, %v926_v36  ;;  %v1665_v61 = vmul.f32 %v4030_v55, %v1014_v31 }
 0x1bb   : > { %v1226_v16 = vrot.slane %v1126_v30, 1  ;;  %v1227_v45 = vrot.slane %v1127_v27, 1  ;;  %v1666_v51 = vmul.f32 %v4030_v55, %v926_v36  ;;  %v1057_v28 = vmul.f32 %v4006_v42, %v1014_v31 }
 0x1bc   : > { %v1058_v25 = vmul.f32 %v4006_v42, %v926_v36  ;;  %v1626_v56 = vadd.f32 %v1594_v53, %v4782_v43  ;;  %v1627_v14 = vadd.f32 %v1595_v49, %v1559_v50  ;;  %v1767_v11 = vrot.slane %v1665_v61, 1  ;;  %v4889_v50 = vpop.f32.mrb[13].mxu1 }
 0x1bd   : > { %v1228_v41 = vsel %vm1208_vm2, %v1226_v16, %v1227_v45  ;;  %v1230_v57 = vsel %vm1208_vm2, %v1227_v45, %v1229_v17  ;;  %v1768_v20 = vrot.slane %v1666_v51, 1  ;;  %v1462_v27 = vrot.slane %v4869_v19, 2 }
 0x1be   : > { %v1324_v21 = vadd.f32 %v1228_v41, %v1057_v28  ;;  %v1325_v30 = vadd.f32 %v1230_v57, %v1058_v25  ;;  %v1463_v24 = vrot.slane %v4872_v40, 2  ;;  %v2148_v43 = vmul.f32 %v4068_v32, %v1014_v31 }
 0x1bf   : > { %v1769_v29 = vsel %vm1208_vm2, %v1767_v11, %v1768_v20  ;;  %v1771_v35 = vsel %vm1208_vm2, %v1768_v20, %v1770_v47  ;;  %v4896_v41 = vmul.f32 %v4033_v59, %v1014_v31  ;;  %v4899_v19 = vmul.f32 %v4033_v59, %v926_v36 }
 0x1c0   : > { %v4891_v53 = vadd.f32 %v1769_v29, %v1626_v56  ;;  %v4893_v17 = vadd.f32 %v1771_v35, %v1627_v14  ;;  %v2149_v40 = vmul.f32 %v4068_v32, %v926_v36  ;;  %v2179_v51 = vadd.f32 %v2148_v43, %v2112_v52  ;;  %v4909_v14 = vld [vmem:[%s6417_s2] ss:$0 sm:$0xff] }
 0x1c1   : > { %v2217_v20 = vmul.f32 %v4035_v60, %v1014_v31  ;;  %v2218_v46 = vmul.f32 %v4035_v60, %v926_v36  ;;  %v2453_v47 = vmul.f32 %v4041_v1, %v1014_v31  ;;  %v2454_v56 = vmul.f32 %v4041_v1, %v926_v36 }
 0x1c2   : > { %v769_v35 = vmul.f32 %v4909_v14, %v4105_v62  ;;  %v6551_v11 = vrot.slane %v4691_v7, 2  ;;  %v2180_v29 = vadd.f32 %v2149_v40, %v2113_v37  ;;  %v6552_v31 = vrot.slane %v4584_v22, 2  ;;  %v4926_v62 = vld [vmem:[%s6418_s3] ss:$0 sm:$0xff] }
 0x1c3   : > { %v2313_v28 = vrot.slane %v2217_v20, 1  ;;  %v2314_v52 = vrot.slane %v2218_v46, 1  ;;  %v6553_v36 = vmov %v6550_v3  ;;  %v2549_v49 = vrot.slane %v2453_v47, 2 }
 0x1c4   : > { %v1499_v25 = vsel %vm1444_vm3, %v6551_v11, %v6550_v3  ;;  %v1501_v57 = vsel %vm1444_vm3, %v6553_v36, %v6552_v31  ;;  %v2550_v16 = vrot.slane %v2454_v56, 2  ;;  %v808_v7 = vadd.f32 %v4926_v62, %v769_v35 }
 0x1c5   : > { %v1574_v45 = vadd.f32 %v1499_v25, %v4708_v54  ;;  %v2315_v37 = vsel %vm1208_vm2, %v2313_v28, %v2314_v52  ;;  %v6554_v61 = vrot.slane %v4807_v58, 1  ;;  %v1575_v26 = vadd.f32 %v1501_v57, %v4710_v34 }
 0x1c6   : > { %v6555_v43 = vrot.slane %v4724_v8, 2  ;;  %v6556_v40 = vrot.slane %v4721_v10, 2  ;;  %v2415_v46 = vadd.f32 %v2315_v37, %v2179_v51  ;;  %v2551_v56 = vsel %vm1444_vm3, %v2549_v49, %v2550_v16  ;;  %v6560_v10 = vld [vmem:[#allocation17_spill] sm:$0xff]  ;;  %v6562_v8 = vld [vmem:[#allocation26_spill] sm:$0xff] }
 0x1c7   : > { %v2317_v22 = vsel %vm1208_vm2, %v2314_v52, %v6554_v61  ;;  %v6557_v54 = vrot.slane %v4812_v48, 2  ;;  %v840_v3 = vmax.f32 %v808_v7, 0.0  ;;  %v6558_v58 = vrot.slane %v4593_v15, 2  ;;  %v6561_v48 = vld [vmem:[#allocation20_spill] sm:$0xff] }
 0x1c8   : > { %v2048_v20 = vsel %vm1444_vm3, %v6556_v40, %v6555_v43  ;;  %v2416_v47 = vadd.f32 %v2317_v22, %v2180_v29  ;;  %v6559_v11 = vmov %v6555_v43  ;;  %v756_v51 = vmul.f32 %v4909_v14, %v6560_v10 }
 0x1c9   : > { %v2553_v35 = vsel %vm1444_vm3, %v2550_v16, %v6557_v54  ;;  %v2050_v34 = vsel %vm1444_vm3, %v6559_v11, %v6558_v58  ;;  %v4950_v25 = vadd.f32 %v2048_v20, %v4726_v9  ;;  %v2651_v29 = vadd.f32 %v2551_v56, %v2415_v46 }
 0x1ca   : > { %v2652_v28 = vadd.f32 %v2553_v35, %v2416_v47  ;;  %v4955_v52 = vadd.f32 %v2050_v34, %v4728_v0  ;;  %v772_v31 = vmul.f32 %v4909_v14, %v6561_v48  ;;  %v872_v36 = vmin.f32 %v840_v3, 6.0 }
 0x1cb   : > { %v795_v15 = vadd.f32 %v4926_v62, %v756_v51  ;;  %v755_v57 = vmul.f32 %v4909_v14, %v6562_v8  ;;  %v1464_v9 = vsel %vm1444_vm3, %v1462_v27, %v1463_v24  ;;  %v2690_v49 = vmul.f32 %v4384_v23, %v2651_v29 }
 0x1cc   : > { %v2691_v16 = vmul.f32 %v4384_v23, %v2652_v28  ;;  %v4966_v7 = vadd.f32 %v4926_v62, %v772_v31  ;;  %v6563_v0 = vrot.slane %v4795_v63, 2  ;;  %v948_v61 = vrot.slane %v872_v36, 7 }
 0x1cd   : > { %v827_v22 = vmax.f32 %v795_v15, 0.0  ;;  %v4972_v43 = vadd.f32 %v4926_v62, %v755_v57  ;;  %v4974_v40 = vadd.f32 %v1464_v9, %v1324_v21  ;;  %v2011_v27 = vrot.slane %v4896_v41, 2 }
 0x1ce   : > { %v1466_v37 = vsel %vm1444_vm3, %v1463_v24, %v6563_v0  ;;  %v2729_v20 = vadd.f32 %v4401_v12, %v2690_v49  ;;  %v2730_v46 = vadd.f32 %v4401_v12, %v2691_v16  ;;  %v2012_v56 = vrot.slane %v4899_v19, 2  ;;  %v5116_v19 = vpop.f32.mrb[14].mxu1 }
 0x1cf   : > { %v4979_v47 = vadd.f32 %v1466_v37, %v1325_v30  ;;  %v6564_v63 = vrot.slane %v4774_v18, 7  ;;  %v1022_v54 = vsel %vm914_vm1, 0.0, %v948_v61  ;;  %v843_v35 = vmax.f32 %v4966_v7, 0.0  ;;  %v4990_v30 = vpop.f32.mrb[14].mxu0 }
 0x1d0   : > { %v2761_v21 = vmax.f32 %v2729_v20, 0.0  ;;  %v2762_v3 = vmax.f32 %v2730_v46, 0.0  ;;  %v4987_v58 = vmin.f32 %v827_v22, 6.0  ;;  %v826_v11 = vmax.f32 %v4972_v43, 0.0  ;;  %6565 = vst [vmem:[#allocation17_spill] sm:$0xff] %v4990_v30 }
 0x1d1   : > { %v950_v24 = vsel %vm914_vm1, %v948_v61, %v6564_v63  ;;  %v1073_v34 = vmul.f32 %v4006_v42, %v1022_v54  ;;  %v1150_v10 = vmul.f32 %v4004_v39, %v1022_v54  ;;  %v1610_v48 = vmul.f32 %v4044_v5, %v1022_v54 }
 0x1d2   : > { %v1074_v18 = vmul.f32 %v4006_v42, %v950_v24  ;;  %v1151_v51 = vmul.f32 %v4004_v39, %v950_v24  ;;  %v2793_v29 = vmin.f32 %v2761_v21, 6.0  ;;  %v2794_v28 = vmin.f32 %v2762_v3, 6.0 }
 0x1d3   : > { %v1611_v31 = vmul.f32 %v4044_v5, %v950_v24  ;;  %v1266_v36 = vrot.slane %v1150_v10, 1  ;;  %v4999_v8 = vmul.f32 %v4009_v44, %v1022_v54  ;;  %v5002_v57 = vmul.f32 %v4009_v44, %v950_v24 }
 0x1d4   : > { %v1267_v15 = vrot.slane %v1151_v51, 1  ;;  %2826 = vst.msk [vmem:[%s4454_s25 + $0x20] sm:$0xff] %vm2821_vm4, %v2793_v29  ;;  %2827 = vst.msk [vmem:[%s4454_s25 + $0x28] sm:$0xff] %vm2821_vm4, %v2794_v28  ;;  %v2872_v9 = vsel %vm2821_vm4, %v2793_v29, 0.0  ;;  %v2873_v49 = vsel %vm2821_vm4, %v2794_v28, 0.0  ;;  %v1642_v16 = vadd.f32 %v1610_v48, %v1574_v45 }
 0x1d5   : > { %v1643_v7 = vadd.f32 %v1611_v31, %v1575_v26  ;;  %v5010_v0 = vadd.f32 %v2873_v49, %v2872_v9  ;;  %v5013_v37 = vadd.f32 %v4747_v33, %v2872_v9  ;;  %v5016_v61 = vadd.f32 %v4750_v2, %v2873_v49  ;;  %v5026_v26 = vpop.f32.mrb[15].mxu0 }
 0x1d6   : > { %v1268_v22 = vsel %vm1208_vm2, %v1266_v36, %v1267_v15  ;;  %v6568_v43 = vrot.slane %v4833_v38, 1  ;;  %v1689_v63 = vmul.f32 %v4030_v55, %v1022_v54  ;;  %v1690_v45 = vmul.f32 %v4030_v55, %v950_v24  ;;  %6569 = vst [vmem:[#allocation53_spill] sm:$0xff] %v5026_v26 }
 0x1d7   : > { %6566 = vst [vmem:[#allocation20_spill] sm:$0xff] %v5010_v0  ;;  %6567 = vst [vmem:[#allocation26_spill] sm:$0xff] %v5016_v61  ;;  %v5022_v46 = vadd.f32 %v1268_v22, %v1073_v34  ;;  %v1502_v33 = vrot.slane %v4999_v8, 2  ;;  %v6446_v2 = vrot.slane %v5002_v57, 2  ;;  %v2164_v3 = vmul.f32 %v4068_v32, %v1022_v54 }
 0x1d8   : > { %v1270_v20 = vsel %vm1208_vm2, %v1267_v15, %v6568_v43  ;;  %v1807_v10 = vrot.slane %v1689_v63, 1  ;;  %v1808_v38 = vrot.slane %v1690_v45, 1  ;;  %v2165_v51 = vmul.f32 %v4068_v32, %v950_v24 }
 0x1d9   : > { %v5028_v21 = vadd.f32 %v1270_v20, %v1074_v18  ;;  %v2241_v34 = vmul.f32 %v4035_v60, %v1022_v54  ;;  %v5036_v29 = vmul.f32 %v4033_v59, %v1022_v54  ;;  %v5039_v28 = vmul.f32 %v4033_v59, %v950_v24 }
 0x1da   : > { %v2195_v18 = vadd.f32 %v2164_v3, %v4950_v25  ;;  %v2242_v48 = vmul.f32 %v4035_v60, %v950_v24  ;;  %v1809_v31 = vsel %vm1208_vm2, %v1807_v10, %v1808_v38  ;;  %v6570_v36 = vrot.slane %v4839_v13, 1 }
 0x1db   : > { %v2196_v8 = vadd.f32 %v2165_v51, %v4955_v52  ;;  %v2353_v9 = vrot.slane %v2241_v34, 1  ;;  %v5048_v49 = vadd.f32 %v1809_v31, %v1642_v16  ;;  %v2477_v20 = vmul.f32 %v4041_v1, %v1022_v54 }
 0x1dc   : > { %v1811_v15 = vsel %vm1208_vm2, %v1808_v38, %v6570_v36  ;;  %v2354_v43 = vrot.slane %v2242_v48, 1  ;;  %v2478_v25 = vmul.f32 %v4041_v1, %v950_v24  ;;  %v928_v63 = vrot.slane %v4987_v58, 7 }
 0x1dd   : > { %v5050_v22 = vadd.f32 %v1811_v15, %v1643_v7  ;;  %v5055_v45 = vmin.f32 %v843_v35, 6.0  ;;  %v858_v3 = vmin.f32 %v826_v11, 6.0  ;;  %v6571_v10 = vrot.slane %v4845_v4, 1 }
 0x1de   : > { %v2355_v13 = vsel %vm1208_vm2, %v2353_v9, %v2354_v43  ;;  %v2589_v16 = vrot.slane %v2477_v20, 2  ;;  %v2013_v54 = vsel %vm1444_vm3, %v2011_v27, %v2012_v56  ;;  %v2590_v38 = vrot.slane %v2478_v25, 2 }
 0x1df   : > { %v2357_v52 = vsel %vm1208_vm2, %v2354_v43, %v6571_v10  ;;  %v2431_v7 = vadd.f32 %v2355_v13, %v2195_v18  ;;  %v1031_v35 = vsel %vm914_vm1, %v928_v63, 0.0  ;;  %v6572_v34 = vrot.slane %v4848_v6, 2 }
 0x1e0   : > { %v2432_v24 = vadd.f32 %v2357_v52, %v2196_v8  ;;  %v5068_v58 = vmul.f32 %v4004_v39, %v1031_v35  ;;  %v5071_v11 = vmul.f32 %v4009_v44, %v1031_v35  ;;  %v5074_v4 = vmul.f32 %v4030_v55, %v1031_v35 }
 0x1e1   : > { %v5077_v51 = vmul.f32 %v4033_v59, %v1031_v35  ;;  %v2591_v27 = vsel %vm1444_vm3, %v2589_v16, %v2590_v38  ;;  %v2593_v18 = vsel %vm1444_vm3, %v2590_v38, %v6572_v34  ;;  %v5085_v48 = vmul.f32 %v4035_v60, %v1031_v35 }
 0x1e2   : > { %v2667_v36 = vadd.f32 %v2591_v27, %v2431_v7  ;;  %v2668_v15 = vadd.f32 %v2593_v18, %v2432_v24  ;;  %v5089_v8 = vmul.f32 %v4041_v1, %v1031_v35  ;;  %v1234_v9 = vrot.slane %v5068_v58, 1  ;;  %v6573_v7 = vld [vmem:[#allocation47_spill] sm:$0xff] }
 0x1e3   : > { %v6445_v10 = vrot.slane %v5055_v45, 7  ;;  %v927_v52 = vrot.slane %v858_v3, 7  ;;  %v6574_v24 = vrot.slane %v6573_v7, 2  ;;  %v2114_v35 = vadd.f32 %v2013_v54, %v4891_v53  ;;  %6575 = vst [vmem:[#allocation47_spill] sm:$0xff] %v5116_v19  ;;  %v6576_v7 = vld [vmem:[#allocation32_spill] sm:$0xff] }
 0x1e4   : > { %v2706_v25 = vmul.f32 %v4384_v23, %v2667_v36  ;;  %v2707_v13 = vmul.f32 %v4384_v23, %v2668_v15  ;;  %v5108_v58 = vsel %vm1444_vm3, %v1502_v33, %v6446_v2 }
 0x1e5   : > { %v2015_v38 = vsel %vm1444_vm3, %v2012_v56, %v6574_v24  ;;  %v1039_v3 = vsel %vm914_vm1, %v6445_v10, 0.0  ;;  %v929_v34 = vsel %vm914_vm1, %v927_v52, %v928_v63  ;;  %v771_v24 = vmul.f32 %v4909_v14, %v6576_v7 }
 0x1e6   : > { %v2745_v23 = vadd.f32 %v4401_v12, %v2706_v25  ;;  %v2746_v27 = vadd.f32 %v4401_v12, %v2707_v13  ;;  %v5119_v56 = vmul.f32 %v4004_v39, %v1039_v3  ;;  %v5122_v53 = vmul.f32 %v4009_v44, %v1039_v3 }
 0x1e7   : > { %v5125_v33 = vmul.f32 %v4030_v55, %v1039_v3  ;;  %v5128_v54 = vmul.f32 %v4033_v59, %v1039_v3  ;;  %v5131_v63 = vmul.f32 %v4035_v60, %v1039_v3  ;;  %v5134_v36 = vmul.f32 %v4041_v1, %v1039_v3 }
 0x1e8   : > { %v2777_v12 = vmax.f32 %v2745_v23, 0.0  ;;  %v2778_v18 = vmax.f32 %v2746_v27, 0.0  ;;  %v1015_v43 = vsel %vm914_vm1, 0.0, %v927_v52  ;;  %v1130_v15 = vmul.f32 %v4004_v39, %v929_v34 }
 0x1e9   : > { %v5151_v25 = vmul.f32 %v4009_v44, %v929_v34  ;;  %v5162_v7 = vmul.f32 %v4009_v44, %v1015_v43  ;;  %v1596_v52 = vmul.f32 %v4044_v5, %v1015_v43  ;;  %v1060_v10 = vmul.f32 %v4006_v42, %v929_v34 }
 0x1ea   : > { %v5141_v6 = vmin.f32 %v2777_v12, 6.0  ;;  %v5143_v23 = vmin.f32 %v2778_v18, 6.0  ;;  %v1129_v18 = vmul.f32 %v4004_v39, %v1015_v43  ;;  %v1232_v13 = vrot.slane %v1130_v15, 1 }
 0x1eb   : > { %v1597_v3 = vmul.f32 %v4044_v5, %v929_v34  ;;  %v1668_v27 = vmul.f32 %v4030_v55, %v1015_v43  ;;  %v1059_v16 = vmul.f32 %v4006_v42, %v1015_v43  ;;  %v1628_v31 = vadd.f32 %v1596_v52, %v4974_v40  ;;  %v6581_v52 = vld [vmem:[#allocation50_spill] sm:$0xff] }
 0x1ec   : > { %6577 = vst [vmem:[#allocation32_spill] sm:$0xff] %v5141_v6  ;;  %6578 = vst [vmem:[#allocation54_spill] sm:$0xff] %v5143_v23  ;;  %v1231_v41 = vrot.slane %v1129_v18, 1  ;;  %v1669_v12 = vmul.f32 %v4030_v55, %v929_v34  ;;  %v1235_v2 = vsel %vm1208_vm2, %v1232_v13, %v1234_v9  ;;  %v1468_v20 = vrot.slane %v5151_v25, 2 }
 0x1ed   : > { %2842 = vst.msk [vmem:[%s4454_s25 + $0xa0] sm:$0xff] %vm2821_vm4, %v5141_v6  ;;  %2843 = vst.msk [vmem:[%s4454_s25 + $0xa8] sm:$0xff] %vm2821_vm4, %v5143_v23  ;;  %v1629_v61 = vadd.f32 %v1597_v3, %v4979_v47  ;;  %v1772_v0 = vrot.slane %v1668_v27, 1  ;;  %v5175_v23 = vadd.f32 %v1235_v2, %v1060_v10  ;;  %v1467_v6 = vrot.slane %v5162_v7, 2 }
 0x1ee   : > { %v1233_v15 = vsel %vm1208_vm2, %v1231_v41, %v1232_v13  ;;  %v1773_v19 = vrot.slane %v1669_v12, 1  ;;  %v5181_v40 = vmul.f32 %v4033_v59, %v1015_v43  ;;  %v2115_v18 = vadd.f32 %v2015_v38, %v4893_v17 }
 0x1ef   : > { %v5178_v26 = vadd.f32 %v1233_v15, %v1059_v16  ;;  %v2150_v9 = vmul.f32 %v4068_v32, %v1015_v43  ;;  %v6579_v47 = vrot.slane %v5074_v4, 1  ;;  %v5190_v2 = vmul.f32 %v4033_v59, %v929_v34  ;;  %v5193_v16 = vpop.f32.mrb[15].mxu1 }
 0x1f0   : > { %v1774_v25 = vsel %vm1208_vm2, %v1772_v0, %v1773_v19  ;;  %v2151_v10 = vmul.f32 %v4068_v32, %v929_v34  ;;  %6580 = vst [vmem:[#allocation55_spill] sm:$0xff] %v5193_v16  ;;  %v2220_v38 = vmul.f32 %v4035_v60, %v1015_v43  ;;  %v2221_v0 = vmul.f32 %v4035_v60, %v929_v34 }
 0x1f1   : > { %v1776_v41 = vsel %vm1208_vm2, %v1773_v19, %v6579_v47  ;;  %v5195_v13 = vadd.f32 %v1774_v25, %v1628_v31  ;;  %v2181_v17 = vadd.f32 %v2150_v9, %v2114_v35  ;;  %v2456_v4 = vmul.f32 %v4041_v1, %v1015_v43 }
 0x1f2   : > { %v5197_v27 = vadd.f32 %v1776_v41, %v1629_v61  ;;  %v2182_v3 = vadd.f32 %v2151_v10, %v2115_v18  ;;  %v2457_v19 = vmul.f32 %v4041_v1, %v929_v34  ;;  %v2318_v12 = vrot.slane %v2220_v38, 1  ;;  %v6586_v10 = vld [vmem:[#allocation51_spill] sm:$0xff] }
 0x1f3   : > { %v810_v7 = vadd.f32 %v4926_v62, %v771_v24  ;;  %v6582_v15 = vrot.slane %v6581_v52, 2  ;;  %v6583_v31 = vrot.slane %v5002_v57, 2  ;;  %v1576_v35 = vadd.f32 %v5108_v58, %v5022_v46 }
 0x1f4   : > { %v2319_v9 = vrot.slane %v2221_v0, 1  ;;  %v2554_v18 = vrot.slane %v2456_v4, 2  ;;  %v2555_v25 = vrot.slane %v2457_v19, 2  ;;  %v6584_v34 = vrot.slane %v5039_v28, 2 }
 0x1f5   : > { %v1506_v61 = vsel %vm1444_vm3, %v6583_v31, %v6582_v15  ;;  %v842_v43 = vmax.f32 %v810_v7, 0.0  ;;  %v6585_v41 = vrot.slane %v5036_v29, 2  ;;  %v6587_v38 = vrot.slane %v6586_v10, 2  ;;  %v6589_v15 = vld [vmem:[#allocation34_spill] sm:$0xff] }
 0x1f6   : > { %v1577_v47 = vadd.f32 %v1506_v61, %v5028_v21  ;;  %v6588_v57 = vmov %v6584_v34  ;;  %v758_v46 = vmul.f32 %v4909_v14, %v6589_v15  ;;  %v2320_v58 = vsel %vm1208_vm2, %v2318_v12, %v2319_v9 }
 0x1f7   : > { %v2053_v24 = vsel %vm1444_vm3, %v6585_v41, %v6584_v34  ;;  %v2055_v52 = vsel %vm1444_vm3, %v6588_v57, %v6587_v38  ;;  %v6590_v21 = vrot.slane %v5085_v48, 1  ;;  %v2556_v4 = vsel %vm1444_vm3, %v2554_v18, %v2555_v25  ;;  %v5255_v38 = vld [vmem:[%s6420_s5] ss:$0 sm:$0xff] }
 0x1f8   : > { %v6591_v29 = vrot.slane %v5089_v8, 2  ;;  %v2417_v7 = vadd.f32 %v2320_v58, %v2181_v17  ;;  %v874_v28 = vmin.f32 %v842_v43, 6.0  ;;  %v2130_v61 = vadd.f32 %v2053_v24, %v5048_v49 }
 0x1f9   : > { %v2322_v0 = vsel %vm1208_vm2, %v2319_v9, %v6590_v21  ;;  %v2131_v12 = vadd.f32 %v2055_v52, %v5050_v22  ;;  %v5237_v48 = vadd.f32 %v4926_v62, %v758_v46  ;;  %v5240_v8 = vsel %vm1444_vm3, %v1467_v6, %v1468_v20 }
 0x1fa   : > { %v2558_v19 = vsel %vm1444_vm3, %v2555_v25, %v6591_v29  ;;  %v2418_v31 = vadd.f32 %v2322_v0, %v2182_v3  ;;  %v2653_v9 = vadd.f32 %v2556_v4, %v2417_v7  ;;  %v951_v10 = vrot.slane %v874_v28, 7  ;;  %v6592_v3 = vld [vmem:[#allocation40_spill] sm:$0xff]  ;;  %v6593_v25 = vld [vmem:[#allocation42_spill] sm:$0xff]  ;;  %v5270_v0 = vld [vmem:[%s6421_s6] ss:$0 sm:$0xff] }
 0x1fb   : > { %v829_v17 = vmax.f32 %v5237_v48, 0.0  ;;  %v774_v49 = vmul.f32 %v4909_v14, %v6592_v3  ;;  %v757_v43 = vmul.f32 %v4909_v14, %v6593_v25  ;;  %v6594_v24 = vrot.slane %v5071_v11, 2 }
 0x1fc   : > { %v2654_v18 = vadd.f32 %v2558_v19, %v2418_v31  ;;  %v2692_v6 = vmul.f32 %v5255_v38, %v2653_v9  ;;  %v6595_v52 = vrot.slane %v5055_v45, 7  ;;  %v1023_v46 = vsel %vm914_vm1, 0.0, %v951_v10 }
 0x1fd   : > { %v5250_v22 = vsel %vm1444_vm3, %v1468_v20, %v6594_v24  ;;  %v1075_v11 = vmul.f32 %v4006_v42, %v1023_v46  ;;  %v1153_v58 = vmul.f32 %v4004_v39, %v1023_v46  ;;  %v5275_v29 = vmul.f32 %v4009_v44, %v1023_v46 }
 0x1fe   : > { %v2693_v57 = vmul.f32 %v5255_v38, %v2654_v18  ;;  %v953_v15 = vsel %vm914_vm1, %v951_v10, %v6595_v52  ;;  %v2731_v4 = vadd.f32 %v5270_v0, %v2692_v6  ;;  %v1612_v28 = vmul.f32 %v4044_v5, %v1023_v46 }
 0x1ff   : > { %v1076_v20 = vmul.f32 %v4006_v42, %v953_v15  ;;  %v1154_v21 = vmul.f32 %v4004_v39, %v953_v15  ;;  %v5278_v19 = vmul.f32 %v4009_v44, %v953_v15  ;;  %v1271_v7 = vrot.slane %v1153_v58, 1 }
 0x200   : > { %v2732_v45 = vadd.f32 %v5270_v0, %v2693_v57  ;;  %v1613_v48 = vmul.f32 %v4044_v5, %v953_v15  ;;  %v2763_v9 = vmax.f32 %v2731_v4, 0.0  ;;  %v813_v10 = vadd.f32 %v4926_v62, %v774_v49 }
 0x201   : > { %v1272_v31 = vrot.slane %v1154_v21, 1  ;;  %v796_v3 = vadd.f32 %v4926_v62, %v757_v43  ;;  %v6596_v24 = vrot.slane %v5119_v56, 1  ;;  %v1644_v57 = vadd.f32 %v1612_v28, %v1576_v35 }
 0x202   : > { %v2764_v18 = vmax.f32 %v2732_v45, 0.0  ;;  %v1645_v52 = vadd.f32 %v1613_v48, %v1577_v47  ;;  %v2795_v58 = vmin.f32 %v2763_v9, 6.0  ;;  %v1692_v43 = vmul.f32 %v4030_v55, %v1023_v46 }
 0x203   : > { %v1273_v25 = vsel %vm1208_vm2, %v1271_v7, %v1272_v31  ;;  %v1275_v6 = vsel %vm1208_vm2, %v1272_v31, %v6596_v24  ;;  %v1693_v7 = vmul.f32 %v4030_v55, %v953_v15  ;;  %v2166_v35 = vmul.f32 %v4068_v32, %v1023_v46 }
 0x204   : > { %v5288_v21 = vmin.f32 %v2764_v18, 6.0  ;;  %v5290_v34 = vadd.f32 %v1273_v25, %v1075_v11  ;;  %v5292_v4 = vadd.f32 %v1275_v6, %v1076_v20  ;;  %2828 = vst.msk [vmem:[%s4454_s25 + $0x30] sm:$0xff] %vm2821_vm4, %v2795_v58  ;;  %v5304_v56 = vsel %vm2821_vm4, %v2795_v58, 0.0 }
 0x205   : > { %6598 = vst [vmem:[#allocation51_spill] sm:$0xff] %v5304_v56  ;;  %v2167_v47 = vmul.f32 %v4068_v32, %v953_v15  ;;  %v2244_v11 = vmul.f32 %v4035_v60, %v1023_v46  ;;  %v5311_v20 = vadd.f32 %v5013_v37, %v5304_v56  ;;  %v1812_v31 = vrot.slane %v1692_v43, 1 }
 0x206   : > { %6597 = vst [vmem:[#allocation50_spill] sm:$0xff] %v5288_v21  ;;  %2829 = vst.msk [vmem:[%s4454_s25 + $0x38] sm:$0xff] %vm2821_vm4, %v5288_v21  ;;  %v1813_v28 = vrot.slane %v1693_v7, 1  ;;  %v5314_v48 = vmul.f32 %v4033_v59, %v1023_v46  ;;  %v5317_v9 = vmul.f32 %v4033_v59, %v953_v15  ;;  %v2197_v18 = vadd.f32 %v2166_v35, %v2130_v61 }
 0x207   : > { %v2198_v25 = vadd.f32 %v2167_v47, %v2131_v12  ;;  %v2245_v24 = vmul.f32 %v4035_v60, %v953_v15  ;;  %v6599_v58 = vrot.slane %v5125_v33, 1  ;;  %v2358_v37 = vrot.slane %v2244_v11, 1 }
 0x208   : > { %v1814_v6 = vsel %vm1208_vm2, %v1812_v31, %v1813_v28  ;;  %v2480_v43 = vmul.f32 %v4041_v1, %v1023_v46  ;;  %v2481_v56 = vmul.f32 %v4041_v1, %v953_v15  ;;  %v861_v12 = vmin.f32 %v829_v17, 6.0 }
 0x209   : > { %v1816_v45 = vsel %vm1208_vm2, %v1813_v28, %v6599_v58  ;;  %v5325_v7 = vadd.f32 %v1814_v6, %v1644_v57  ;;  %v2359_v41 = vrot.slane %v2245_v24, 1  ;;  %v845_v35 = vmax.f32 %v813_v10, 0.0 }
 0x20a   : > { %v5327_v49 = vadd.f32 %v1816_v45, %v1645_v52  ;;  %v2594_v61 = vrot.slane %v2480_v43, 2  ;;  %v828_v47 = vmax.f32 %v796_v3, 0.0  ;;  %v6600_v33 = vrot.slane %v5131_v63, 1 }
 0x20b   : > { %v2360_v31 = vsel %vm1208_vm2, %v2358_v37, %v2359_v41  ;;  %v2595_v11 = vrot.slane %v2481_v56, 2  ;;  %v5336_v46 = vadd.f32 %v5240_v8, %v5178_v26  ;;  %v931_v45 = vrot.slane %v861_v12, 7 }
 0x20c   : > { %v2362_v28 = vsel %vm1208_vm2, %v2359_v41, %v6600_v33  ;;  %v2433_v57 = vadd.f32 %v2360_v31, %v2197_v18  ;;  %v5338_v24 = vmin.f32 %v845_v35, 6.0  ;;  %v6601_v15 = vrot.slane %v5134_v36, 2 }
 0x20d   : > { %v2434_v52 = vadd.f32 %v2362_v28, %v2198_v25  ;;  %v2596_v17 = vsel %vm1444_vm3, %v2594_v61, %v2595_v11  ;;  %v860_v3 = vmin.f32 %v828_v47, 6.0  ;;  %v1563_v63 = vadd.f32 %v5250_v22, %v5175_v23 }
 0x20e   : > { %v2598_v10 = vsel %vm1444_vm3, %v2595_v11, %v6601_v15  ;;  %v2669_v41 = vadd.f32 %v2596_v17, %v2433_v57  ;;  %v1032_v26 = vsel %vm914_vm1, %v931_v45, 0.0  ;;  %v6451_v8 = vrot.slane %v5338_v24, 7 }
 0x20f   : > { %v2670_v56 = vadd.f32 %v2598_v10, %v2434_v52  ;;  %v1134_v18 = vmul.f32 %v4004_v39, %v1032_v26  ;;  %v5350_v25 = vmul.f32 %v4009_v44, %v1032_v26  ;;  %v5353_v6 = vmul.f32 %v4030_v55, %v1032_v26 }
 0x210   : > { %v5356_v36 = vmul.f32 %v4033_v59, %v1032_v26  ;;  %v2708_v22 = vmul.f32 %v5255_v38, %v2669_v41  ;;  %v5364_v12 = vmul.f32 %v4035_v60, %v1032_v26  ;;  %v5367_v35 = vmul.f32 %v4041_v1, %v1032_v26 }
 0x211   : > { %v2709_v37 = vmul.f32 %v5255_v38, %v2670_v56  ;;  %v1239_v43 = vrot.slane %v1134_v18, 1  ;;  %v1780_v33 = vrot.slane %v5353_v6, 1  ;;  %v1040_v11 = vsel %vm914_vm1, %v6451_v8, 0.0 }
 0x212   : > { %v2747_v47 = vadd.f32 %v5270_v0, %v2708_v22  ;;  %v930_v57 = vrot.slane %v860_v3, 7  ;;  %v6602_v52 = vrot.slane %v5190_v2, 2  ;;  %v6603_v17 = vrot.slane %v5181_v40, 2 }
 0x213   : > { %v2748_v31 = vadd.f32 %v5270_v0, %v2709_v37  ;;  %v6604_v10 = vrot.slane %v5077_v51, 2  ;;  %v5387_v6 = vmul.f32 %v4004_v39, %v1040_v11  ;;  %v5390_v3 = vmul.f32 %v4009_v44, %v1040_v11 }
 0x214   : > { %v2018_v15 = vsel %vm1444_vm3, %v6603_v17, %v6602_v52  ;;  %v6605_v41 = vmov %v6602_v52  ;;  %v2779_v26 = vmax.f32 %v2747_v47, 0.0  ;;  %v5395_v51 = vmul.f32 %v4030_v55, %v1040_v11 }
 0x215   : > { %v2020_v56 = vsel %vm1444_vm3, %v6605_v41, %v6604_v10  ;;  %v2780_v18 = vmax.f32 %v2748_v31, 0.0  ;;  %6606 = vst [vmem:[#allocation34_spill] sm:$0xff] %v5387_v6  ;;  %6607 = vst [vmem:[#allocation40_spill] sm:$0xff] %v5390_v3  ;;  %v5398_v2 = vmul.f32 %v4033_v59, %v1040_v11  ;;  %v5405_v31 = vmul.f32 %v4035_v60, %v1040_v11 }
 0x216   : > { %v5400_v37 = vmin.f32 %v2779_v26, 6.0  ;;  %v5408_v52 = vmul.f32 %v4041_v1, %v1040_v11  ;;  %v932_v26 = vsel %vm914_vm1, %v930_v57, %v931_v45  ;;  %v2116_v11 = vadd.f32 %v2018_v15, %v5195_v13 }
 0x217   : > { %v5402_v47 = vmin.f32 %v2780_v18, 6.0  ;;  %v1016_v18 = vsel %vm914_vm1, 0.0, %v930_v57  ;;  %v2117_v17 = vadd.f32 %v2020_v56, %v5197_v27  ;;  %v1062_v41 = vmul.f32 %v4006_v42, %v932_v26 }
 0x218   : > { %6608 = vst [vmem:[#allocation42_spill] sm:$0xff] %v5400_v37  ;;  %2844 = vst.msk [vmem:[%s4454_s25 + $0xb0] sm:$0xff] %vm2821_vm4, %v5400_v37  ;;  %v1061_v10 = vmul.f32 %v4006_v42, %v1016_v18  ;;  %v1132_v28 = vmul.f32 %v4004_v39, %v1016_v18  ;;  %v1133_v8 = vmul.f32 %v4004_v39, %v932_v26 }
 0x219   : > { %6609 = vst [vmem:[#allocation56_spill] sm:$0xff] %v5402_v47  ;;  %2845 = vst.msk [vmem:[%s4454_s25 + $0xb8] sm:$0xff] %vm2821_vm4, %v5402_v47  ;;  %v5429_v61 = vmul.f32 %v4009_v44, %v1016_v18  ;;  %v5432_v22 = vmul.f32 %v4009_v44, %v932_v26  ;;  %v1598_v45 = vmul.f32 %v4044_v5, %v1016_v18 }
 0x21a   : > { %v1599_v13 = vmul.f32 %v4044_v5, %v932_v26  ;;  %v1236_v57 = vrot.slane %v1132_v28, 1  ;;  %v1237_v27 = vrot.slane %v1133_v8, 1  ;;  %v1671_v15 = vmul.f32 %v4030_v55, %v1016_v18 }
 0x21b   : > { %v1672_v56 = vmul.f32 %v4030_v55, %v932_v26  ;;  %v1472_v58 = vrot.slane %v5429_v61, 2  ;;  %v1473_v23 = vrot.slane %v5432_v22, 2  ;;  %v1630_v40 = vadd.f32 %v1598_v45, %v5336_v46 }
 0x21c   : > { %v1631_v21 = vadd.f32 %v1599_v13, %v1563_v63  ;;  %v1238_v47 = vsel %vm1208_vm2, %v1236_v57, %v1237_v27  ;;  %v1240_v37 = vsel %vm1208_vm2, %v1237_v27, %v1239_v43  ;;  %v1777_v3 = vrot.slane %v1671_v15, 1  ;;  %v6610_v57 = vld [vmem:[#allocation43_spill] sm:$0xff] }
 0x21d   : > { %v1778_v6 = vrot.slane %v1672_v56, 1  ;;  %v1328_v16 = vadd.f32 %v1238_v47, %v1061_v10  ;;  %v1329_v28 = vadd.f32 %v1240_v37, %v1062_v41  ;;  %v5444_v8 = vmul.f32 %v4033_v59, %v1016_v18 }
 0x21e   : > { %v5447_v30 = vmul.f32 %v4033_v59, %v932_v26  ;;  %v2152_v46 = vmul.f32 %v4068_v32, %v1016_v18  ;;  %v2153_v63 = vmul.f32 %v4068_v32, %v932_v26  ;;  %v2223_v13 = vmul.f32 %v4035_v60, %v1016_v18 }
 0x21f   : > { %v1779_v61 = vsel %vm1208_vm2, %v1777_v3, %v1778_v6  ;;  %v1781_v22 = vsel %vm1208_vm2, %v1778_v6, %v1780_v33  ;;  %v2021_v37 = vrot.slane %v5444_v8, 2  ;;  %v2224_v3 = vmul.f32 %v4035_v60, %v932_v26 }
 0x220   : > { %v5453_v45 = vadd.f32 %v1779_v61, %v1630_v40  ;;  %v5455_v43 = vadd.f32 %v1781_v22, %v1631_v21  ;;  %v2022_v47 = vrot.slane %v5447_v30, 2  ;;  %v2183_v10 = vadd.f32 %v2152_v46, %v2116_v11 }
 0x221   : > { %v2184_v41 = vadd.f32 %v2153_v63, %v2117_v17  ;;  %v2459_v33 = vmul.f32 %v4041_v1, %v1016_v18  ;;  %v2460_v6 = vmul.f32 %v4041_v1, %v932_v26  ;;  %v773_v40 = vmul.f32 %v4909_v14, %v6610_v57 }
 0x222   : > { %v6611_v21 = vrot.slane %v5278_v19, 2  ;;  %v6612_v27 = vrot.slane %v5275_v29, 2  ;;  %v2323_v56 = vrot.slane %v2223_v13, 1  ;;  %v2324_v11 = vrot.slane %v2224_v3, 1 }
 0x223   : > { %v6613_v17 = vrot.slane %v5122_v53, 2  ;;  %v2559_v26 = vrot.slane %v2459_v33, 2  ;;  %v2560_v22 = vrot.slane %v2460_v6, 2  ;;  %v812_v46 = vadd.f32 %v4926_v62, %v773_v40 }
 0x224   : > { %v1509_v15 = vsel %vm1444_vm3, %v6612_v27, %v6611_v21  ;;  %v6614_v8 = vmov %v6611_v21  ;;  %v2325_v29 = vsel %vm1208_vm2, %v2323_v56, %v2324_v11  ;;  %v6615_v57 = vrot.slane %v5364_v12, 1 }
 0x225   : > { %v1511_v61 = vsel %vm1444_vm3, %v6614_v8, %v6613_v17  ;;  %v1578_v18 = vadd.f32 %v1509_v15, %v5290_v34  ;;  %v6616_v53 = vrot.slane %v5317_v9, 2  ;;  %v6617_v19 = vrot.slane %v5314_v48, 2  ;;  %v6622_v8 = vld [vmem:[#allocation46_spill] sm:$0xff] }
 0x226   : > { %v1579_v63 = vadd.f32 %v1511_v61, %v5292_v4  ;;  %v2327_v13 = vsel %vm1208_vm2, %v2324_v11, %v6615_v57  ;;  %v6618_v34 = vrot.slane %v5128_v54, 2  ;;  %v2419_v40 = vadd.f32 %v2325_v29, %v2183_v10  ;;  %v6621_v11 = vld [vmem:[#allocation44_spill] sm:$0xff] }
 0x227   : > { %v2058_v3 = vsel %vm1444_vm3, %v6617_v19, %v6616_v53  ;;  %v6619_v33 = vmov %v6616_v53  ;;  %v2420_v4 = vadd.f32 %v2327_v13, %v2184_v41  ;;  %v2561_v21 = vsel %vm1444_vm3, %v2559_v26, %v2560_v22  ;;  %v6623_v41 = vld [vmem:[#allocation49_spill] sm:$0xff] }
 0x228   : > { %v2060_v6 = vsel %vm1444_vm3, %v6619_v33, %v6618_v34  ;;  %v6620_v12 = vrot.slane %v5367_v35, 2  ;;  %v844_v15 = vmax.f32 %v812_v46, 0.0  ;;  %v2132_v56 = vadd.f32 %v2058_v3, %v5325_v7 }
 0x229   : > { %v2133_v48 = vadd.f32 %v2060_v6, %v5327_v49  ;;  %v760_v54 = vmul.f32 %v4909_v14, %v6621_v11  ;;  %v2655_v17 = vadd.f32 %v2561_v21, %v2419_v40  ;;  %v776_v10 = vmul.f32 %v4909_v14, %v6622_v8 }
 0x22a   : > { %v2563_v27 = vsel %vm1444_vm3, %v2560_v22, %v6620_v12  ;;  %v759_v61 = vmul.f32 %v4909_v14, %v6623_v41  ;;  %v876_v26 = vmin.f32 %v844_v15, 6.0  ;;  %v1474_v22 = vsel %vm1444_vm3, %v1472_v58, %v1473_v23 }
 0x22b   : > { %v2656_v9 = vadd.f32 %v2563_v27, %v2420_v4  ;;  %v799_v35 = vadd.f32 %v4926_v62, %v760_v54  ;;  %v6624_v7 = vrot.slane %v5350_v25, 2  ;;  %v2694_v46 = vmul.f32 %v5255_v38, %v2655_v17 }
 0x22c   : > { %v5512_v57 = vadd.f32 %v4926_v62, %v776_v10  ;;  %v5515_v13 = vadd.f32 %v4926_v62, %v759_v61  ;;  %v954_v14 = vrot.slane %v876_v26, 7  ;;  %v5517_v19 = vadd.f32 %v1474_v22, %v1328_v16 }
 0x22d   : > { %v1476_v49 = vsel %vm1444_vm3, %v1473_v23, %v6624_v7  ;;  %v2695_v29 = vmul.f32 %v5255_v38, %v2656_v9  ;;  %v831_v53 = vmax.f32 %v799_v35, 0.0  ;;  %v2366_v25 = vrot.slane %v5405_v31, 1 }
 0x22e   : > { %v5519_v3 = vadd.f32 %v1476_v49, %v1329_v28  ;;  %v2602_v58 = vrot.slane %v5408_v52, 2  ;;  %v2733_v23 = vadd.f32 %v5270_v0, %v2694_v46  ;;  %v6625_v33 = vrot.slane %v5338_v24, 7 }
 0x22f   : > { %v2734_v34 = vadd.f32 %v5270_v0, %v2695_v29  ;;  %v1024_v62 = vsel %vm914_vm1, 0.0, %v954_v14  ;;  %v847_v40 = vmax.f32 %v5512_v57, 0.0  ;;  %v5533_v16 = vsel %vm1444_vm3, %v2021_v37, %v2022_v47 }
 0x230   : > { %v956_v6 = vsel %vm914_vm1, %v954_v14, %v6625_v33  ;;  %v2765_v31 = vmax.f32 %v2733_v23, 0.0  ;;  %v5535_v4 = vmin.f32 %v831_v53, 6.0  ;;  %v830_v21 = vmax.f32 %v5515_v13, 0.0 }
 0x231   : > { %v2766_v28 = vmax.f32 %v2734_v34, 0.0  ;;  %v5539_v24 = vmul.f32 %v4004_v39, %v1024_v62  ;;  %v5542_v12 = vmul.f32 %v4004_v39, %v956_v6  ;;  %v5545_v27 = vmul.f32 %v4009_v44, %v1024_v62 }
 0x232   : > { %v5548_v37 = vmul.f32 %v4009_v44, %v956_v6  ;;  %v2797_v15 = vmin.f32 %v2765_v31, 6.0  ;;  %v1614_v54 = vmul.f32 %v4044_v5, %v1024_v62  ;;  %v1615_v17 = vmul.f32 %v4044_v5, %v956_v6 }
 0x233   : > { %v5550_v11 = vmin.f32 %v2766_v28, 6.0  ;;  %v5555_v9 = vmul.f32 %v4006_v42, %v1024_v62  ;;  %v5558_v8 = vmul.f32 %v4006_v42, %v956_v6  ;;  %v1695_v22 = vmul.f32 %v4030_v55, %v1024_v62 }
 0x234   : > { %2830 = vst.msk [vmem:[%s4454_s25 + $0x40] sm:$0xff] %vm2821_vm4, %v2797_v15  ;;  %v5568_v61 = vsel %vm2821_vm4, %v2797_v15, 0.0  ;;  %v1646_v26 = vadd.f32 %v1614_v54, %v1578_v18  ;;  %v1647_v35 = vadd.f32 %v1615_v17, %v1579_v63  ;;  %v1696_v29 = vmul.f32 %v4030_v55, %v956_v6 }
 0x235   : > { %6626 = vst [vmem:[#allocation43_spill] sm:$0xff] %v5550_v11  ;;  %2831 = vst.msk [vmem:[%s4454_s25 + $0x48] sm:$0xff] %vm2821_vm4, %v5550_v11  ;;  %v5573_v7 = vadd.f32 %v5311_v20, %v5568_v61  ;;  %v1817_v57 = vrot.slane %v1695_v22, 1  ;;  %v2168_v13 = vmul.f32 %v4068_v32, %v1024_v62  ;;  %v2169_v14 = vmul.f32 %v4068_v32, %v956_v6 }
 0x236   : > { %6627 = vst [vmem:[#allocation44_spill] sm:$0xff] %v5568_v61  ;;  %v2247_v18 = vmul.f32 %v4035_v60, %v1024_v62  ;;  %v1818_v63 = vrot.slane %v1696_v29, 1  ;;  %v5582_v53 = vmul.f32 %v4033_v59, %v1024_v62  ;;  %v5585_v20 = vmul.f32 %v4033_v59, %v956_v6 }
 0x237   : > { %v2248_v23 = vmul.f32 %v4035_v60, %v956_v6  ;;  %v2199_v34 = vadd.f32 %v2168_v13, %v2132_v56  ;;  %v2200_v33 = vadd.f32 %v2169_v14, %v2133_v48  ;;  %v2483_v28 = vmul.f32 %v4041_v1, %v1024_v62 }
 0x238   : > { %v2363_v31 = vrot.slane %v2247_v18, 1  ;;  %v1819_v15 = vsel %vm1208_vm2, %v1817_v57, %v1818_v63  ;;  %v6628_v54 = vrot.slane %v5395_v51, 1  ;;  %v2484_v29 = vmul.f32 %v4041_v1, %v956_v6 }
 0x239   : > { %v2364_v22 = vrot.slane %v2248_v23, 1  ;;  %v5594_v49 = vadd.f32 %v1819_v15, %v1646_v26  ;;  %v2599_v10 = vrot.slane %v2483_v28, 2  ;;  %v934_v56 = vrot.slane %v5535_v4, 7 }
 0x23a   : > { %v1821_v17 = vsel %vm1208_vm2, %v1818_v63, %v6628_v54  ;;  %v2600_v13 = vrot.slane %v2484_v29, 2  ;;  %v5601_v57 = vmin.f32 %v847_v40, 6.0  ;;  %v862_v63 = vmin.f32 %v830_v21, 6.0 }
 0x23b   : > { %v5596_v46 = vadd.f32 %v1821_v17, %v1647_v35  ;;  %v2365_v48 = vsel %vm1208_vm2, %v2363_v31, %v2364_v22  ;;  %v2367_v62 = vsel %vm1208_vm2, %v2364_v22, %v2366_v25  ;;  %v1033_v18 = vsel %vm914_vm1, %v934_v56, 0.0 }
 0x23c   : > { %v2435_v51 = vadd.f32 %v2365_v48, %v2199_v34  ;;  %v2436_v14 = vadd.f32 %v2367_v62, %v2200_v33  ;;  %v2601_v6 = vsel %vm1444_vm3, %v2599_v10, %v2600_v13  ;;  %v2603_v26 = vsel %vm1444_vm3, %v2600_v13, %v2602_v58 }
 0x23d   : > { %v1137_v4 = vmul.f32 %v4004_v39, %v1033_v18  ;;  %v5610_v35 = vmul.f32 %v4009_v44, %v1033_v18  ;;  %v1676_v40 = vmul.f32 %v4030_v55, %v1033_v18  ;;  %v5614_v34 = vmul.f32 %v4033_v59, %v1033_v18 }
 0x23e   : > { %v2671_v25 = vadd.f32 %v2601_v6, %v2435_v51  ;;  %v2672_v23 = vadd.f32 %v2603_v26, %v2436_v14  ;;  %v5619_v52 = vmul.f32 %v4035_v60, %v1033_v18  ;;  %v5622_v58 = vmul.f32 %v4041_v1, %v1033_v18 }
 0x23f   : > { %v1244_v28 = vrot.slane %v1137_v4, 1  ;;  %v1785_v54 = vrot.slane %v1676_v40, 1  ;;  %v6457_v22 = vrot.slane %v5601_v57, 7  ;;  %v933_v29 = vrot.slane %v862_v63, 7 }
 0x240   : > { %v2710_v33 = vmul.f32 %v5255_v38, %v2671_v25  ;;  %v2711_v31 = vmul.f32 %v5255_v38, %v2672_v23  ;;  %v6629_v13 = vrot.slane %v5356_v36, 2  ;;  %v2118_v14 = vadd.f32 %v5533_v16, %v5453_v45 }
 0x241   : > { %v1041_v18 = vsel %vm914_vm1, %v6457_v22, 0.0  ;;  %v935_v6 = vsel %vm914_vm1, %v933_v29, %v934_v56  ;;  %v1017_v63 = vsel %vm914_vm1, 0.0, %v933_v29 }
 0x242   : > { %v2025_v51 = vsel %vm1444_vm3, %v2022_v47, %v6629_v13  ;;  %v5645_v4 = vmul.f32 %v4004_v39, %v1041_v18  ;;  %v5648_v30 = vmul.f32 %v4009_v44, %v1041_v18  ;;  %v5651_v36 = vmul.f32 %v4030_v55, %v1041_v18 }
 0x243   : > { %v2119_v26 = vadd.f32 %v2025_v51, %v5455_v43  ;;  %v5654_v45 = vmul.f32 %v4033_v59, %v1041_v18  ;;  %v5657_v47 = vadd.f32 %v5270_v0, %v2710_v33  ;;  %v5660_v16 = vadd.f32 %v5270_v0, %v2711_v31 }
 0x244   : > { %6630 = vst [vmem:[#allocation46_spill] sm:$0xff] %v5651_v36  ;;  %v5663_v43 = vmul.f32 %v4035_v60, %v1041_v18  ;;  %v5666_v56 = vmul.f32 %v4041_v1, %v1041_v18  ;;  %v1063_v40 = vmul.f32 %v4006_v42, %v1017_v63  ;;  %v1064_v29 = vmul.f32 %v4006_v42, %v935_v6 }
 0x245   : > { %6631 = vst [vmem:[#allocation49_spill] sm:$0xff] %v5654_v45  ;;  %6632 = vst [vmem:[#allocation57_spill] sm:$0xff] %v5657_v47  ;;  %v1135_v31 = vmul.f32 %v4004_v39, %v1017_v63  ;;  %v1136_v51 = vmul.f32 %v4004_v39, %v935_v6  ;;  %v1371_v41 = vmul.f32 %v4009_v44, %v1017_v63 }
 0x246   : > { %6633 = vst [vmem:[#allocation58_spill] sm:$0xff] %v5660_v16  ;;  %v1372_v18 = vmul.f32 %v4009_v44, %v935_v6  ;;  %v1600_v25 = vmul.f32 %v4044_v5, %v1017_v63  ;;  %v1601_v23 = vmul.f32 %v4044_v5, %v935_v6  ;;  %v1674_v15 = vmul.f32 %v4030_v55, %v1017_v63 }
 0x247   : > { %v1241_v22 = vrot.slane %v1135_v31, 1  ;;  %v1242_v17 = vrot.slane %v1136_v51, 1  ;;  %v1675_v33 = vmul.f32 %v4030_v55, %v935_v6  ;;  %v1477_v62 = vrot.slane %v1371_v41, 2 }
 0x248   : > { %v1478_v13 = vrot.slane %v1372_v18, 2  ;;  %v1632_v48 = vadd.f32 %v1600_v25, %v5517_v19  ;;  %v1633_v21 = vadd.f32 %v1601_v23, %v5519_v3  ;;  %v1782_v11 = vrot.slane %v1674_v15, 1 }
 0x249   : > { %v1243_v10 = vsel %vm1208_vm2, %v1241_v22, %v1242_v17  ;;  %v1245_v61 = vsel %vm1208_vm2, %v1242_v17, %v1244_v28  ;;  %v1783_v16 = vrot.slane %v1675_v33, 1  ;;  %v1918_v31 = vmul.f32 %v4033_v59, %v1017_v63 }
 0x24a   : > { %v1330_v47 = vadd.f32 %v1243_v10, %v1063_v40  ;;  %v1331_v45 = vadd.f32 %v1245_v61, %v1064_v29  ;;  %v1919_v51 = vmul.f32 %v4033_v59, %v935_v6  ;;  %v2154_v19 = vmul.f32 %v4068_v32, %v1017_v63 }
 0x24b   : > { %v1784_v36 = vsel %vm1208_vm2, %v1782_v11, %v1783_v16  ;;  %v1786_v41 = vsel %vm1208_vm2, %v1783_v16, %v1785_v54  ;;  %v2155_v3 = vmul.f32 %v4068_v32, %v935_v6  ;;  %v2026_v23 = vrot.slane %v1918_v31, 2  ;;  %v5699_v54 = vld [vmem:[%s6417_s2] ss:$0 sm:$0xff] }
 0x24c   : > { %v1876_v25 = vadd.f32 %v1784_v36, %v1632_v48  ;;  %v1877_v22 = vadd.f32 %v1786_v41, %v1633_v21  ;;  %v2027_v28 = vrot.slane %v1919_v51, 2  ;;  %v2185_v15 = vadd.f32 %v2154_v19, %v2118_v14  ;;  %v6639_v19 = vld [vmem:[#allocation17_spill] sm:$0xff] }
 0x24d   : > { %v2186_v17 = vadd.f32 %v2155_v3, %v2119_v26  ;;  %v2226_v61 = vmul.f32 %v4035_v60, %v1017_v63  ;;  %v2227_v10 = vmul.f32 %v4035_v60, %v935_v6  ;;  %v2462_v40 = vmul.f32 %v4041_v1, %v1017_v63  ;;  %v6640_v3 = vld [vmem:[#allocation53_spill] sm:$0xff] }
 0x24e   : > { %v2463_v11 = vmul.f32 %v4041_v1, %v935_v6  ;;  %v775_v21 = vmul.f32 %v5699_v54, %v4889_v50  ;;  %v6634_v48 = vrot.slane %v5585_v20, 2  ;;  %v6635_v14 = vrot.slane %v5582_v53, 2  ;;  %v5717_v50 = vld [vmem:[%s6418_s3] ss:$0 sm:$0xff] }
 0x24f   : > { %v2328_v36 = vrot.slane %v2226_v61, 1  ;;  %v2329_v16 = vrot.slane %v2227_v10, 1  ;;  %v6636_v63 = vrot.slane %v5398_v2, 2  ;;  %v2564_v18 = vrot.slane %v2462_v40, 2 }
 0x250   : > { %v2063_v26 = vsel %vm1444_vm3, %v6635_v14, %v6634_v48  ;;  %v6637_v6 = vmov %v6634_v48  ;;  %v2565_v31 = vrot.slane %v2463_v11, 2  ;;  %v814_v53 = vadd.f32 %v5717_v50, %v775_v21 }
 0x251   : > { %v2065_v29 = vsel %vm1444_vm3, %v6637_v6, %v6636_v63  ;;  %v2134_v33 = vadd.f32 %v2063_v26, %v5594_v49  ;;  %v2330_v41 = vsel %vm1208_vm2, %v2328_v36, %v2329_v16  ;;  %v6638_v2 = vrot.slane %v5619_v52, 1 }
 0x252   : > { %v2135_v51 = vadd.f32 %v2065_v29, %v5596_v46  ;;  %v762_v49 = vmul.f32 %v5699_v54, %v6639_v19  ;;  %v761_v61 = vmul.f32 %v5699_v54, %v6640_v3  ;;  %v2421_v10 = vadd.f32 %v2330_v41, %v2185_v15 }
 0x253   : > { %v2332_v20 = vsel %vm1208_vm2, %v2329_v16, %v6638_v2  ;;  %v2566_v11 = vsel %vm1444_vm3, %v2564_v18, %v2565_v31  ;;  %v6641_v21 = vrot.slane %v5622_v58, 2  ;;  %v846_v48 = vmax.f32 %v814_v53, 0.0 }
 0x254   : > { %v2422_v40 = vadd.f32 %v2332_v20, %v2186_v17  ;;  %v801_v14 = vadd.f32 %v5717_v50, %v762_v49  ;;  %v800_v52 = vadd.f32 %v5717_v50, %v761_v61  ;;  %v1479_v26 = vsel %vm1444_vm3, %v1477_v62, %v1478_v13 }
 0x255   : > { %v2568_v46 = vsel %vm1444_vm3, %v2565_v31, %v6641_v21  ;;  %v2657_v36 = vadd.f32 %v2566_v11, %v2421_v10  ;;  %v6642_v63 = vrot.slane %v5610_v35, 2  ;;  %v5739_v17 = vadd.f32 %v1479_v26, %v1330_v47 }
 0x256   : > { %v2658_v16 = vadd.f32 %v2568_v46, %v2422_v40  ;;  %v878_v6 = vmin.f32 %v846_v48, 6.0  ;;  %v833_v29 = vmax.f32 %v801_v14, 0.0  ;;  %v832_v58 = vmax.f32 %v800_v52, 0.0 }
 0x257   : > { %v1481_v15 = vsel %vm1444_vm3, %v1478_v13, %v6642_v63  ;;  %v2371_v31 = vrot.slane %v5663_v43, 1  ;;  %v2696_v53 = vmul.f32 %v5255_v38, %v2657_v36  ;;  %v2028_v41 = vsel %vm1444_vm3, %v2026_v23, %v2027_v28 }
 0x258   : > { %v5741_v18 = vadd.f32 %v1481_v15, %v1331_v45  ;;  %v6643_v62 = vrot.slane %v5614_v34, 2  ;;  %v957_v35 = vrot.slane %v878_v6, 7  ;;  %v865_v20 = vmin.f32 %v833_v29, 6.0 }
 0x259   : > { %v864_v13 = vmin.f32 %v832_v58, 6.0  ;;  %v5749_v47 = vadd.f32 %v2028_v41, %v1876_v25  ;;  %v2607_v19 = vrot.slane %v5666_v56, 2  ;;  %v5753_v45 = vmul.f32 %v5255_v38, %v2658_v16  ;;  %v6646_v25 = vld [vmem:[#allocation47_spill] sm:$0xff] }
 0x25a   : > { %v2030_v2 = vsel %vm1444_vm3, %v2027_v28, %v6643_v62  ;;  %v2735_v43 = vadd.f32 %v5270_v0, %v2696_v53  ;;  %v6645_v23 = vrot.slane %v5601_v57, 7  ;;  %v5764_v28 = vsel %vm914_vm1, 0.0, %v957_v35 }
 0x25b   : > { %6644 = vst [vmem:[#allocation17_spill] sm:$0xff] %v5753_v45  ;;  %v5756_v49 = vadd.f32 %v2030_v2, %v1877_v22  ;;  %v937_v3 = vrot.slane %v865_v20, 7  ;;  %v778_v61 = vmul.f32 %v5699_v54, %v6646_v25  ;;  %v5770_v10 = vmul.f32 %v4004_v39, %v5764_v28 }
 0x25c   : > { %v5761_v34 = vsel %vm914_vm1, %v957_v35, %v6645_v23  ;;  %v2767_v56 = vmax.f32 %v2735_v43, 0.0  ;;  %v2170_v22 = vmul.f32 %v4068_v32, %v5764_v28  ;;  %v936_v57 = vrot.slane %v864_v13, 7 }
 0x25d   : > { %v2171_v40 = vmul.f32 %v4068_v32, %v5761_v34  ;;  %v2250_v11 = vmul.f32 %v4035_v60, %v5764_v28  ;;  %v2251_v21 = vmul.f32 %v4035_v60, %v5761_v34  ;;  %v2486_v46 = vmul.f32 %v4041_v1, %v5764_v28 }
 0x25e   : > { %v2799_v48 = vmin.f32 %v2767_v56, 6.0  ;;  %v2201_v14 = vadd.f32 %v2170_v22, %v2134_v33  ;;  %v2487_v52 = vmul.f32 %v4041_v1, %v5761_v34  ;;  %v1034_v26 = vsel %vm914_vm1, %v937_v3, 0.0 }
 0x25f   : > { %v2202_v36 = vadd.f32 %v2171_v40, %v2135_v51  ;;  %v2368_v16 = vrot.slane %v2250_v11, 1  ;;  %v2369_v63 = vrot.slane %v2251_v21, 1  ;;  %v2604_v15 = vrot.slane %v2486_v46, 2 }
 0x260   : > { %2832 = vst.msk [vmem:[%s4454_s25 + $0x50] sm:$0xff] %vm2821_vm4, %v2799_v48  ;;  %v5788_v6 = vsel %vm2821_vm4, %v2799_v48, 0.0  ;;  %v2605_v29 = vrot.slane %v2487_v52, 2  ;;  %v1140_v58 = vmul.f32 %v4004_v39, %v1034_v26  ;;  %v1376_v53 = vmul.f32 %v4009_v44, %v1034_v26 }
 0x261   : > { %6647 = vst [vmem:[#allocation53_spill] sm:$0xff] %v5788_v6  ;;  %v5794_v33 = vadd.f32 %v5573_v7, %v5788_v6  ;;  %v2370_v41 = vsel %vm1208_vm2, %v2368_v16, %v2369_v63  ;;  %v2372_v51 = vsel %vm1208_vm2, %v2369_v63, %v2371_v31  ;;  %v1679_v62 = vmul.f32 %v4030_v55, %v1034_v26 }
 0x262   : > { %v2437_v2 = vadd.f32 %v2370_v41, %v2201_v14  ;;  %v2438_v35 = vadd.f32 %v2372_v51, %v2202_v36  ;;  %v2606_v20 = vsel %vm1444_vm3, %v2604_v15, %v2605_v29  ;;  %v2608_v13 = vsel %vm1444_vm3, %v2605_v29, %v2607_v19 }
 0x263   : > { %v5803_v43 = vmul.f32 %v4030_v55, %v5764_v28  ;;  %v1249_v23 = vrot.slane %v1140_v58, 1  ;;  %v1485_v25 = vrot.slane %v1376_v53, 2  ;;  %v1923_v7 = vmul.f32 %v4033_v59, %v1034_v26 }
 0x264   : > { %v2673_v56 = vadd.f32 %v2606_v20, %v2437_v2  ;;  %v5806_v22 = vadd.f32 %v2608_v13, %v2438_v35  ;;  %v5809_v31 = vmul.f32 %v4035_v60, %v1034_v26  ;;  %v5812_v40 = vmul.f32 %v4041_v1, %v1034_v26 }
 0x265   : > { %v1790_v11 = vrot.slane %v1679_v62, 1  ;;  %v2034_v21 = vrot.slane %v1923_v7, 2  ;;  %v938_v19 = vsel %vm914_vm1, %v936_v57, %v937_v3  ;;  %v1018_v46 = vsel %vm914_vm1, 0.0, %v936_v57 }
 0x266   : > { %v5817_v48 = vmul.f32 %v5255_v38, %v2673_v56  ;;  %v2336_v14 = vrot.slane %v5809_v31, 1  ;;  %v5822_v36 = vadd.f32 %v5717_v50, %v778_v61  ;;  %v1065_v16 = vmul.f32 %v4006_v42, %v1018_v46 }
 0x267   : > { %v1066_v26 = vmul.f32 %v4006_v42, %v938_v19  ;;  %v1138_v63 = vmul.f32 %v4004_v39, %v1018_v46  ;;  %v1139_v3 = vmul.f32 %v4004_v39, %v938_v19  ;;  %v1374_v57 = vmul.f32 %v4009_v44, %v1018_v46 }
 0x268   : > { %v1375_v15 = vmul.f32 %v4009_v44, %v938_v19  ;;  %v1602_v29 = vmul.f32 %v4044_v5, %v1018_v46  ;;  %v1603_v58 = vmul.f32 %v4044_v5, %v938_v19  ;;  %v1677_v61 = vmul.f32 %v4030_v55, %v1018_v46 }
 0x269   : > { %v1246_v53 = vrot.slane %v1138_v63, 1  ;;  %v1247_v41 = vrot.slane %v1139_v3, 1  ;;  %v1678_v51 = vmul.f32 %v4030_v55, %v938_v19  ;;  %v1482_v62 = vrot.slane %v1374_v57, 2 }
 0x26a   : > { %v1483_v2 = vrot.slane %v1375_v15, 2  ;;  %v1634_v35 = vadd.f32 %v1602_v29, %v5739_v17  ;;  %v1635_v20 = vadd.f32 %v1603_v58, %v5741_v18  ;;  %v1787_v56 = vrot.slane %v1677_v61, 1  ;;  %v6648_v61 = vld [vmem:[#allocation18_spill] sm:$0xff] }
 0x26b   : > { %v1248_v13 = vsel %vm1208_vm2, %v1246_v53, %v1247_v41  ;;  %v1250_v7 = vsel %vm1208_vm2, %v1247_v41, %v1249_v23  ;;  %v1788_v31 = vrot.slane %v1678_v51, 1  ;;  %v1921_v17 = vmul.f32 %v4033_v59, %v1018_v46  ;;  %v6649_v51 = vld [vmem:[#allocation19_spill] sm:$0xff] }
 0x26c   : > { %v1332_v52 = vadd.f32 %v1248_v13, %v1065_v16  ;;  %v1333_v6 = vadd.f32 %v1250_v7, %v1066_v26  ;;  %v1484_v63 = vsel %vm1444_vm3, %v1482_v62, %v1483_v2  ;;  %v1486_v3 = vsel %vm1444_vm3, %v1483_v2, %v1485_v25  ;;  %v6651_v7 = vld [vmem:[#allocation22_spill] sm:$0xff] }
 0x26d   : > { %v1789_v45 = vsel %vm1208_vm2, %v1787_v56, %v1788_v31  ;;  %v1791_v57 = vsel %vm1208_vm2, %v1788_v31, %v1790_v11  ;;  %v1922_v18 = vmul.f32 %v4033_v59, %v938_v19  ;;  %v2031_v53 = vrot.slane %v1921_v17, 2 }
 0x26e   : > { %v1568_v15 = vadd.f32 %v1484_v63, %v1332_v52  ;;  %v1569_v29 = vadd.f32 %v1486_v3, %v1333_v6  ;;  %v1878_v58 = vadd.f32 %v1789_v45, %v1634_v35  ;;  %v1879_v23 = vadd.f32 %v1791_v57, %v1635_v20  ;;  %v6650_v35 = vld [vmem:[#allocation21_spill] sm:$0xff] }
 0x26f   : > { %v2032_v41 = vrot.slane %v1922_v18, 2  ;;  %v2156_v16 = vmul.f32 %v4068_v32, %v1018_v46  ;;  %v2157_v26 = vmul.f32 %v4068_v32, %v938_v19  ;;  %v2229_v11 = vmul.f32 %v4035_v60, %v1018_v46 }
 0x270   : > { %v1636_v25 = vadd.f32 %v6648_v61, %v1568_v15  ;;  %v1637_v62 = vadd.f32 %v6649_v51, %v1569_v29  ;;  %v2230_v2 = vmul.f32 %v4035_v60, %v938_v19  ;;  %v2465_v17 = vmul.f32 %v4041_v1, %v1018_v46  ;;  %v6652_v15 = vld [vmem:[#allocation23_spill] sm:$0xff] }
 0x271   : > { %v2033_v13 = vsel %vm1444_vm3, %v2031_v53, %v2032_v41  ;;  %v2035_v6 = vsel %vm1444_vm3, %v2032_v41, %v2034_v21  ;;  %v2187_v45 = vadd.f32 %v2156_v16, %v5749_v47  ;;  %v2188_v52 = vadd.f32 %v2157_v26, %v5756_v49  ;;  %v6653_v53 = vld [vmem:[#allocation24_spill] sm:$0xff]  ;;  %v6654_v41 = vld [vmem:[#allocation25_spill] sm:$0xff]  ;;  %v6655_v16 = vld [vmem:[#allocation31_spill] sm:$0xff] }
 0x272   : > { %v1880_v20 = vadd.f32 %v6650_v35, %v1636_v25  ;;  %v1881_v56 = vadd.f32 %v6651_v7, %v1637_v62  ;;  %v2122_v31 = vadd.f32 %v2033_v13, %v1878_v58  ;;  %v2123_v63 = vadd.f32 %v2035_v6, %v1879_v23  ;;  %v6656_v25 = vld [vmem:[#allocation33_spill] sm:$0xff]  ;;  %v6659_v6 = vld [vmem:[#allocation28_spill] sm:$0xff] }
 0x273   : > { %v2333_v3 = vrot.slane %v2229_v11, 1  ;;  %v2334_v57 = vrot.slane %v2230_v2, 1  ;;  %v2466_v18 = vmul.f32 %v4041_v1, %v938_v19  ;;  %v2569_v58 = vrot.slane %v2465_v17, 2  ;;  %v6657_v62 = vld [vmem:[#allocation41_spill] sm:$0xff]  ;;  %v6658_v2 = vld [vmem:[#allocation27_spill] sm:$0xff] }
 0x274   : > { %v2124_v29 = vadd.f32 %v6652_v15, %v1880_v20  ;;  %v2125_v21 = vadd.f32 %v6653_v53, %v1881_v56  ;;  %v2189_v47 = vadd.f32 %v6654_v41, %v2122_v31  ;;  %v2190_v49 = vadd.f32 %v6655_v16, %v2123_v63  ;;  %v6662_v63 = vld [vmem:[#allocation37_spill] sm:$0xff]  ;;  %v6665_v53 = vld [vmem:[#allocation38_spill] sm:$0xff] }
 0x275   : > { %v2335_v26 = vsel %vm1208_vm2, %v2333_v3, %v2334_v57  ;;  %v2337_v61 = vsel %vm1208_vm2, %v2334_v57, %v2336_v14  ;;  %v2570_v23 = vrot.slane %v2466_v18, 2  ;;  %v6660_v7 = vrot.slane %v5812_v40, 2  ;;  %v6661_v14 = vld [vmem:[#allocation36_spill] sm:$0xff] }
 0x276   : > { %v2191_v51 = vadd.f32 %v6656_v25, %v2124_v29  ;;  %v2192_v46 = vadd.f32 %v6657_v62, %v2125_v21  ;;  %v2423_v11 = vadd.f32 %v2335_v26, %v2187_v45  ;;  %v2424_v19 = vadd.f32 %v2337_v61, %v2188_v52  ;;  %v6663_v52 = vld [vmem:[#allocation29_spill] sm:$0xff]  ;;  %v6664_v29 = vld [vmem:[#allocation55_spill] sm:$0xff] }
 0x277   : > { %v2425_v13 = vadd.f32 %v6658_v2, %v2189_v47  ;;  %v5868_v35 = vadd.f32 %v6659_v6, %v2190_v49  ;;  %v2571_v20 = vsel %vm1444_vm3, %v2569_v58, %v2570_v23  ;;  %v2573_v56 = vsel %vm1444_vm3, %v2570_v23, %v6660_v7 }
 0x278   : > { %v2427_v31 = vadd.f32 %v6661_v14, %v2191_v51  ;;  %v5876_v3 = vadd.f32 %v6662_v63, %v2192_v46  ;;  %v2659_v57 = vadd.f32 %v2571_v20, %v2423_v11  ;;  %v5878_v17 = vadd.f32 %v2573_v56, %v2424_v19 }
 0x279   : > { %v5882_v45 = vmul.f32 %v5255_v38, %v5806_v22  ;;  %v2661_v18 = vadd.f32 %v6663_v52, %v2425_v13  ;;  %v849_v15 = vmax.f32 %v5822_v36, 0.0  ;;  %v777_v40 = vmul.f32 %v5699_v54, %v6664_v29 }
 0x27a   : > { %v2663_v21 = vadd.f32 %v6665_v53, %v2427_v31  ;;  %v2698_v41 = vmul.f32 %v5255_v38, %v2659_v57  ;;  %v1079_v47 = vmul.f32 %v4006_v42, %v5764_v28  ;;  %v1080_v16 = vmul.f32 %v4006_v42, %v5761_v34  ;;  %v6668_v42 = vld [vmem:[#allocation34_spill] sm:$0xff] }
 0x27b   : > { %v2700_v22 = vmul.f32 %v5255_v38, %v2661_v18  ;;  %v881_v49 = vmin.f32 %v849_v15, 6.0  ;;  %v816_v26 = vadd.f32 %v5717_v50, %v777_v40  ;;  %v1160_v36 = vmul.f32 %v4004_v39, %v5761_v34 }
 0x27c   : > { %v5899_v54 = vmul.f32 %v5255_v38, %v2663_v21  ;;  %v2737_v61 = vadd.f32 %v5270_v0, %v2698_v41  ;;  %v6666_v58 = vrot.slane %v5542_v12, 1  ;;  %v6667_v23 = vrot.slane %v5539_v24, 1 }
 0x27d   : > { %v6669_v51 = vrot.slane %v6668_v42, 1  ;;  %v2739_v46 = vadd.f32 %v5270_v0, %v2700_v22  ;;  %v961_v39 = vrot.slane %v881_v49, 7  ;;  %v848_v11 = vmax.f32 %v816_v26, 0.0 }
 0x27e   : > { %v1278_v25 = vsel %vm1208_vm2, %v6667_v23, %v6666_v58  ;;  %v6670_v62 = vmov %v6666_v58  ;;  %v1281_v38 = vrot.slane %v5770_v10, 1  ;;  %v2769_v19 = vmax.f32 %v2737_v61, 0.0  ;;  %v6674_v23 = vld [vmem:[#allocation40_spill] sm:$0xff] }
 0x27f   : > { %v1280_v50 = vsel %vm1208_vm2, %v6670_v62, %v6669_v51  ;;  %v1282_v2 = vrot.slane %v1160_v36, 1  ;;  %v1344_v13 = vadd.f32 %v1278_v25, %v5555_v9  ;;  %v2771_v6 = vmax.f32 %v2739_v46, 0.0 }
 0x280   : > { %v1345_v24 = vadd.f32 %v1280_v50, %v5558_v8  ;;  %v1042_v20 = vsel %vm914_vm1, %v961_v39, 0.0  ;;  %v880_v12 = vmin.f32 %v848_v11, 6.0  ;;  %v1395_v7 = vmul.f32 %v4009_v44, %v5764_v28 }
 0x281   : > { %v2801_v0 = vmin.f32 %v2769_v19, 6.0  ;;  %v1703_v56 = vmul.f32 %v4030_v55, %v1042_v20  ;;  %v5921_v10 = vmul.f32 %v4033_v59, %v1042_v20  ;;  %v5924_v14 = vmul.f32 %v4035_v60, %v1042_v20 }
 0x282   : > { %v5926_v9 = vmin.f32 %v2771_v6, 6.0  ;;  %v5929_v8 = vmul.f32 %v4041_v1, %v1042_v20  ;;  %v960_v31 = vrot.slane %v880_v12, 7  ;;  %v1283_v63 = vsel %vm1208_vm2, %v1281_v38, %v1282_v2 }
 0x283   : > { %2834 = vst.msk [vmem:[%s4454_s25 + $0x60] sm:$0xff] %vm2821_vm4, %v2801_v0  ;;  %v5935_v57 = vsel %vm2821_vm4, %v2801_v0, 0.0  ;;  %v1830_v52 = vrot.slane %v1703_v56, 1  ;;  %v2074_v18 = vrot.slane %v5921_v10, 2  ;;  %v2376_v15 = vrot.slane %v5924_v14, 1 }
 0x284   : > { %2836 = vst.msk [vmem:[%s4454_s25 + $0x70] sm:$0xff] %vm2821_vm4, %v5926_v9  ;;  %v5944_v29 = vadd.f32 %v5794_v33, %v5935_v57  ;;  %v2612_v40 = vrot.slane %v5929_v8, 2  ;;  %v5948_v53 = vsel %vm914_vm1, %v960_v31, %v961_v39  ;;  %v5951_v21 = vsel %vm914_vm1, 0.0, %v960_v31 }
 0x285   : > { %v6671_v41 = vrot.slane %v5645_v4, 1  ;;  %v1346_v49 = vadd.f32 %v1283_v63, %v1079_v47  ;;  %v1396_v26 = vmul.f32 %v4009_v44, %v5761_v34  ;;  %v6672_v36 = vrot.slane %v5548_v37, 2 }
 0x286   : > { %v6673_v33 = vrot.slane %v5545_v27, 2  ;;  %v6675_v25 = vrot.slane %v6674_v23, 2  ;;  %v1517_v4 = vrot.slane %v1395_v7, 2  ;;  %v1616_v44 = vmul.f32 %v4044_v5, %v5764_v28 }
 0x287   : > { %v1285_v22 = vsel %vm1208_vm2, %v1282_v2, %v6671_v41  ;;  %v6676_v42 = vmov %v6672_v36  ;;  %v1518_v50 = vrot.slane %v1396_v26, 2  ;;  %v1617_v46 = vmul.f32 %v4044_v5, %v5761_v34 }
 0x288   : > { %v1514_v61 = vsel %vm1444_vm3, %v6673_v33, %v6672_v36  ;;  %v1347_v58 = vadd.f32 %v1285_v22, %v1080_v16  ;;  %v1516_v51 = vsel %vm1444_vm3, %v6676_v42, %v6675_v25  ;;  %v1618_v27 = vmul.f32 %v4044_v5, %v5951_v21  ;;  %v6678_v22 = vld [vmem:[#allocation46_spill] sm:$0xff] }
 0x289   : > { %v1580_v62 = vadd.f32 %v1514_v61, %v1344_v13  ;;  %v1581_v47 = vadd.f32 %v1516_v51, %v1345_v24  ;;  %v1619_v16 = vmul.f32 %v4044_v5, %v5948_v53  ;;  %v1699_v37 = vmul.f32 %v4030_v55, %v5761_v34 }
 0x28a   : > { %v1701_v39 = vmul.f32 %v4030_v55, %v5951_v21  ;;  %v1519_v11 = vsel %vm1444_vm3, %v1517_v4, %v1518_v50  ;;  %v6677_v38 = vrot.slane %v5648_v30, 2  ;;  %v1702_v20 = vmul.f32 %v4030_v55, %v5948_v53 }
 0x28b   : > { %v1648_v2 = vadd.f32 %v1616_v44, %v1580_v62  ;;  %v1649_v13 = vadd.f32 %v1617_v46, %v1581_v47  ;;  %v1582_v24 = vadd.f32 %v1519_v11, %v1346_v49  ;;  %v1822_v5 = vrot.slane %v5803_v43, 1 }
 0x28c   : > { %v1521_v19 = vsel %vm1444_vm3, %v1518_v50, %v6677_v38  ;;  %v1823_v12 = vrot.slane %v1699_v37, 1  ;;  %v1827_v7 = vrot.slane %v1701_v39, 1  ;;  %v1942_v0 = vmul.f32 %v4033_v59, %v5764_v28  ;;  %v6680_v50 = vld [vmem:[#allocation49_spill] sm:$0xff] }
 0x28d   : > { %v1583_v6 = vadd.f32 %v1521_v19, %v1347_v58  ;;  %v1943_v56 = vmul.f32 %v4033_v59, %v5761_v34  ;;  %v1650_v30 = vadd.f32 %v1618_v27, %v1582_v24  ;;  %v1828_v31 = vrot.slane %v1702_v20, 1 }
 0x28e   : > { %v1945_v63 = vmul.f32 %v4033_v59, %v5951_v21  ;;  %v1824_v41 = vsel %vm1208_vm2, %v1822_v5, %v1823_v12  ;;  %v6679_v55 = vrot.slane %v6678_v22, 1  ;;  %v1946_v49 = vmul.f32 %v4033_v59, %v5948_v53  ;;  %v6029_v22 = vld [vmem:[%s6421_s6] ss:$0 sm:$0xff] }
 0x28f   : > { %v1651_v10 = vadd.f32 %v1619_v16, %v1583_v6  ;;  %v2066_v26 = vrot.slane %v1942_v0, 2  ;;  %v1829_v28 = vsel %vm1208_vm2, %v1827_v7, %v1828_v31  ;;  %v1831_v34 = vsel %vm1208_vm2, %v1828_v31, %v1830_v52 }
 0x290   : > { %v1826_v43 = vsel %vm1208_vm2, %v1823_v12, %v6679_v55  ;;  %v1892_v36 = vadd.f32 %v1824_v41, %v1648_v2  ;;  %v1894_v61 = vadd.f32 %v1829_v28, %v1650_v30  ;;  %v2067_v23 = vrot.slane %v1943_v56, 2 }
 0x291   : > { %v1893_v33 = vadd.f32 %v1826_v43, %v1649_v13  ;;  %v1895_v58 = vadd.f32 %v1831_v34, %v1651_v10  ;;  %v2071_v25 = vrot.slane %v1945_v63, 2  ;;  %v2072_v42 = vrot.slane %v1946_v49, 2  ;;  %v6683_v43 = vld [vmem:[#allocation57_spill] sm:$0xff] }
 0x292   : > { %v2172_v51 = vmul.f32 %v4068_v32, %v5951_v21  ;;  %v2173_v4 = vmul.f32 %v4068_v32, %v5948_v53  ;;  %v2174_v59 = vmul.f32 0.0, %v4068_v32  ;;  %v2068_v62 = vsel %vm1444_vm3, %v2066_v26, %v2067_v23  ;;  %v6684_v26 = vld [vmem:[#allocation58_spill] sm:$0xff] }
 0x293   : > { %v6681_v47 = vrot.slane %v6680_v50, 2  ;;  %v2253_v44 = vmul.f32 %v4035_v60, %v5951_v21  ;;  %v2254_v46 = vmul.f32 %v4035_v60, %v5948_v53  ;;  %v2073_v27 = vsel %vm1444_vm3, %v2071_v25, %v2072_v42 }
 0x294   : > { %v2075_v16 = vsel %vm1444_vm3, %v2072_v42, %v2074_v18  ;;  %v2136_v37 = vadd.f32 %v2068_v62, %v1892_v36  ;;  %v2138_v11 = vadd.f32 %v2073_v27, %v1894_v61  ;;  %v2256_v38 = vmul.f32 0.0, %v4035_v60 }
 0x295   : > { %v2070_v52 = vsel %vm1444_vm3, %v2067_v23, %v6681_v47  ;;  %v2139_v32 = vadd.f32 %v2075_v16, %v1895_v58  ;;  %v2373_v19 = vrot.slane %v2253_v44, 1  ;;  %v2374_v24 = vrot.slane %v2254_v46, 1 }
 0x296   : > { %v2137_v39 = vadd.f32 %v2070_v52, %v1893_v33  ;;  %v2203_v2 = vadd.f32 %v2172_v51, %v2136_v37  ;;  %v2489_v6 = vmul.f32 %v4041_v1, %v5951_v21  ;;  %v2205_v20 = vadd.f32 %v2174_v59, %v2138_v11  ;;  %v6685_v37 = vld [vmem:[#allocation32_spill] sm:$0xff]  ;;  %v6686_v11 = vld [vmem:[#allocation54_spill] sm:$0xff] }
 0x297   : > { %v2206_v5 = vadd.f32 %v2174_v59, %v2139_v32  ;;  %v2378_v12 = vrot.slane %v2256_v38, 1  ;;  %v2490_v7 = vmul.f32 %v4041_v1, %v5948_v53  ;;  %v2375_v18 = vsel %vm1208_vm2, %v2373_v19, %v2374_v24  ;;  %v6687_v38 = vld [vmem:[#allocation42_spill] sm:$0xff] }
 0x298   : > { %v2204_v13 = vadd.f32 %v2173_v4, %v2137_v39  ;;  %v2377_v0 = vsel %vm1208_vm2, %v2374_v24, %v2376_v15  ;;  %v2492_v60 = vmul.f32 0.0, %v4041_v1  ;;  %v2609_v56 = vrot.slane %v2489_v6, 2  ;;  %v6682_v15 = vld [vmem:[#allocation17_spill] sm:$0xff] }
 0x299   : > { %v2439_v30 = vadd.f32 %v2375_v18, %v2203_v2  ;;  %v2441_v31 = vadd.f32 %v2378_v12, %v2205_v20  ;;  %v2442_v63 = vadd.f32 %v2378_v12, %v2206_v5  ;;  %v2610_v21 = vrot.slane %v2490_v7, 2  ;;  %v6688_v2 = vld [vmem:[#allocation56_spill] sm:$0xff] }
 0x29a   : > { %v2440_v10 = vadd.f32 %v2377_v0, %v2204_v13  ;;  %v2614_v41 = vrot.slane %v2492_v60, 2  ;;  %v2741_v53 = vadd.f32 %v6029_v22, %v5899_v54  ;;  %v2751_v14 = vadd.f32 %v6029_v22, %v5817_v48 }
 0x29b   : > { %v6037_v1 = vadd.f32 %v6029_v22, %v6682_v15  ;;  %v2752_v55 = vadd.f32 %v6029_v22, %v5882_v45  ;;  %v2781_v49 = vmax.f32 %v6683_v43, 0.0  ;;  %v2782_v28 = vmax.f32 %v6684_v26, 0.0  ;;  %v3524_v45 = vld [vmem:[%s6420_s5] ss:$0 sm:$0xff] }
 0x29c   : > { %v2611_v34 = vsel %vm1444_vm3, %v2609_v56, %v2610_v21  ;;  %v2613_v54 = vsel %vm1444_vm3, %v2610_v21, %v2612_v40  ;;  %v2677_v36 = vadd.f32 %v2614_v41, %v2441_v31  ;;  %v2678_v33 = vadd.f32 %v2614_v41, %v2442_v63  ;;  %v6689_v21 = vld [vmem:[#allocation30_spill] sm:$0xff] }
 0x29d   : > { %v2675_v48 = vadd.f32 %v2611_v34, %v2439_v30  ;;  %v2676_v61 = vadd.f32 %v2613_v54, %v2440_v10  ;;  %v2773_v58 = vmax.f32 %v2741_v53, 0.0  ;;  %v2783_v23 = vmax.f32 %v2751_v14, 0.0 }
 0x29e   : > { %v2716_v25 = vmul.f32 %v3524_v45, %v2677_v36  ;;  %v2717_v42 = vmul.f32 %v3524_v45, %v2678_v33  ;;  %v2784_v51 = vmax.f32 %v2752_v55, 0.0  ;;  %v2813_v4 = vmin.f32 %v2781_v49, 6.0  ;;  %v6690_v55 = vld [vmem:[#allocation39_spill] sm:$0xff]  ;;  %v6691_v33 = vld [vmem:[#allocation52_spill] sm:$0xff] }
 0x29f   : > { %v2714_v8 = vmul.f32 %v3524_v45, %v2675_v48  ;;  %v2715_v40 = vmul.f32 %v3524_v45, %v2676_v61  ;;  %v2805_v59 = vmin.f32 %v2773_v58, 6.0  ;;  %v2814_v62 = vmin.f32 %v2782_v28, 6.0  ;;  %v6692_v58 = vld [vmem:[#allocation48_spill] sm:$0xff] }
 0x2a0   : > { %v2699_v50 = vmul.f32 %v3524_v45, %v5878_v17  ;;  %v2755_v47 = vadd.f32 %v6029_v22, %v2716_v25  ;;  %v2815_v52 = vmin.f32 %v2783_v23, 6.0  ;;  %v2816_v44 = vmin.f32 %v2784_v51, 6.0  ;;  %2846 = vst.msk [vmem:[%s4454_s25 + $0xc0] sm:$0xff] %vm2821_vm4, %v2813_v4 }
 0x2a1   : > { %v2753_v46 = vadd.f32 %v6029_v22, %v2714_v8  ;;  %v2754_v27 = vadd.f32 %v6029_v22, %v2715_v40  ;;  %2838 = vst.msk [vmem:[%s4454_s25 + $0x80] sm:$0xff] %vm2821_vm4, %v2805_v59  ;;  %2847 = vst.msk [vmem:[%s4454_s25 + $0xc8] sm:$0xff] %vm2821_vm4, %v2814_v62  ;;  %v6062_v16 = vsel %vm2821_vm4, %v5926_v9, 0.0  ;;  %v2944_v17 = vsel %vm2821_vm4, %v6685_v37, 0.0  ;;  %v6694_v40 = vld [vmem:[#allocation35_spill] sm:$0xff]  ;;  %v6699_v37 = vld [vmem:[#allocation50_spill] sm:$0xff] }
 0x2a2   : > { %v2787_v39 = vmax.f32 %v2755_v47, 0.0  ;;  %2848 = vst.msk [vmem:[%s4454_s25 + $0xd0] sm:$0xff] %vm2821_vm4, %v2815_v52  ;;  %2849 = vst.msk [vmem:[%s4454_s25 + $0xd8] sm:$0xff] %vm2821_vm4, %v2816_v44  ;;  %v6072_v32 = vsel %vm2821_vm4, %v6686_v11, 0.0  ;;  %v2953_v19 = vsel %vm2821_vm4, %v6687_v38, 0.0  ;;  %v6078_v9 = vsel %vm2821_vm4, %v6688_v2, 0.0 }
 0x2a3   : > { %v2756_v13 = vadd.f32 %v6029_v22, %v2717_v42  ;;  %v2785_v24 = vmax.f32 %v2753_v46, 0.0  ;;  %v2786_v6 = vmax.f32 %v2754_v27, 0.0  ;;  %v6082_v20 = vadd.f32 %v6072_v32, %v2944_v17  ;;  %v6698_v46 = vld [vmem:[#allocation20_spill] sm:$0xff] }
 0x2a4   : > { %v6084_v5 = vmin.f32 %v2787_v39, 6.0  ;;  %v2962_v12 = vsel %vm2821_vm4, %v2813_v4, 0.0  ;;  %v6088_v7 = vsel %vm2821_vm4, %v2814_v62, 0.0  ;;  %v6091_v18 = vsel %vm2821_vm4, %v2815_v52, 0.0 }
 0x2a5   : > { %v2817_v0 = vmin.f32 %v2785_v24, 6.0  ;;  %v2818_v60 = vmin.f32 %v2786_v6, 6.0  ;;  %v6094_v56 = vsel %vm2821_vm4, %v2805_v59, 0.0  ;;  %v6097_v30 = vadd.f32 %v6078_v9, %v2953_v19  ;;  %v6700_v6 = vld [vmem:[#allocation51_spill] sm:$0xff] }
 0x2a6   : > { %2852 = vst.msk [vmem:[%s4454_s25 + $0xf0] sm:$0xff] %vm2821_vm4, %v6084_v5  ;;  %v6103_v10 = vadd.f32 %v6088_v7, %v2962_v12  ;;  %v6106_v31 = vsel %vm2821_vm4, %v2816_v44, 0.0  ;;  %v3062_v63 = vadd.f32 %v5944_v29, %v6062_v16  ;;  %v2662_v41 = vadd.f32 %v6689_v21, %v5868_v35 }
 0x2a7   : > { %2850 = vst.msk [vmem:[%s4454_s25 + $0xe0] sm:$0xff] %vm2821_vm4, %v2817_v0  ;;  %2851 = vst.msk [vmem:[%s4454_s25 + $0xe8] sm:$0xff] %vm2821_vm4, %v2818_v60  ;;  %v6118_v53 = vadd.f32 %v6106_v31, %v6091_v18  ;;  %v6121_v14 = vsel %vm2821_vm4, %v2817_v0, 0.0  ;;  %v6124_v15 = vsel %vm2821_vm4, %v2818_v60, 0.0  ;;  %v2664_v29 = vadd.f32 %v6690_v55, %v5876_v3  ;;  %v6701_v60 = vld [vmem:[#allocation43_spill] sm:$0xff]  ;;  %v6702_v55 = vld [vmem:[#allocation44_spill] sm:$0xff] }
 0x2a8   : > { %v2947_v43 = vrot.slane %v6082_v20, 4  ;;  %v6131_v35 = vadd.f32 %v6124_v15, %v6121_v14  ;;  %v3063_v49 = vadd.f32 %v3062_v63, %v6094_v56  ;;  %v2701_v26 = vmul.f32 %v3524_v45, %v2662_v41 }
 0x2a9   : > { %v2703_v28 = vmul.f32 %v3524_v45, %v2664_v29  ;;  %v2738_v34 = vadd.f32 %v6029_v22, %v2699_v50  ;;  %v2768_v54 = vmax.f32 %v6037_v1, 0.0  ;;  %v2788_v36 = vmax.f32 %v2756_v13, 0.0  ;;  %v6696_v50 = vld [vmem:[#allocation45_spill] sm:$0xff] }
 0x2aa   : > { %v2956_v3 = vrot.slane %v6097_v30, 4  ;;  %v3064_v48 = vadd.f32 %v3063_v49, %v6691_v33  ;;  %v2740_v61 = vadd.f32 %v6029_v22, %v2701_v26  ;;  %v6693_v23 = vmax.f32 %v6692_v58, 0.0 }
 0x2ab   : > { %v2742_v45 = vadd.f32 %v6029_v22, %v2703_v28  ;;  %v2770_v42 = vmax.f32 %v2738_v34, 0.0  ;;  %v2800_v51 = vmin.f32 %v2768_v54, 6.0  ;;  %v6144_v4 = vmin.f32 %v2788_v36, 6.0 }
 0x2ac   : > { %v6141_v25 = vmin.f32 %v6693_v23, 6.0  ;;  %v3065_v1 = vadd.f32 %v3064_v48, %v2944_v17  ;;  %v2772_v8 = vmax.f32 %v2740_v61, 0.0  ;;  %v6695_v59 = vrot.slane %v6694_v40, 4 }
 0x2ad   : > { %v6697_v47 = vrot.slane %v6696_v50, 4  ;;  %v2774_v22 = vmax.f32 %v2742_v45, 0.0  ;;  %v2802_v44 = vmin.f32 %v2770_v42, 6.0  ;;  %2833 = vst.msk [vmem:[%s4454_s25 + $0x58] sm:$0xff] %vm2821_vm4, %v2800_v51  ;;  %2853 = vst.msk [vmem:[%s4454_s25 + $0xf8] sm:$0xff] %vm2821_vm4, %v6144_v4  ;;  %v2875_v27 = vrot.slane %v6698_v46, 4 }
 0x2ae   : > { %2841 = vst.msk [vmem:[%s4454_s25 + $0x98] sm:$0xff] %vm2821_vm4, %v6141_v25  ;;  %v2858_v62 = vadd.f32 %v6695_v59, %v6694_v40  ;;  %v6165_v17 = vsel %vm2821_vm4, %v6699_v37, 0.0  ;;  %v3066_v39 = vadd.f32 %v3065_v1, %v2953_v19  ;;  %v6167_v11 = vmin.f32 %v2772_v8, 6.0 }
 0x2af   : > { %v2867_v52 = vadd.f32 %v6697_v47, %v6696_v50  ;;  %v6169_v13 = vmin.f32 %v2774_v22, 6.0  ;;  %2835 = vst.msk [vmem:[%s4454_s25 + $0x68] sm:$0xff] %vm2821_vm4, %v2802_v44  ;;  %v2876_v24 = vadd.f32 %v2875_v27, %v6698_v46  ;;  %v2883_v0 = vadd.f32 %v6165_v17, %v6700_v6 }
 0x2b0   : > { %v2859_v38 = vrot.slane %v2858_v62, 2  ;;  %v6178_v63 = vsel %vm2821_vm4, %v6701_v60, 0.0  ;;  %v3067_v19 = vadd.f32 %v3066_v39, %v2962_v12  ;;  %2837 = vst.msk [vmem:[%s4454_s25 + $0x78] sm:$0xff] %vm2821_vm4, %v6167_v11  ;;  %v6198_v28 = vsel %vm2821_vm4, %v2800_v51, 0.0 }
 0x2b1   : > { %v2868_v2 = vrot.slane %v2867_v52, 2  ;;  %v2892_v29 = vadd.f32 %v6178_v63, %v6702_v55  ;;  %2839 = vst.msk [vmem:[%s4454_s25 + $0x88] sm:$0xff] %vm2821_vm4, %v6169_v13  ;;  %v2877_v49 = vrot.slane %v2876_v24, 2  ;;  %v2884_v26 = vrot.slane %v2883_v0, 4  ;;  %s3719_s25 = smov [#allocation7]  }
 0x2b2   : > { %v2860_v21 = vadd.f32 %v2859_v38, %v2858_v62  ;;  %v6201_v12 = vsel %vm2821_vm4, %v2802_v44, 0.0  ;;  %v2965_v34 = vrot.slane %v6103_v10, 4  ;;  %v3068_v54 = vadd.f32 %v3067_v19, %v6091_v18  ;;  %s3587_s17 = sshll.u32 %s3719_s25, 4  ;;  %s3588_s17 = int_to_ptr.vmem [resolvable:$false] %s3587_s17 }
 0x2b3   : > { %v6190_v41 = vadd.f32 %v2868_v2, %v2867_v52  ;;  %v2893_v48 = vrot.slane %v2892_v29, 4  ;;  %s3589_s19 = scalar_lea.vmem %s3588_s17, 8192  ;;  %p3590_p10 = scmp.lt.s32.totalorder %s6185_s21, %s3588_s17 }
 0x2b4   : > { %v2861_v36 = vrot.slane %v2860_v21, 1  ;;  %p3591_p13 = scmp.lt.s32.totalorder %s3589_s19, %s3583_s15 }
 0x2b6   : > { %p3592_p3 = por %p3591_p13, %p3590_p10 }
 0x2b8   : > { %p3593_p7 = pnand %p3592_p3, %p3586_p8 }
 0x2ba   : > { %3596 = shalt.err (!%p3593_p7)
}
 0x2bb   : > { %s3597_s14 = scalar_lea.hbm %s6183_s20, 4096  ;;  %s3601_s16 = scalar_lea.hbm %s6422_s7, 8192 }
 0x2bc   : > { %p3598_p9 = scmp.ne.s32.totalorder %s6183_s20, %s3597_s14  ;;  %p3602_p5 = scmp.lt.u32.totalorder %s6183_s20, %s6422_s7 }
 0x2bd   : > { %p3603_p11 = scmp.lt.u32.totalorder %s3601_s16, %s3597_s14  ;;  %p3605_p4 = scmp.lt.u32.totalorder %s3597_s14, %s6183_s20 }
 0x2be   : > { %p3599_p1 = pnand %p3598_p9, %p3870_p12 }
 0x2bf   : > { %p3604_p2 = por %p3603_p11, %p3602_p5 }
 0x2c0   : > { %p3600_p0 = pneg %p3599_p1 }
 0x2c1   : > { %p3606_p6 = por %p3605_p4, %p3604_p2 }
 0x2c3   : > { %p3607_p8 = pnand %p3606_p6, %p3600_p0 }
 0x2c5   : > { %3610 = shalt.err (!%p3607_p8)
}
 0x2c6   : > { %s3720_s15 = smov 128   ;;  %s3721_s25 = smov 8   ;;  %v2878_v18 = vadd.f32 %v2877_v49, %v2876_v24  ;;  %v2885_v61 = vadd.f32 %v2884_v26, %v2883_v0  ;;  %v6703_v58 = vld [vmem:[#allocation53_spill] sm:$0xff]  ;;  %v2910_v45 = vadd.f32 %v6201_v12, %v5935_v57  ;;  %v2983_v42 = vrot.slane %v6131_v35, 4 }
 0x2c7   : > { %3452 = dma.vmem_to_hbm [thread:$0]  (%p3870_p12), %s6185_s21, 4096, %s6183_s20, %s3091_s23, %s3720_s15, %s3720_s15, %s3721_s25   ;;  %v2901_v23 = vadd.f32 %v6198_v28, %v6703_v58  ;;  %v6238_v51 = vadd.f32 %v3068_v54, %v6121_v14  ;;  %v2870_v1 = vrot.slane %v6190_v41, 1  ;;  %v2894_v8 = vadd.f32 %v2893_v48, %v2892_v29 }
 0x2c8   : > { %v6241_v40 = vadd.f32 %v2861_v36, %v2860_v21  ;;  %v2886_v59 = vrot.slane %v2885_v61, 2  ;;  %v2911_v50 = vrot.slane %v2910_v45, 4  ;;  %v6245_v52 = vsel %vm2821_vm4, %v6167_v11, 0.0  ;;  %s3301_s21 = sshll.u32 %s3921_s29, 4  ;;  %s3095_s20 = sand.u32 1, %s3795_s13  }
 0x2c9   : > { %v2902_v62 = vrot.slane %v2901_v23, 4  ;;  %v2895_v47 = vrot.slane %v2894_v8, 2  ;;  %v6249_v57 = vsel %vm2821_vm4, %v6169_v13, 0.0  ;;  %v6253_v14 = vsel %vm2821_vm4, %v6141_v25, 0.0  ;;  %s6463_s23 = sshll.u32 %s3795_s13, 8  ;;  %s376_s17 = scalar_lea.vmem [#allocation8], %s3301_s21 }
 0x2ca   : > { %v2879_v22 = vrot.slane %v2878_v18, 1  ;;  %v2887_v44 = vadd.f32 %v2886_v59, %v2885_v61  ;;  %v2912_v27 = vadd.f32 %v2911_v50, %v2910_v45  ;;  %v2919_v39 = vadd.f32 %v6245_v52, %v6062_v16  ;;  %s3130_s19 = sshll.u32 %s376_s17, 4  ;;  %s6305_s14 = scalar_lea.vmem [#allocation10], %s3301_s21  ;;  %s6318_s19 = int_to_ptr.vmem [resolvable:$true] %s3130_s19 }
 0x2cb   : > { %v2903_v46 = vadd.f32 %v2902_v62, %v2901_v23  ;;  %v2896_v37 = vadd.f32 %v2895_v47, %v2894_v8  ;;  %v2928_v11 = vadd.f32 %v6249_v57, %v6094_v56  ;;  %v2937_v38 = vadd.f32 %v6253_v14, %v6691_v33  ;;  %s6316_s16 = scalar_lea.hbm %s6423_s8, %s6463_s23  ;;  %s6323_s29 = scalar_lea.sflag [#allocation9], %s3095_s20 }
 0x2cc   : > { %v2888_v2 = vrot.slane %v2887_v44, 1  ;;  %v2913_v24 = vrot.slane %v2912_v27, 2  ;;  %v2948_v25 = vadd.f32 %v2947_v43, %v6082_v20  ;;  %v2871_v6 = vadd.f32 %v2870_v1, %v6190_v41  ;;  %s3611_s18 = scalar_lea.vmem %s6318_s19, 256  ;;  %s3722_s24 = smov [#allocation8]  }
 0x2cd   : > { %v2904_v13 = vrot.slane %v2903_v46, 2  ;;  %v2920_v0 = vrot.slane %v2919_v39, 4  ;;  %v2929_v60 = vrot.slane %v2928_v11, 4  ;;  %v2938_v19 = vrot.slane %v2937_v38, 4  ;;  %p3612_p10 = scmp.ne.s32.totalorder %s6318_s19, %s3611_s18  ;;  %s3615_s21 = sshll.u32 %s3722_s24, 4  ;;  %s3616_s21 = int_to_ptr.vmem [resolvable:$false] %s3615_s21 }
 0x2ce   : > { %v2897_v21 = vrot.slane %v2896_v37, 1  ;;  %v2914_v55 = vadd.f32 %v2913_v24, %v2912_v27  ;;  %v2949_v29 = vrot.slane %v2948_v25, 2  ;;  %v2880_v56 = vadd.f32 %v2879_v22, %v2878_v18  ;;  %s3617_s22 = scalar_lea.vmem %s3616_s21, 512  ;;  %p3618_p7 = scmp.lt.s32.totalorder %s6318_s19, %s3616_s21 }
 0x2cf   : > { %v2905_v16 = vadd.f32 %v2904_v13, %v2903_v46  ;;  %v2921_v49 = vadd.f32 %v2920_v0, %v2919_v39  ;;  %v2930_v26 = vadd.f32 %v2929_v60, %v2928_v11  ;;  %v2939_v33 = vadd.f32 %v2938_v19, %v2937_v38  ;;  %p3613_p13 = pnand %p3612_p10, %p3870_p12  ;;  %p3619_p9 = scmp.lt.s32.totalorder %s3617_s22, %s3611_s18 }
 0x2d0   : > { %v2889_v54 = vadd.f32 %v2888_v2, %v2887_v44  ;;  %v2950_v48 = vadd.f32 %v2949_v29, %v2948_v25  ;;  %v2957_v20 = vadd.f32 %v2956_v3, %v6097_v30  ;;  %v2966_v58 = vadd.f32 %v2965_v34, %v6103_v10 }
 0x2d1   : > { %v2906_v36 = vrot.slane %v2905_v16, 1  ;;  %v2922_v43 = vrot.slane %v2921_v49, 2  ;;  %v2931_v41 = vrot.slane %v2930_v26, 2  ;;  %v2940_v61 = vrot.slane %v2939_v33, 2  ;;  %p3614_p3 = pneg %p3613_p13  ;;  %p3620_p1 = por %p3619_p9, %p3618_p7 }
 0x2d2   : > { %v2898_v23 = vadd.f32 %v2897_v21, %v2896_v37  ;;  %v2915_v45 = vrot.slane %v2914_v55, 1  ;;  %v2951_v18 = vrot.slane %v2950_v48, 1  ;;  %v2958_v1 = vrot.slane %v2957_v20, 2 }
 0x2d3   : > { %v2923_v8 = vadd.f32 %v2922_v43, %v2921_v49  ;;  %v2932_v59 = vadd.f32 %v2931_v41, %v2930_v26  ;;  %v2941_v62 = vadd.f32 %v2940_v61, %v2939_v33  ;;  %v2967_v50 = vrot.slane %v2966_v58, 2  ;;  %p3621_p0 = pnand %p3620_p1, %p3614_p3 }
 0x2d4   : > { %v2907_v47 = vadd.f32 %v2906_v36, %v2905_v16  ;;  %v2959_v22 = vadd.f32 %v2958_v1, %v2957_v20  ;;  %v2974_v44 = vrot.slane %v6118_v53, 4  ;;  %v2984_v30 = vadd.f32 %v2983_v42, %v6131_v35 }
 0x2d5   : > { %v2924_v3 = vrot.slane %v2923_v8, 1  ;;  %v2933_v46 = vrot.slane %v2932_v59, 1  ;;  %v2942_v27 = vrot.slane %v2941_v62, 1  ;;  %v2968_v39 = vadd.f32 %v2967_v50, %v2966_v58 }
 0x2d6   : > { %v2960_v11 = vrot.slane %v2959_v22, 1  ;;  %v2975_v10 = vadd.f32 %v2974_v44, %v6118_v53  ;;  %v2985_v34 = vrot.slane %v2984_v30, 2  ;;  %v2989_v37 = vsel %vm2821_vm4, %v6084_v5, 0.0 }
 0x2d7   : > { %v2916_v38 = vadd.f32 %v2915_v45, %v2914_v55  ;;  %v2925_v2 = vadd.f32 %v2924_v3, %v2923_v8  ;;  %v2952_v13 = vadd.f32 %v2951_v18, %v2950_v48  ;;  %v2969_v24 = vrot.slane %v2968_v39, 1 }
 0x2d8   : > { %v2934_v25 = vadd.f32 %v2933_v46, %v2932_v59  ;;  %v2976_v0 = vrot.slane %v2975_v10, 2  ;;  %v2986_v60 = vadd.f32 %v2985_v34, %v2984_v30  ;;  %v6278_v35 = vsel %vm2821_vm4, %v6144_v4, 0.0 }
 0x2d9   : > { %v2943_v42 = vadd.f32 %v2942_v27, %v2941_v62  ;;  %v2961_v19 = vadd.f32 %v2960_v11, %v2959_v22  ;;  %v2970_v21 = vadd.f32 %v2969_v24, %v2968_v39  ;;  %v2991_v53 = vadd.f32 %v6278_v35, %v2989_v37 }
 0x2da   : > { %v2977_v16 = vadd.f32 %v2976_v0, %v2975_v10  ;;  %v2987_v29 = vrot.slane %v2986_v60, 1  ;;  %v2999_v5 = vmul.f32 0.0625, %v6241_v40  ;;  %v3000_v55 = vmul.f32 0.0625, %v2871_v6 }
 0x2db   : > { %v2992_v49 = vrot.slane %v2991_v53, 4  ;;  %v3001_v26 = vmul.f32 0.0625, %v2880_v56  ;;  %v3002_v33 = vmul.f32 0.0625, %v2889_v54  ;;  %v3003_v36 = vmul.f32 0.0625, %v2898_v23 }
 0x2dc   : > { %v2978_v48 = vrot.slane %v2977_v16, 1  ;;  %v2988_v20 = vadd.f32 %v2987_v29, %v2986_v60  ;;  %v3004_v43 = vmul.f32 0.0625, %v2907_v47  ;;  %v3005_v4 = vmul.f32 0.0625, %v2916_v38  ;;  %v6704_v47 = vld [vmem:[#allocation26_spill] sm:$0xff] }
 0x2dd   : > { %v2993_v41 = vadd.f32 %v2992_v49, %v2991_v53  ;;  %v3006_v61 = vmul.f32 0.0625, %v2925_v2  ;;  %v3007_v58 = vmul.f32 0.0625, %v2934_v25  ;;  %v3008_v45 = vmul.f32 0.0625, %v2943_v42 }
 0x2de   : > { %v2979_v18 = vadd.f32 %v2978_v48, %v2977_v16  ;;  %v3009_v1 = vmul.f32 0.0625, %v2952_v13  ;;  %v3010_v8 = vmul.f32 0.0625, %v2961_v19  ;;  %vm3031_vm5 = vcmask 1041409  }
 0x2df   : > { %v2994_v59 = vrot.slane %v2993_v41, 2  ;;  %v3032_v40 = vsel %vm3031_vm5, %v3000_v55, %v2999_v5  ;;  %vm3033_vm6 = vcmask 1042434   ;;  %vm3035_vm7 = vcmask 1043459  }
 0x2e0   : > { %v3011_v6 = vmul.f32 0.0625, %v2970_v21  ;;  %v3034_v56 = vsel %vm3033_vm6, %v3001_v26, %v3032_v40  ;;  %vm3037_vm8 = vcmask 1044484   ;;  %vm3039_vm9 = vcmask 1045509  }
 0x2e1   : > { %v2995_v54 = vadd.f32 %v2994_v59, %v2993_v41  ;;  %v3036_v23 = vsel %vm3035_vm7, %v3002_v33, %v3034_v56  ;;  %vm3041_vm10 = vcmask 1046534   ;;  %vm3043_vm11 = vcmask 1047559  }
 0x2e2   : > { %v3038_v62 = vsel %vm3037_vm8, %v3003_v36, %v3036_v23  ;;  %v3045_v50 = vsel %vm3031_vm5, %v3008_v45, %v3007_v58  ;;  %v3073_v22 = vadd.f32 %v6704_v47, %v6165_v17  ;;  %v3070_v44 = vadd.f32 %v6238_v51, %v2989_v37 }
 0x2e3   : > { %v2996_v30 = vrot.slane %v2995_v54, 1  ;;  %v3012_v3 = vmul.f32 0.0625, %v2979_v18  ;;  %v3040_v46 = vsel %vm3039_vm9, %v3004_v43, %v3038_v62  ;;  %v3046_v27 = vsel %vm3033_vm6, %v3009_v1, %v3045_v50 }
 0x2e4   : > { %v3042_v39 = vsel %vm3041_vm10, %v3005_v4, %v3040_v46  ;;  %v3047_v11 = vsel %vm3035_vm7, %v3010_v8, %v3046_v27  ;;  %v3074_v10 = vadd.f32 %v3073_v22, %v6178_v63  ;;  %v3086_v34 = vmul.f32 0.0625, %v3070_v44 }
 0x2e5   : > { %v2997_v17 = vadd.f32 %v2996_v30, %v2995_v54  ;;  %v3013_v38 = vmul.f32 0.0625, %v2988_v20  ;;  %v3044_v51 = vsel %vm3043_vm11, %v3006_v61, %v3042_v39  ;;  %v3048_v37 = vsel %vm3037_vm8, %v3011_v6, %v3047_v11 }
 0x2e6   : > { %v3049_v2 = vsel %vm3039_vm9, %v3012_v3, %v3048_v37  ;;  %3054 = vst.msk [vmem:[%s376_s17] sm:$0xff] %vm2821_vm4, %v3044_v51  ;;  %v3075_v63 = vadd.f32 %v3074_v10, %v6198_v28  ;;  %3088 = vst.msk [vmem:[%s6305_s14] sm:$0xff] %vm2821_vm4, %v3086_v34 }
 0x2e7   : > { %v3014_v13 = vmul.f32 0.0625, %v2997_v17  ;;  %v3050_v24 = vsel %vm3041_vm10, %v3013_v38, %v3049_v2 }
 0x2e8   : > { %v3076_v25 = vadd.f32 %v3075_v63, %v6201_v12 }
 0x2e9   : > { %v3051_v28 = vsel %vm3043_vm11, %v3014_v13, %v3050_v24 }
 0x2ea   : > { %3055 = vst.msk [vmem:[%s376_s17 + $0x8] sm:$0xff] %vm2821_vm4, %v3051_v28  ;;  %v3077_v0 = vadd.f32 %v3076_v25, %v6245_v52 }
 0x2eb   : > { %3624 = shalt.err (!%p3621_p0)
}
 0x2ec   : > { %s3625_s20 = scalar_lea.hbm %s6316_s16, 256  ;;  %s3629_s24 = scalar_lea.hbm %s6423_s8, 512 }
 0x2ed   : > { %p3626_p5 = scmp.ne.s32.totalorder %s6316_s16, %s3625_s20  ;;  %p3630_p4 = scmp.lt.u32.totalorder %s6316_s16, %s6423_s8 }
 0x2ee   : > { %p3631_p6 = scmp.lt.u32.totalorder %s3629_s24, %s3625_s20  ;;  %p3633_p10 = scmp.lt.u32.totalorder %s3625_s20, %s6316_s16 }
 0x2ef   : > { %p3627_p11 = pnand %p3626_p5, %p3870_p12 }
 0x2f0   : > { %p3632_p8 = por %p3631_p6, %p3630_p4 }
 0x2f1   : > { %p3628_p2 = pneg %p3627_p11 }
 0x2f2   : > { %p3634_p13 = por %p3633_p10, %p3632_p8 }
 0x2f4   : > { %p3635_p3 = pnand %p3634_p13, %p3628_p2 }
 0x2f6   : > { %3638 = shalt.err (!%p3635_p3)
}
 0x2f7   : > { %3453 = dma.vmem_to_hbm [thread:$0]  (%p3870_p12), %s6318_s19, 256, %s6316_s16, %s6323_s29, %s3720_s15, %s3720_s15, %s3721_s25   ;;  %v3078_v12 = vadd.f32 %v3077_v0, %v6249_v57 }
 0x2f8   : > { %s3146_s23 = sshll.u32 %s6305_s14, 4  ;;  %s6705_s18 = sshll.u32 %s3795_s13, 8  ;;  %s6366_s23 = int_to_ptr.vmem [resolvable:$true] %s3146_s23 }
 0x2f9   : > { %v3079_v52 = vadd.f32 %v3078_v12, %v6253_v14  ;;  %s6364_s22 = scalar_lea.hbm %s6424_s9, %s6705_s18  ;;  %s3639_s20 = scalar_lea.vmem %s6366_s23, 256 }
 0x2fa   : > { %p3640_p7 = scmp.ne.s32.totalorder %s6366_s23, %s3639_s20  ;;  %s3723_s17 = smov [#allocation10]  }
 0x2fb   : > { %v3080_v60 = vadd.f32 %v3079_v52, %v6072_v32  ;;  %s3643_s13 = sshll.u32 %s3723_s17, 4  ;;  %s3644_s13 = int_to_ptr.vmem [resolvable:$false] %s3643_s13 }
 0x2fc   : > { %p3641_p9 = pnand %p3640_p7, %p3870_p12  ;;  %s3645_s26 = scalar_lea.vmem %s3644_s13, 512 }
 0x2fd   : > { %v3081_v42 = vadd.f32 %v3080_v60, %v6078_v9  ;;  %p3646_p0 = scmp.lt.s32.totalorder %s6366_s23, %s3644_s13  ;;  %p3647_p5 = scmp.lt.s32.totalorder %s3645_s26, %s3639_s20 }
 0x2fe   : > { %p3642_p1 = pneg %p3641_p9 }
 0x2ff   : > { %v3082_v19 = vadd.f32 %v3081_v42, %v6088_v7  ;;  %p3648_p11 = por %p3647_p5, %p3646_p0 }
 0x301   : > { %v3083_v21 = vadd.f32 %v3082_v19, %v6106_v31  ;;  %p3649_p2 = pnand %p3648_p11, %p3642_p1 }
 0x303   : > { %v3084_v53 = vadd.f32 %v3083_v21, %v6124_v15 }
 0x305   : > { %v3085_v16 = vadd.f32 %v3084_v53, %v6278_v35 }
 0x307   : > { %v3087_v57 = vmul.f32 0.0625, %v3085_v16 }
 0x309   : > { %3089 = vst.msk [vmem:[%s6305_s14 + $0x8] sm:$0xff] %vm2821_vm4, %v3087_v57 }
 0x30a   : > { %3652 = shalt.err (!%p3649_p2)
}
 0x30b   : > { %s3653_s14 = scalar_lea.hbm %s6364_s22, 256  ;;  %s3657_s18 = scalar_lea.hbm %s6424_s9, 512 }
 0x30c   : > { %p3654_p4 = scmp.ne.s32.totalorder %s6364_s22, %s3653_s14  ;;  %p3658_p10 = scmp.lt.u32.totalorder %s6364_s22, %s6424_s9 }
 0x30d   : > { %p3659_p13 = scmp.lt.u32.totalorder %s3657_s18, %s3653_s14  ;;  %p3661_p7 = scmp.lt.u32.totalorder %s3653_s14, %s6364_s22 }
 0x30e   : > { %p3655_p6 = pnand %p3654_p4, %p3870_p12 }
 0x30f   : > { %p3660_p3 = por %p3659_p13, %p3658_p10 }
 0x310   : > { %p3656_p8 = pneg %p3655_p6 }
 0x311   : > { %p3662_p9 = por %p3661_p7, %p3660_p3 }
 0x313   : > { %p3663_p1 = pnand %p3662_p9, %p3656_p8 }
 0x315   : > { %3666 = shalt.err (!%p3663_p1)
}
 0x316   : > { %3454 = dma.vmem_to_hbm [thread:$0]  (%p3870_p12), %s6366_s23, 256, %s6364_s22, %s6323_s29, %s3720_s15, %s3720_s15, %s3721_s25  }
 0x317 PF: > { %s6706_s20 = sld [smem:[#allocation15_spill]]  ;;  %s3161_s17 = sand.u32 1, %s3701_s30  }
 0x318   : > { %p6708_p5 = scmp.ge.s32.totalorder %s3713_s12, 2  ;;  %s3162_s13 = scalar_lea.sflag [#allocation4], %s3161_s17 }
 0x31d   : > { %p6707_p0 = scmp.ne.s32.totalorder %s6706_s20, 0 }
 0x31f   : > { %p3467_p11 = pnand %p6708_p5, %p6707_p0 }
 0x321   : > { %3692 = dma.done.wait (!%p3467_p11), %s3162_s13, 4096  }
 0x322   : > { %3694 = vsyncadd (!%p3467_p11), %s3162_s13, 4294963200  ;;  %s6709_s28 = sadd.s32 4294967294, %s3713_s12  }
 0x323   : > { %s3170_s26 = sand.u32 1, %s6709_s28  }
 0x324   : > { %s3171_s14 = scalar_lea.sflag [#allocation9], %s3170_s26 }
 0x325   : > { %3696 = dma.done.wait (!%p3467_p11), %s3171_s14, 512  }
 0x326   : > { %3698 = vsyncadd (!%p3467_p11), %s3171_s14, 4294966784  ;;  %s6710_s12 = sld [smem:[#allocation16_spill]]  ;;  %s6711_s30 = smov %s3705_s10 }
 0x327   : > { %s6712_s10 = smov %s3709_s11  ;;  %s6713_s11 = smov %s3866_s27 }
 0x32c   : > { %p27_p12 = scmp.ge.s32.totalorder %s6710_s12, 4  }
 0x32e   :  { %29 = sbr.rel (!%p27_p12) target bundleno = 8 (0x8), region = 129 }
 0x335   :  { %3185 = vsyncpa [#allocation3], 1 }
 0x336   :  { %3187 = vsyncpa [#allocation3 + $0x1], 1 }
 0x337   :  { %3188 = vsyncpa [#allocation6], 1 }
 0x338   :  { %3189 = vsyncpa [#allocation4], 1 }
 0x339   :  { %3191 = vsyncpa [#allocation4 + $0x1], 1 }
 0x33a   :  { %3192 = vsyncpa [#allocation9], 1 }
 0x33b   :  { %3194 = vsyncpa [#allocation9 + $0x1], 1 }

</bundles_post_ra>
